<compile_context>
chip_gen: v6e
topology: v6e:2x2x1
jax: 0.10.0
libtpu: 0.0.40
codegen_flags: <defaults>
</compile_context>

<pallas_src>
import jax
import jax.numpy as jnp
from jax import lax
from jax.experimental import pallas as pl
from jax.experimental.pallas import tpu as pltpu

_EPS = 1e-8  # torch.nn.CosineSimilarity default eps


# ----------------------------------------------------------------------------
# Small matmul helpers (always fp32 MXU accumulation).
# ----------------------------------------------------------------------------
def _mm(a, b):
    """(M,K) @ (K,N) -> (M,N)."""
    return jnp.dot(a, b, preferred_element_type=jnp.float32)


def _mm_nt(a, b):
    """(M,K) x (N,K) contracted over the last dims -> (M,N) (A @ B^T, no transpose op)."""
    return lax.dot_general(a, b, (((1,), (1,)), ((), ())),
                           preferred_element_type=jnp.float32)


def _cos_parts(num, sq1, sq2):
    """torch CosineSimilarity: dot / sqrt(clamp(|a|^2 * |b|^2, eps^2)) via rsqrt."""
    return num * lax.rsqrt(jnp.maximum(sq1 * sq2, _EPS * _EPS))


# ----------------------------------------------------------------------------
# In-kernel BiLSTM (bias=False, PyTorch gate order i,f,g,o), fwd+bwd fused.
# ----------------------------------------------------------------------------
def _bilstm(x, wih_cat, whh_bd, H):
    """x (T,E); wih_cat (E,8H) cols = [fwd i,f,g,o | bwd i,f,g,o];
    whh_bd (2H,8H) block-diagonal. Returns (pos (T,H), neg (T,H))."""
    T = x.shape[0]
    # input projection hoisted out of the recurrence: one matmul for all steps/directions
    xg = _mm(x, wih_cat)                                    # (T, 8H)
    h = jnp.zeros((1, 2 * H), jnp.float32)                  # [h_fwd | h_bwd]
    c = jnp.zeros((1, 2 * H), jnp.float32)
    fwd_rows = [None] * T
    bwd_rows = [None] * T

    def _cell(g, c_prev):
        i = jax.nn.sigmoid(g[:, 0 * H:1 * H])
        f = jax.nn.sigmoid(g[:, 1 * H:2 * H])
        gg = jnp.tanh(g[:, 2 * H:3 * H])
        o = jax.nn.sigmoid(g[:, 3 * H:4 * H])
        c_new = f * c_prev + i * gg
        return o * jnp.tanh(c_new), c_new

    for t in range(T):  # static trip count -> fully unrolled, static slices
        x_row = jnp.concatenate(
            [xg[t:t + 1, 0:4 * H],                # forward reads position t
             xg[T - 1 - t:T - t, 4 * H:8 * H]],   # backward reads position T-1-t
            axis=1)                               # (1, 8H)
        gates = x_row + _mm(h, whh_bd)            # one fused recurrent matmul per step
        h_f, c_f = _cell(gates[:, 0:4 * H], c[:, 0:H])
        h_b, c_b = _cell(gates[:, 4 * H:8 * H], c[:, H:2 * H])
        h = jnp.concatenate([h_f, h_b], axis=1)
        c = jnp.concatenate([c_f, c_b], axis=1)
        fwd_rows[t] = h_f
        bwd_rows[T - 1 - t] = h_b                 # backward output belongs to pos T-1-t
    pos = jnp.concatenate(fwd_rows, axis=0)       # (T, H)
    neg = jnp.concatenate(bwd_rows, axis=0)       # (T, H)
    return pos, neg


# ----------------------------------------------------------------------------
# In-kernel multi-perspective matching for one direction (pos or neg half).
# All cosines are expressed as matmuls; never materializes (L1, L2, w, H).
# ----------------------------------------------------------------------------
def _match_one_direction(q1d, q2d, q2_anchor, w_full, w_max, w_att, w_size):
    """q1d (L1,H), q2d (L2,H), q2_anchor (1,H). Returns (m_full, m_max, m_att) (L1,w)."""
    H = q1d.shape[1]
    q1sq = q1d * q1d
    q2sq = q2d * q2d
    wfsq = w_full * w_full          # (w, H)
    wmsq = w_max * w_max
    wasq = w_att * w_att

    # --- full matching vs the anchor state (last fwd / first bwd state of q2) ---
    num_f = _mm_nt(q1d * q2_anchor, wfsq)                   # (L1, w)
    sq1_f = _mm_nt(q1sq, wfsq)                              # (L1, w)
    sq2_f = _mm_nt(q2_anchor * q2_anchor, wfsq)             # (1,  w)
    m_full = _cos_parts(num_f, sq1_f, sq2_f)

    # --- max matching over all q2 positions ---
    sq1_m = _mm_nt(q1sq, wmsq)                              # (L1, w)
    sq2_mT = _mm_nt(wmsq, q2sq)                             # (w, L2)
    cols = []
    for p in range(w_size):                                 # w is small & static
        s2 = q2d * wmsq[p:p + 1, :]                         # (L2, H)
        num_p = _mm_nt(q1d, s2)                             # (L1, L2)
        cos_p = _cos_parts(num_p, sq1_m[:, p:p + 1], sq2_mT[p:p + 1, :])
        cols.append(jnp.max(cos_p, axis=1, keepdims=True))  # (L1, 1)
    m_max = jnp.concatenate(cols, axis=1)                   # (L1, w)

    # --- attentive matching ---
    ones_row = jnp.ones((1, H), jnp.float32)
    s1_sum = _mm_nt(q1sq, ones_row)                         # (L1, 1)
    s2_row = _mm_nt(ones_row, q2sq)                         # (1, L2)
    alpha = _cos_parts(_mm_nt(q1d, q2d), s1_sum, s2_row)    # (L1, L2)
    asum = jnp.sum(alpha, axis=1, keepdims=True)            # (L1, 1)
    # TODO(synk): reference divides by the alpha-sum with no epsilon; guard only the
    # degenerate near-zero case so the kernel stays finite.
    asum_safe = jnp.where(jnp.abs(asum) < _EPS,
                          jnp.where(asum >= 0.0, _EPS, -_EPS), asum)
    q2_att = _mm(alpha, q2d) * pl.reciprocal(asum_safe, approx=True)  # (L1, H)
    num_a = _mm_nt(q1d * q2_att, wasq)                      # (L1, w)
    sq1_a = _mm_nt(q1sq, wasq)
    sq2_a = _mm_nt(q2_att * q2_att, wasq)
    m_att = _cos_parts(num_a, sq1_a, sq2_a)
    return m_full, m_max, m_att


# ----------------------------------------------------------------------------
# Fully fused forward kernel: BiLSTM encoders + matching + head in one launch.
# ----------------------------------------------------------------------------
def fused_forward_kernel(x1_ref, x2_ref,
                         wih1_ref, whh1_ref, wih2_ref, whh2_ref,
                         w1_ref, w2_ref, w3_ref, w4_ref, w5_ref,
                         lw_ref, lb_ref,
                         out_ref, match_ref):
    H = whh1_ref.shape[0] // 2
    w_size = w1_ref.shape[0]

    # ---- BiLSTM encoders (reversal + concat handled in registers) ----
    q1_pos, q1_neg = _bilstm(x1_ref[...], wih1_ref[...], whh1_ref[...], H)
    q2_pos, q2_neg = _bilstm(x2_ref[...], wih2_ref[...], whh2_ref[...], H)

    # ---- multi-perspective matching ----
    m_pos_full, m_pos_max, m_pos_atten = _match_one_direction(
        q1_pos, q2_pos, q2_pos[-1:, :], w1_ref[...], w3_ref[...], w5_ref[...], w_size)
    # TODO(synk): reference builds W_6 but multiplies by W_5 (bug) -> reproduce with W_5.
    m_neg_full, m_neg_max, m_neg_atten = _match_one_direction(
        q1_neg, q2_neg, q2_neg[0:1, :], w2_ref[...], w4_ref[...], w5_ref[...], w_size)

    # single lane-dense store for all six (L1, w) match tensors
    match_ref[...] = jnp.concatenate(
        [m_pos_full, m_neg_full, m_pos_max, m_neg_max, m_pos_atten, m_neg_atten],
        axis=1)

    # ---- head: q2 final state attends over q1 outputs, concat, linear, softmax ----
    # TODO(synk): `self.attn` is undefined in the reference module; implemented here as
    #             softmax(dot-product) attention of q2's final state over q1 outputs.
    q1_full = jnp.concatenate([q1_pos, q1_neg], axis=1)                  # (L1, 2H)
    q2_last = jnp.concatenate([q2_pos[-1:, :], q2_neg[-1:, :]], axis=1)  # (1, 2H)
    scores = jnp.sum(q1_full * q2_last, axis=-1, keepdims=True)          # (L1, 1)
    attw = jax.nn.softmax(scores, axis=0)                                # (L1, 1)
    q1_att = jnp.sum(attw * q1_full, axis=0, keepdims=True)              # (1, 2H)
    feat = jnp.concatenate([q1_att, q2_last], axis=1)                    # (1, 4H)
    # TODO(synk): reference declares nn.Linear(2*H, n_labels) but feeds 4H features
    #             (would raise in PyTorch); weight here is (4H, n_labels) so it runs.
    logits = _mm(feat, lw_ref[...]) + lb_ref[...]
    out_ref[...] = jax.nn.softmax(logits, axis=1)


def run_fused_forward(q1_embs, q2_embs, params, packed, w_size, n_labels):
    L1 = q1_embs.shape[0]
    vmem = pl.BlockSpec(memory_space=pltpu.MemorySpace.VMEM)
    out_shapes = (
        jax.ShapeDtypeStruct((1, n_labels), jnp.float32),        # softmax output
        jax.ShapeDtypeStruct((L1, 6 * w_size), jnp.float32),     # packed match tensors
    )
    return pl.pallas_call(
        fused_forward_kernel,
        out_shape=out_shapes,
        in_specs=[vmem] * 13,
        out_specs=(vmem, vmem),
    )(q1_embs, q2_embs,
      packed["wih1"], packed["whh1"], packed["wih2"], packed["whh2"],
      params["W_1"], params["W_2"], params["W_3"], params["W_4"], params["W_5"],
      packed["lin_w_t"], packed["lin_b"])


# ----------------------------------------------------------------------------
# Model glue
# ----------------------------------------------------------------------------
def _block_diag(a, b):
    ra, ca = a.shape
    rb, cb = b.shape
    top = jnp.concatenate([a, jnp.zeros((ra, cb), a.dtype)], axis=1)
    bot = jnp.concatenate([jnp.zeros((rb, ca), b.dtype), b], axis=1)
    return jnp.concatenate([top, bot], axis=0)


def pack_kernel_weights(params):
    """One-time layout packing (done in glue so the kernel never transposes)."""
    def pack_lstm(p):
        wih = jnp.concatenate([p["wih_f"], p["wih_b"]], axis=1)  # (E, 8H)
        whh = _block_diag(p["whh_f"], p["whh_b"])                # (2H, 8H) block-diag
        return wih, whh
    wih1, whh1 = pack_lstm(params["q1_lstm"])
    wih2, whh2 = pack_lstm(params["q2_lstm"])
    return dict(wih1=wih1, whh1=whh1, wih2=wih2, whh2=whh2,
                lin_w_t=params["lin_w"].T,                       # (4H, n_labels)
                lin_b=params["lin_b"])


def init_params(key, vocab, emb_size, hidden_size, w_size, n_labels):
    ks = jax.random.split(key, 16)
    k = 1.0 / jnp.sqrt(hidden_size)

    def uni(rng, shape):
        return jax.random.uniform(rng, shape, jnp.float32, -k, k)

    def lstm_params(r0, r1, r2, r3):
        # stored pre-transposed: wih (E, 4H), whh (H, 4H)  (PyTorch gate order i,f,g,o)
        return dict(wih_f=uni(r0, (emb_size, 4 * hidden_size)),
                    whh_f=uni(r1, (hidden_size, 4 * hidden_size)),
                    wih_b=uni(r2, (emb_size, 4 * hidden_size)),
                    whh_b=uni(r3, (hidden_size, 4 * hidden_size)))

    params = dict(
        emb=jax.random.normal(ks[0], (vocab, emb_size), jnp.float32),
        q1_lstm=lstm_params(ks[1], ks[2], ks[3], ks[4]),
        q2_lstm=lstm_params(ks[5], ks[6], ks[7], ks[8]),
        W_1=jax.random.normal(ks[9], (w_size, hidden_size), jnp.float32),
        W_2=jax.random.normal(ks[10], (w_size, hidden_size), jnp.float32),
        W_3=jax.random.normal(ks[11], (w_size, hidden_size), jnp.float32),
        W_4=jax.random.normal(ks[12], (w_size, hidden_size), jnp.float32),
        W_5=jax.random.normal(ks[13], (w_size, hidden_size), jnp.float32),
        # W_6, W_7, W_8 exist in the reference but are never used in the math.
        lin_w=uni(ks[14], (n_labels, 4 * hidden_size)),
        lin_b=uni(ks[15], (1, n_labels)),
    )
    return params


def model_forward(params, q1_inputs, q2_inputs, q1_len, q2_len, w_size, n_labels):
    # embedding lookup (glue)
    q1_embs = jnp.take(params["emb"], q1_inputs[0, :q1_len], axis=0)   # (L1, E)
    q2_embs = jnp.take(params["emb"], q2_inputs[0, :q2_len], axis=0)   # (L2, E)

    packed = pack_kernel_weights(params)

    # single fused Pallas kernel: BiLSTMs + matching + head
    output, match = run_fused_forward(q1_embs, q2_embs, params, packed,
                                      w_size, n_labels)

    w = w_size
    aux = dict(m_pos_full=match[:, 0 * w:1 * w], m_neg_full=match[:, 1 * w:2 * w],
               m_pos_max=match[:, 2 * w:3 * w], m_neg_max=match[:, 3 * w:4 * w],
               m_pos_atten=match[:, 4 * w:5 * w], m_neg_atten=match[:, 5 * w:6 * w])
    return output, aux


if __name__ == "__main__":
    VOCAB, EMB, HID, WSZ, NLAB = 50, 32, 32, 4, 3
    key = jax.random.PRNGKey(0)
    pkey, k1, k2 = jax.random.split(key, 3)

    params = init_params(pkey, VOCAB, EMB, HID, WSZ, NLAB)

    q1_inputs = jax.random.randint(k1, (1, 10), 0, VOCAB, dtype=jnp.int32)
    q2_inputs = jax.random.randint(k2, (1, 9), 0, VOCAB, dtype=jnp.int32)
    q1_lens = jnp.array([8], dtype=jnp.int32)
    q2_lens = jnp.array([6], dtype=jnp.int32)

    # mirror `q1_lens.cpu().numpy()[0]` (host scalar -> static truncation)
    q1_len = int(jax.device_get(q1_lens)[0])
    q2_len = int(jax.device_get(q2_lens)[0])

    output, aux = model_forward(params, q1_inputs, q2_inputs,
                                q1_len, q2_len, WSZ, NLAB)
    jax.block_until_ready(output)
    jax.block_until_ready(aux)

    assert output.shape == (1, NLAB)
    assert aux["m_pos_max"].shape == (q1_len, WSZ)
    assert bool(jnp.isfinite(output).all())
    assert abs(float(output.sum()) - 1.0) < 1e-4
    print("KERNEL_OK")
</pallas_src>

<mosaic_0001>
module attributes {stable_mosaic.version = 11 : i64} {
  func.func @fused_forward_kernel(%arg0: memref<8x32xf32, #tpu.memory_space<vmem>>, %arg1: memref<6x32xf32, #tpu.memory_space<vmem>>, %arg2: memref<32x256xf32, #tpu.memory_space<vmem>>, %arg3: memref<64x256xf32, #tpu.memory_space<vmem>>, %arg4: memref<32x256xf32, #tpu.memory_space<vmem>>, %arg5: memref<64x256xf32, #tpu.memory_space<vmem>>, %arg6: memref<4x32xf32, #tpu.memory_space<vmem>>, %arg7: memref<4x32xf32, #tpu.memory_space<vmem>>, %arg8: memref<4x32xf32, #tpu.memory_space<vmem>>, %arg9: memref<4x32xf32, #tpu.memory_space<vmem>>, %arg10: memref<4x32xf32, #tpu.memory_space<vmem>>, %arg11: memref<128x3xf32, #tpu.memory_space<vmem>>, %arg12: memref<1x3xf32, #tpu.memory_space<vmem>>, %arg13: memref<1x3xf32, #tpu.memory_space<vmem>>, %arg14: memref<8x24xf32, #tpu.memory_space<vmem>>) attributes {dimension_semantics = [], scalar_prefetch = 0 : i64, scratch_operands = 0 : i64, tpu.core_type = #tpu.core_type<tc>} {
    %c0 = arith.constant 0 : index
    %c0_0 = arith.constant 0 : index
    %0 = vector.load %arg0[%c0, %c0_0] : memref<8x32xf32, #tpu.memory_space<vmem>>, vector<8x32xf32>
    %c0_1 = arith.constant 0 : index
    %c0_2 = arith.constant 0 : index
    %1 = vector.load %arg2[%c0_1, %c0_2] : memref<32x256xf32, #tpu.memory_space<vmem>>, vector<32x256xf32>
    %c0_3 = arith.constant 0 : index
    %c0_4 = arith.constant 0 : index
    %2 = vector.load %arg3[%c0_3, %c0_4] : memref<64x256xf32, #tpu.memory_space<vmem>>, vector<64x256xf32>
    %cst = arith.constant dense<0.000000e+00> : vector<8x256xf32>
    %3 = tpu.matmul %0, %1, %cst {dimension_numbers = #tpu.dot_dimension_numbers<[1], [0], [0], [1], [0, 0, 1, 1], [], []>} : vector<8x32xf32>, vector<32x256xf32>, vector<8x256xf32> -> vector<8x256xf32>
    %cst_5 = arith.constant 0.000000e+00 : f32
    %4 = vector.broadcast %cst_5 : f32 to vector<1x64xf32>
    %cst_6 = arith.constant 0.000000e+00 : f32
    %5 = vector.broadcast %cst_6 : f32 to vector<1x64xf32>
    %6 = vector.extract_strided_slice %3 {offsets = [0, 0], sizes = [1, 128], strides = [1, 1]} : vector<8x256xf32> to vector<1x128xf32>
    %7 = vector.extract_strided_slice %3 {offsets = [7, 128], sizes = [1, 128], strides = [1, 1]} : vector<8x256xf32> to vector<1x128xf32>
    %8 = tpu.concatenate %6, %7 in 1 : vector<1x128xf32>, vector<1x128xf32> -> vector<1x256xf32>
    %cst_7 = arith.constant dense<0.000000e+00> : vector<1x256xf32>
    %9 = tpu.matmul %4, %2, %cst_7 {dimension_numbers = #tpu.dot_dimension_numbers<[1], [0], [0], [1], [0, 0, 1, 1], [], []>} : vector<1x64xf32>, vector<64x256xf32>, vector<1x256xf32> -> vector<1x256xf32>
    %10 = arith.addf %8, %9 : vector<1x256xf32>
    %11 = vector.extract_strided_slice %10 {offsets = [0, 0], sizes = [1, 128], strides = [1, 1]} : vector<1x256xf32> to vector<1x128xf32>
    %12 = vector.extract_strided_slice %5 {offsets = [0, 0], sizes = [1, 32], strides = [1, 1]} : vector<1x64xf32> to vector<1x32xf32>
    %13 = vector.extract_strided_slice %11 {offsets = [0, 0], sizes = [1, 32], strides = [1, 1]} : vector<1x128xf32> to vector<1x32xf32>
    %14 = arith.negf %13 : vector<1x32xf32>
    %15 = math.exp %14 : vector<1x32xf32>
    %cst_8 = arith.constant 1.000000e+00 : f32
    %16 = vector.broadcast %cst_8 : f32 to vector<1x32xf32>
    %17 = arith.addf %16, %15 : vector<1x32xf32>
    %18 = arith.divf %16, %17 : vector<1x32xf32>
    %19 = vector.extract_strided_slice %11 {offsets = [0, 32], sizes = [1, 32], strides = [1, 1]} : vector<1x128xf32> to vector<1x32xf32>
    %20 = arith.negf %19 : vector<1x32xf32>
    %21 = math.exp %20 : vector<1x32xf32>
    %cst_9 = arith.constant 1.000000e+00 : f32
    %22 = vector.broadcast %cst_9 : f32 to vector<1x32xf32>
    %23 = arith.addf %22, %21 : vector<1x32xf32>
    %24 = arith.divf %22, %23 : vector<1x32xf32>
    %25 = vector.extract_strided_slice %11 {offsets = [0, 64], sizes = [1, 32], strides = [1, 1]} : vector<1x128xf32> to vector<1x32xf32>
    %26 = math.tanh %25 : vector<1x32xf32>
    %27 = vector.extract_strided_slice %11 {offsets = [0, 96], sizes = [1, 32], strides = [1, 1]} : vector<1x128xf32> to vector<1x32xf32>
    %28 = arith.negf %27 : vector<1x32xf32>
    %29 = math.exp %28 : vector<1x32xf32>
    %cst_10 = arith.constant 1.000000e+00 : f32
    %30 = vector.broadcast %cst_10 : f32 to vector<1x32xf32>
    %31 = arith.addf %30, %29 : vector<1x32xf32>
    %32 = arith.divf %30, %31 : vector<1x32xf32>
    %33 = arith.mulf %24, %12 : vector<1x32xf32>
    %34 = arith.mulf %18, %26 : vector<1x32xf32>
    %35 = arith.addf %33, %34 : vector<1x32xf32>
    %36 = math.tanh %35 : vector<1x32xf32>
    %37 = arith.mulf %32, %36 : vector<1x32xf32>
    %38 = vector.extract_strided_slice %10 {offsets = [0, 128], sizes = [1, 128], strides = [1, 1]} : vector<1x256xf32> to vector<1x128xf32>
    %39 = vector.extract_strided_slice %5 {offsets = [0, 32], sizes = [1, 32], strides = [1, 1]} : vector<1x64xf32> to vector<1x32xf32>
    %40 = vector.extract_strided_slice %38 {offsets = [0, 0], sizes = [1, 32], strides = [1, 1]} : vector<1x128xf32> to vector<1x32xf32>
    %41 = arith.negf %40 : vector<1x32xf32>
    %42 = math.exp %41 : vector<1x32xf32>
    %cst_11 = arith.constant 1.000000e+00 : f32
    %43 = vector.broadcast %cst_11 : f32 to vector<1x32xf32>
    %44 = arith.addf %43, %42 : vector<1x32xf32>
    %45 = arith.divf %43, %44 : vector<1x32xf32>
    %46 = vector.extract_strided_slice %38 {offsets = [0, 32], sizes = [1, 32], strides = [1, 1]} : vector<1x128xf32> to vector<1x32xf32>
    %47 = arith.negf %46 : vector<1x32xf32>
    %48 = math.exp %47 : vector<1x32xf32>
    %cst_12 = arith.constant 1.000000e+00 : f32
    %49 = vector.broadcast %cst_12 : f32 to vector<1x32xf32>
    %50 = arith.addf %49, %48 : vector<1x32xf32>
    %51 = arith.divf %49, %50 : vector<1x32xf32>
    %52 = vector.extract_strided_slice %38 {offsets = [0, 64], sizes = [1, 32], strides = [1, 1]} : vector<1x128xf32> to vector<1x32xf32>
    %53 = math.tanh %52 : vector<1x32xf32>
    %54 = vector.extract_strided_slice %38 {offsets = [0, 96], sizes = [1, 32], strides = [1, 1]} : vector<1x128xf32> to vector<1x32xf32>
    %55 = arith.negf %54 : vector<1x32xf32>
    %56 = math.exp %55 : vector<1x32xf32>
    %cst_13 = arith.constant 1.000000e+00 : f32
    %57 = vector.broadcast %cst_13 : f32 to vector<1x32xf32>
    %58 = arith.addf %57, %56 : vector<1x32xf32>
    %59 = arith.divf %57, %58 : vector<1x32xf32>
    %60 = arith.mulf %51, %39 : vector<1x32xf32>
    %61 = arith.mulf %45, %53 : vector<1x32xf32>
    %62 = arith.addf %60, %61 : vector<1x32xf32>
    %63 = math.tanh %62 : vector<1x32xf32>
    %64 = arith.mulf %59, %63 : vector<1x32xf32>
    %65 = tpu.concatenate %37, %64 in 1 : vector<1x32xf32>, vector<1x32xf32> -> vector<1x64xf32>
    %66 = tpu.concatenate %35, %62 in 1 : vector<1x32xf32>, vector<1x32xf32> -> vector<1x64xf32>
    %67 = vector.extract_strided_slice %3 {offsets = [1, 0], sizes = [1, 128], strides = [1, 1]} : vector<8x256xf32> to vector<1x128xf32>
    %68 = vector.extract_strided_slice %3 {offsets = [6, 128], sizes = [1, 128], strides = [1, 1]} : vector<8x256xf32> to vector<1x128xf32>
    %69 = tpu.concatenate %67, %68 in 1 : vector<1x128xf32>, vector<1x128xf32> -> vector<1x256xf32>
    %cst_14 = arith.constant dense<0.000000e+00> : vector<1x256xf32>
    %70 = tpu.matmul %65, %2, %cst_14 {dimension_numbers = #tpu.dot_dimension_numbers<[1], [0], [0], [1], [0, 0, 1, 1], [], []>} : vector<1x64xf32>, vector<64x256xf32>, vector<1x256xf32> -> vector<1x256xf32>
    %71 = arith.addf %69, %70 : vector<1x256xf32>
    %72 = vector.extract_strided_slice %71 {offsets = [0, 0], sizes = [1, 128], strides = [1, 1]} : vector<1x256xf32> to vector<1x128xf32>
    %73 = vector.extract_strided_slice %66 {offsets = [0, 0], sizes = [1, 32], strides = [1, 1]} : vector<1x64xf32> to vector<1x32xf32>
    %74 = vector.extract_strided_slice %72 {offsets = [0, 0], sizes = [1, 32], strides = [1, 1]} : vector<1x128xf32> to vector<1x32xf32>
    %75 = arith.negf %74 : vector<1x32xf32>
    %76 = math.exp %75 : vector<1x32xf32>
    %cst_15 = arith.constant 1.000000e+00 : f32
    %77 = vector.broadcast %cst_15 : f32 to vector<1x32xf32>
    %78 = arith.addf %77, %76 : vector<1x32xf32>
    %79 = arith.divf %77, %78 : vector<1x32xf32>
    %80 = vector.extract_strided_slice %72 {offsets = [0, 32], sizes = [1, 32], strides = [1, 1]} : vector<1x128xf32> to vector<1x32xf32>
    %81 = arith.negf %80 : vector<1x32xf32>
    %82 = math.exp %81 : vector<1x32xf32>
    %cst_16 = arith.constant 1.000000e+00 : f32
    %83 = vector.broadcast %cst_16 : f32 to vector<1x32xf32>
    %84 = arith.addf %83, %82 : vector<1x32xf32>
    %85 = arith.divf %83, %84 : vector<1x32xf32>
    %86 = vector.extract_strided_slice %72 {offsets = [0, 64], sizes = [1, 32], strides = [1, 1]} : vector<1x128xf32> to vector<1x32xf32>
    %87 = math.tanh %86 : vector<1x32xf32>
    %88 = vector.extract_strided_slice %72 {offsets = [0, 96], sizes = [1, 32], strides = [1, 1]} : vector<1x128xf32> to vector<1x32xf32>
    %89 = arith.negf %88 : vector<1x32xf32>
    %90 = math.exp %89 : vector<1x32xf32>
    %cst_17 = arith.constant 1.000000e+00 : f32
    %91 = vector.broadcast %cst_17 : f32 to vector<1x32xf32>
    %92 = arith.addf %91, %90 : vector<1x32xf32>
    %93 = arith.divf %91, %92 : vector<1x32xf32>
    %94 = arith.mulf %85, %73 : vector<1x32xf32>
    %95 = arith.mulf %79, %87 : vector<1x32xf32>
    %96 = arith.addf %94, %95 : vector<1x32xf32>
    %97 = math.tanh %96 : vector<1x32xf32>
    %98 = arith.mulf %93, %97 : vector<1x32xf32>
    %99 = vector.extract_strided_slice %71 {offsets = [0, 128], sizes = [1, 128], strides = [1, 1]} : vector<1x256xf32> to vector<1x128xf32>
    %100 = vector.extract_strided_slice %66 {offsets = [0, 32], sizes = [1, 32], strides = [1, 1]} : vector<1x64xf32> to vector<1x32xf32>
    %101 = vector.extract_strided_slice %99 {offsets = [0, 0], sizes = [1, 32], strides = [1, 1]} : vector<1x128xf32> to vector<1x32xf32>
    %102 = arith.negf %101 : vector<1x32xf32>
    %103 = math.exp %102 : vector<1x32xf32>
    %cst_18 = arith.constant 1.000000e+00 : f32
    %104 = vector.broadcast %cst_18 : f32 to vector<1x32xf32>
    %105 = arith.addf %104, %103 : vector<1x32xf32>
    %106 = arith.divf %104, %105 : vector<1x32xf32>
    %107 = vector.extract_strided_slice %99 {offsets = [0, 32], sizes = [1, 32], strides = [1, 1]} : vector<1x128xf32> to vector<1x32xf32>
    %108 = arith.negf %107 : vector<1x32xf32>
    %109 = math.exp %108 : vector<1x32xf32>
    %cst_19 = arith.constant 1.000000e+00 : f32
    %110 = vector.broadcast %cst_19 : f32 to vector<1x32xf32>
    %111 = arith.addf %110, %109 : vector<1x32xf32>
    %112 = arith.divf %110, %111 : vector<1x32xf32>
    %113 = vector.extract_strided_slice %99 {offsets = [0, 64], sizes = [1, 32], strides = [1, 1]} : vector<1x128xf32> to vector<1x32xf32>
    %114 = math.tanh %113 : vector<1x32xf32>
    %115 = vector.extract_strided_slice %99 {offsets = [0, 96], sizes = [1, 32], strides = [1, 1]} : vector<1x128xf32> to vector<1x32xf32>
    %116 = arith.negf %115 : vector<1x32xf32>
    %117 = math.exp %116 : vector<1x32xf32>
    %cst_20 = arith.constant 1.000000e+00 : f32
    %118 = vector.broadcast %cst_20 : f32 to vector<1x32xf32>
    %119 = arith.addf %118, %117 : vector<1x32xf32>
    %120 = arith.divf %118, %119 : vector<1x32xf32>
    %121 = arith.mulf %112, %100 : vector<1x32xf32>
    %122 = arith.mulf %106, %114 : vector<1x32xf32>
    %123 = arith.addf %121, %122 : vector<1x32xf32>
    %124 = math.tanh %123 : vector<1x32xf32>
    %125 = arith.mulf %120, %124 : vector<1x32xf32>
    %126 = tpu.concatenate %98, %125 in 1 : vector<1x32xf32>, vector<1x32xf32> -> vector<1x64xf32>
    %127 = tpu.concatenate %96, %123 in 1 : vector<1x32xf32>, vector<1x32xf32> -> vector<1x64xf32>
    %128 = vector.extract_strided_slice %3 {offsets = [2, 0], sizes = [1, 128], strides = [1, 1]} : vector<8x256xf32> to vector<1x128xf32>
    %129 = vector.extract_strided_slice %3 {offsets = [5, 128], sizes = [1, 128], strides = [1, 1]} : vector<8x256xf32> to vector<1x128xf32>
    %130 = tpu.concatenate %128, %129 in 1 : vector<1x128xf32>, vector<1x128xf32> -> vector<1x256xf32>
    %cst_21 = arith.constant dense<0.000000e+00> : vector<1x256xf32>
    %131 = tpu.matmul %126, %2, %cst_21 {dimension_numbers = #tpu.dot_dimension_numbers<[1], [0], [0], [1], [0, 0, 1, 1], [], []>} : vector<1x64xf32>, vector<64x256xf32>, vector<1x256xf32> -> vector<1x256xf32>
    %132 = arith.addf %130, %131 : vector<1x256xf32>
    %133 = vector.extract_strided_slice %132 {offsets = [0, 0], sizes = [1, 128], strides = [1, 1]} : vector<1x256xf32> to vector<1x128xf32>
    %134 = vector.extract_strided_slice %127 {offsets = [0, 0], sizes = [1, 32], strides = [1, 1]} : vector<1x64xf32> to vector<1x32xf32>
    %135 = vector.extract_strided_slice %133 {offsets = [0, 0], sizes = [1, 32], strides = [1, 1]} : vector<1x128xf32> to vector<1x32xf32>
    %136 = arith.negf %135 : vector<1x32xf32>
    %137 = math.exp %136 : vector<1x32xf32>
    %cst_22 = arith.constant 1.000000e+00 : f32
    %138 = vector.broadcast %cst_22 : f32 to vector<1x32xf32>
    %139 = arith.addf %138, %137 : vector<1x32xf32>
    %140 = arith.divf %138, %139 : vector<1x32xf32>
    %141 = vector.extract_strided_slice %133 {offsets = [0, 32], sizes = [1, 32], strides = [1, 1]} : vector<1x128xf32> to vector<1x32xf32>
    %142 = arith.negf %141 : vector<1x32xf32>
    %143 = math.exp %142 : vector<1x32xf32>
    %cst_23 = arith.constant 1.000000e+00 : f32
    %144 = vector.broadcast %cst_23 : f32 to vector<1x32xf32>
    %145 = arith.addf %144, %143 : vector<1x32xf32>
    %146 = arith.divf %144, %145 : vector<1x32xf32>
    %147 = vector.extract_strided_slice %133 {offsets = [0, 64], sizes = [1, 32], strides = [1, 1]} : vector<1x128xf32> to vector<1x32xf32>
    %148 = math.tanh %147 : vector<1x32xf32>
    %149 = vector.extract_strided_slice %133 {offsets = [0, 96], sizes = [1, 32], strides = [1, 1]} : vector<1x128xf32> to vector<1x32xf32>
    %150 = arith.negf %149 : vector<1x32xf32>
    %151 = math.exp %150 : vector<1x32xf32>
    %cst_24 = arith.constant 1.000000e+00 : f32
    %152 = vector.broadcast %cst_24 : f32 to vector<1x32xf32>
    %153 = arith.addf %152, %151 : vector<1x32xf32>
    %154 = arith.divf %152, %153 : vector<1x32xf32>
    %155 = arith.mulf %146, %134 : vector<1x32xf32>
    %156 = arith.mulf %140, %148 : vector<1x32xf32>
    %157 = arith.addf %155, %156 : vector<1x32xf32>
    %158 = math.tanh %157 : vector<1x32xf32>
    %159 = arith.mulf %154, %158 : vector<1x32xf32>
    %160 = vector.extract_strided_slice %132 {offsets = [0, 128], sizes = [1, 128], strides = [1, 1]} : vector<1x256xf32> to vector<1x128xf32>
    %161 = vector.extract_strided_slice %127 {offsets = [0, 32], sizes = [1, 32], strides = [1, 1]} : vector<1x64xf32> to vector<1x32xf32>
    %162 = vector.extract_strided_slice %160 {offsets = [0, 0], sizes = [1, 32], strides = [1, 1]} : vector<1x128xf32> to vector<1x32xf32>
    %163 = arith.negf %162 : vector<1x32xf32>
    %164 = math.exp %163 : vector<1x32xf32>
    %cst_25 = arith.constant 1.000000e+00 : f32
    %165 = vector.broadcast %cst_25 : f32 to vector<1x32xf32>
    %166 = arith.addf %165, %164 : vector<1x32xf32>
    %167 = arith.divf %165, %166 : vector<1x32xf32>
    %168 = vector.extract_strided_slice %160 {offsets = [0, 32], sizes = [1, 32], strides = [1, 1]} : vector<1x128xf32> to vector<1x32xf32>
    %169 = arith.negf %168 : vector<1x32xf32>
    %170 = math.exp %169 : vector<1x32xf32>
    %cst_26 = arith.constant 1.000000e+00 : f32
    %171 = vector.broadcast %cst_26 : f32 to vector<1x32xf32>
    %172 = arith.addf %171, %170 : vector<1x32xf32>
    %173 = arith.divf %171, %172 : vector<1x32xf32>
    %174 = vector.extract_strided_slice %160 {offsets = [0, 64], sizes = [1, 32], strides = [1, 1]} : vector<1x128xf32> to vector<1x32xf32>
    %175 = math.tanh %174 : vector<1x32xf32>
    %176 = vector.extract_strided_slice %160 {offsets = [0, 96], sizes = [1, 32], strides = [1, 1]} : vector<1x128xf32> to vector<1x32xf32>
    %177 = arith.negf %176 : vector<1x32xf32>
    %178 = math.exp %177 : vector<1x32xf32>
    %cst_27 = arith.constant 1.000000e+00 : f32
    %179 = vector.broadcast %cst_27 : f32 to vector<1x32xf32>
    %180 = arith.addf %179, %178 : vector<1x32xf32>
    %181 = arith.divf %179, %180 : vector<1x32xf32>
    %182 = arith.mulf %173, %161 : vector<1x32xf32>
    %183 = arith.mulf %167, %175 : vector<1x32xf32>
    %184 = arith.addf %182, %183 : vector<1x32xf32>
    %185 = math.tanh %184 : vector<1x32xf32>
    %186 = arith.mulf %181, %185 : vector<1x32xf32>
    %187 = tpu.concatenate %159, %186 in 1 : vector<1x32xf32>, vector<1x32xf32> -> vector<1x64xf32>
    %188 = tpu.concatenate %157, %184 in 1 : vector<1x32xf32>, vector<1x32xf32> -> vector<1x64xf32>
    %189 = vector.extract_strided_slice %3 {offsets = [3, 0], sizes = [1, 128], strides = [1, 1]} : vector<8x256xf32> to vector<1x128xf32>
    %190 = vector.extract_strided_slice %3 {offsets = [4, 128], sizes = [1, 128], strides = [1, 1]} : vector<8x256xf32> to vector<1x128xf32>
    %191 = tpu.concatenate %189, %190 in 1 : vector<1x128xf32>, vector<1x128xf32> -> vector<1x256xf32>
    %cst_28 = arith.constant dense<0.000000e+00> : vector<1x256xf32>
    %192 = tpu.matmul %187, %2, %cst_28 {dimension_numbers = #tpu.dot_dimension_numbers<[1], [0], [0], [1], [0, 0, 1, 1], [], []>} : vector<1x64xf32>, vector<64x256xf32>, vector<1x256xf32> -> vector<1x256xf32>
    %193 = arith.addf %191, %192 : vector<1x256xf32>
    %194 = vector.extract_strided_slice %193 {offsets = [0, 0], sizes = [1, 128], strides = [1, 1]} : vector<1x256xf32> to vector<1x128xf32>
    %195 = vector.extract_strided_slice %188 {offsets = [0, 0], sizes = [1, 32], strides = [1, 1]} : vector<1x64xf32> to vector<1x32xf32>
    %196 = vector.extract_strided_slice %194 {offsets = [0, 0], sizes = [1, 32], strides = [1, 1]} : vector<1x128xf32> to vector<1x32xf32>
    %197 = arith.negf %196 : vector<1x32xf32>
    %198 = math.exp %197 : vector<1x32xf32>
    %cst_29 = arith.constant 1.000000e+00 : f32
    %199 = vector.broadcast %cst_29 : f32 to vector<1x32xf32>
    %200 = arith.addf %199, %198 : vector<1x32xf32>
    %201 = arith.divf %199, %200 : vector<1x32xf32>
    %202 = vector.extract_strided_slice %194 {offsets = [0, 32], sizes = [1, 32], strides = [1, 1]} : vector<1x128xf32> to vector<1x32xf32>
    %203 = arith.negf %202 : vector<1x32xf32>
    %204 = math.exp %203 : vector<1x32xf32>
    %cst_30 = arith.constant 1.000000e+00 : f32
    %205 = vector.broadcast %cst_30 : f32 to vector<1x32xf32>
    %206 = arith.addf %205, %204 : vector<1x32xf32>
    %207 = arith.divf %205, %206 : vector<1x32xf32>
    %208 = vector.extract_strided_slice %194 {offsets = [0, 64], sizes = [1, 32], strides = [1, 1]} : vector<1x128xf32> to vector<1x32xf32>
    %209 = math.tanh %208 : vector<1x32xf32>
    %210 = vector.extract_strided_slice %194 {offsets = [0, 96], sizes = [1, 32], strides = [1, 1]} : vector<1x128xf32> to vector<1x32xf32>
    %211 = arith.negf %210 : vector<1x32xf32>
    %212 = math.exp %211 : vector<1x32xf32>
    %cst_31 = arith.constant 1.000000e+00 : f32
    %213 = vector.broadcast %cst_31 : f32 to vector<1x32xf32>
    %214 = arith.addf %213, %212 : vector<1x32xf32>
    %215 = arith.divf %213, %214 : vector<1x32xf32>
    %216 = arith.mulf %207, %195 : vector<1x32xf32>
    %217 = arith.mulf %201, %209 : vector<1x32xf32>
    %218 = arith.addf %216, %217 : vector<1x32xf32>
    %219 = math.tanh %218 : vector<1x32xf32>
    %220 = arith.mulf %215, %219 : vector<1x32xf32>
    %221 = vector.extract_strided_slice %193 {offsets = [0, 128], sizes = [1, 128], strides = [1, 1]} : vector<1x256xf32> to vector<1x128xf32>
    %222 = vector.extract_strided_slice %188 {offsets = [0, 32], sizes = [1, 32], strides = [1, 1]} : vector<1x64xf32> to vector<1x32xf32>
    %223 = vector.extract_strided_slice %221 {offsets = [0, 0], sizes = [1, 32], strides = [1, 1]} : vector<1x128xf32> to vector<1x32xf32>
    %224 = arith.negf %223 : vector<1x32xf32>
    %225 = math.exp %224 : vector<1x32xf32>
    %cst_32 = arith.constant 1.000000e+00 : f32
    %226 = vector.broadcast %cst_32 : f32 to vector<1x32xf32>
    %227 = arith.addf %226, %225 : vector<1x32xf32>
    %228 = arith.divf %226, %227 : vector<1x32xf32>
    %229 = vector.extract_strided_slice %221 {offsets = [0, 32], sizes = [1, 32], strides = [1, 1]} : vector<1x128xf32> to vector<1x32xf32>
    %230 = arith.negf %229 : vector<1x32xf32>
    %231 = math.exp %230 : vector<1x32xf32>
    %cst_33 = arith.constant 1.000000e+00 : f32
    %232 = vector.broadcast %cst_33 : f32 to vector<1x32xf32>
    %233 = arith.addf %232, %231 : vector<1x32xf32>
    %234 = arith.divf %232, %233 : vector<1x32xf32>
    %235 = vector.extract_strided_slice %221 {offsets = [0, 64], sizes = [1, 32], strides = [1, 1]} : vector<1x128xf32> to vector<1x32xf32>
    %236 = math.tanh %235 : vector<1x32xf32>
    %237 = vector.extract_strided_slice %221 {offsets = [0, 96], sizes = [1, 32], strides = [1, 1]} : vector<1x128xf32> to vector<1x32xf32>
    %238 = arith.negf %237 : vector<1x32xf32>
    %239 = math.exp %238 : vector<1x32xf32>
    %cst_34 = arith.constant 1.000000e+00 : f32
    %240 = vector.broadcast %cst_34 : f32 to vector<1x32xf32>
    %241 = arith.addf %240, %239 : vector<1x32xf32>
    %242 = arith.divf %240, %241 : vector<1x32xf32>
    %243 = arith.mulf %234, %222 : vector<1x32xf32>
    %244 = arith.mulf %228, %236 : vector<1x32xf32>
    %245 = arith.addf %243, %244 : vector<1x32xf32>
    %246 = math.tanh %245 : vector<1x32xf32>
    %247 = arith.mulf %242, %246 : vector<1x32xf32>
    %248 = tpu.concatenate %220, %247 in 1 : vector<1x32xf32>, vector<1x32xf32> -> vector<1x64xf32>
    %249 = tpu.concatenate %218, %245 in 1 : vector<1x32xf32>, vector<1x32xf32> -> vector<1x64xf32>
    %250 = vector.extract_strided_slice %3 {offsets = [4, 0], sizes = [1, 128], strides = [1, 1]} : vector<8x256xf32> to vector<1x128xf32>
    %251 = vector.extract_strided_slice %3 {offsets = [3, 128], sizes = [1, 128], strides = [1, 1]} : vector<8x256xf32> to vector<1x128xf32>
    %252 = tpu.concatenate %250, %251 in 1 : vector<1x128xf32>, vector<1x128xf32> -> vector<1x256xf32>
    %cst_35 = arith.constant dense<0.000000e+00> : vector<1x256xf32>
    %253 = tpu.matmul %248, %2, %cst_35 {dimension_numbers = #tpu.dot_dimension_numbers<[1], [0], [0], [1], [0, 0, 1, 1], [], []>} : vector<1x64xf32>, vector<64x256xf32>, vector<1x256xf32> -> vector<1x256xf32>
    %254 = arith.addf %252, %253 : vector<1x256xf32>
    %255 = vector.extract_strided_slice %254 {offsets = [0, 0], sizes = [1, 128], strides = [1, 1]} : vector<1x256xf32> to vector<1x128xf32>
    %256 = vector.extract_strided_slice %249 {offsets = [0, 0], sizes = [1, 32], strides = [1, 1]} : vector<1x64xf32> to vector<1x32xf32>
    %257 = vector.extract_strided_slice %255 {offsets = [0, 0], sizes = [1, 32], strides = [1, 1]} : vector<1x128xf32> to vector<1x32xf32>
    %258 = arith.negf %257 : vector<1x32xf32>
    %259 = math.exp %258 : vector<1x32xf32>
    %cst_36 = arith.constant 1.000000e+00 : f32
    %260 = vector.broadcast %cst_36 : f32 to vector<1x32xf32>
    %261 = arith.addf %260, %259 : vector<1x32xf32>
    %262 = arith.divf %260, %261 : vector<1x32xf32>
    %263 = vector.extract_strided_slice %255 {offsets = [0, 32], sizes = [1, 32], strides = [1, 1]} : vector<1x128xf32> to vector<1x32xf32>
    %264 = arith.negf %263 : vector<1x32xf32>
    %265 = math.exp %264 : vector<1x32xf32>
    %cst_37 = arith.constant 1.000000e+00 : f32
    %266 = vector.broadcast %cst_37 : f32 to vector<1x32xf32>
    %267 = arith.addf %266, %265 : vector<1x32xf32>
    %268 = arith.divf %266, %267 : vector<1x32xf32>
    %269 = vector.extract_strided_slice %255 {offsets = [0, 64], sizes = [1, 32], strides = [1, 1]} : vector<1x128xf32> to vector<1x32xf32>
    %270 = math.tanh %269 : vector<1x32xf32>
    %271 = vector.extract_strided_slice %255 {offsets = [0, 96], sizes = [1, 32], strides = [1, 1]} : vector<1x128xf32> to vector<1x32xf32>
    %272 = arith.negf %271 : vector<1x32xf32>
    %273 = math.exp %272 : vector<1x32xf32>
    %cst_38 = arith.constant 1.000000e+00 : f32
    %274 = vector.broadcast %cst_38 : f32 to vector<1x32xf32>
    %275 = arith.addf %274, %273 : vector<1x32xf32>
    %276 = arith.divf %274, %275 : vector<1x32xf32>
    %277 = arith.mulf %268, %256 : vector<1x32xf32>
    %278 = arith.mulf %262, %270 : vector<1x32xf32>
    %279 = arith.addf %277, %278 : vector<1x32xf32>
    %280 = math.tanh %279 : vector<1x32xf32>
    %281 = arith.mulf %276, %280 : vector<1x32xf32>
    %282 = vector.extract_strided_slice %254 {offsets = [0, 128], sizes = [1, 128], strides = [1, 1]} : vector<1x256xf32> to vector<1x128xf32>
    %283 = vector.extract_strided_slice %249 {offsets = [0, 32], sizes = [1, 32], strides = [1, 1]} : vector<1x64xf32> to vector<1x32xf32>
    %284 = vector.extract_strided_slice %282 {offsets = [0, 0], sizes = [1, 32], strides = [1, 1]} : vector<1x128xf32> to vector<1x32xf32>
    %285 = arith.negf %284 : vector<1x32xf32>
    %286 = math.exp %285 : vector<1x32xf32>
    %cst_39 = arith.constant 1.000000e+00 : f32
    %287 = vector.broadcast %cst_39 : f32 to vector<1x32xf32>
    %288 = arith.addf %287, %286 : vector<1x32xf32>
    %289 = arith.divf %287, %288 : vector<1x32xf32>
    %290 = vector.extract_strided_slice %282 {offsets = [0, 32], sizes = [1, 32], strides = [1, 1]} : vector<1x128xf32> to vector<1x32xf32>
    %291 = arith.negf %290 : vector<1x32xf32>
    %292 = math.exp %291 : vector<1x32xf32>
    %cst_40 = arith.constant 1.000000e+00 : f32
    %293 = vector.broadcast %cst_40 : f32 to vector<1x32xf32>
    %294 = arith.addf %293, %292 : vector<1x32xf32>
    %295 = arith.divf %293, %294 : vector<1x32xf32>
    %296 = vector.extract_strided_slice %282 {offsets = [0, 64], sizes = [1, 32], strides = [1, 1]} : vector<1x128xf32> to vector<1x32xf32>
    %297 = math.tanh %296 : vector<1x32xf32>
    %298 = vector.extract_strided_slice %282 {offsets = [0, 96], sizes = [1, 32], strides = [1, 1]} : vector<1x128xf32> to vector<1x32xf32>
    %299 = arith.negf %298 : vector<1x32xf32>
    %300 = math.exp %299 : vector<1x32xf32>
    %cst_41 = arith.constant 1.000000e+00 : f32
    %301 = vector.broadcast %cst_41 : f32 to vector<1x32xf32>
    %302 = arith.addf %301, %300 : vector<1x32xf32>
    %303 = arith.divf %301, %302 : vector<1x32xf32>
    %304 = arith.mulf %295, %283 : vector<1x32xf32>
    %305 = arith.mulf %289, %297 : vector<1x32xf32>
    %306 = arith.addf %304, %305 : vector<1x32xf32>
    %307 = math.tanh %306 : vector<1x32xf32>
    %308 = arith.mulf %303, %307 : vector<1x32xf32>
    %309 = tpu.concatenate %281, %308 in 1 : vector<1x32xf32>, vector<1x32xf32> -> vector<1x64xf32>
    %310 = tpu.concatenate %279, %306 in 1 : vector<1x32xf32>, vector<1x32xf32> -> vector<1x64xf32>
    %311 = vector.extract_strided_slice %3 {offsets = [5, 0], sizes = [1, 128], strides = [1, 1]} : vector<8x256xf32> to vector<1x128xf32>
    %312 = vector.extract_strided_slice %3 {offsets = [2, 128], sizes = [1, 128], strides = [1, 1]} : vector<8x256xf32> to vector<1x128xf32>
    %313 = tpu.concatenate %311, %312 in 1 : vector<1x128xf32>, vector<1x128xf32> -> vector<1x256xf32>
    %cst_42 = arith.constant dense<0.000000e+00> : vector<1x256xf32>
    %314 = tpu.matmul %309, %2, %cst_42 {dimension_numbers = #tpu.dot_dimension_numbers<[1], [0], [0], [1], [0, 0, 1, 1], [], []>} : vector<1x64xf32>, vector<64x256xf32>, vector<1x256xf32> -> vector<1x256xf32>
    %315 = arith.addf %313, %314 : vector<1x256xf32>
    %316 = vector.extract_strided_slice %315 {offsets = [0, 0], sizes = [1, 128], strides = [1, 1]} : vector<1x256xf32> to vector<1x128xf32>
    %317 = vector.extract_strided_slice %310 {offsets = [0, 0], sizes = [1, 32], strides = [1, 1]} : vector<1x64xf32> to vector<1x32xf32>
    %318 = vector.extract_strided_slice %316 {offsets = [0, 0], sizes = [1, 32], strides = [1, 1]} : vector<1x128xf32> to vector<1x32xf32>
    %319 = arith.negf %318 : vector<1x32xf32>
    %320 = math.exp %319 : vector<1x32xf32>
    %cst_43 = arith.constant 1.000000e+00 : f32
    %321 = vector.broadcast %cst_43 : f32 to vector<1x32xf32>
    %322 = arith.addf %321, %320 : vector<1x32xf32>
    %323 = arith.divf %321, %322 : vector<1x32xf32>
    %324 = vector.extract_strided_slice %316 {offsets = [0, 32], sizes = [1, 32], strides = [1, 1]} : vector<1x128xf32> to vector<1x32xf32>
    %325 = arith.negf %324 : vector<1x32xf32>
    %326 = math.exp %325 : vector<1x32xf32>
    %cst_44 = arith.constant 1.000000e+00 : f32
    %327 = vector.broadcast %cst_44 : f32 to vector<1x32xf32>
    %328 = arith.addf %327, %326 : vector<1x32xf32>
    %329 = arith.divf %327, %328 : vector<1x32xf32>
    %330 = vector.extract_strided_slice %316 {offsets = [0, 64], sizes = [1, 32], strides = [1, 1]} : vector<1x128xf32> to vector<1x32xf32>
    %331 = math.tanh %330 : vector<1x32xf32>
    %332 = vector.extract_strided_slice %316 {offsets = [0, 96], sizes = [1, 32], strides = [1, 1]} : vector<1x128xf32> to vector<1x32xf32>
    %333 = arith.negf %332 : vector<1x32xf32>
    %334 = math.exp %333 : vector<1x32xf32>
    %cst_45 = arith.constant 1.000000e+00 : f32
    %335 = vector.broadcast %cst_45 : f32 to vector<1x32xf32>
    %336 = arith.addf %335, %334 : vector<1x32xf32>
    %337 = arith.divf %335, %336 : vector<1x32xf32>
    %338 = arith.mulf %329, %317 : vector<1x32xf32>
    %339 = arith.mulf %323, %331 : vector<1x32xf32>
    %340 = arith.addf %338, %339 : vector<1x32xf32>
    %341 = math.tanh %340 : vector<1x32xf32>
    %342 = arith.mulf %337, %341 : vector<1x32xf32>
    %343 = vector.extract_strided_slice %315 {offsets = [0, 128], sizes = [1, 128], strides = [1, 1]} : vector<1x256xf32> to vector<1x128xf32>
    %344 = vector.extract_strided_slice %310 {offsets = [0, 32], sizes = [1, 32], strides = [1, 1]} : vector<1x64xf32> to vector<1x32xf32>
    %345 = vector.extract_strided_slice %343 {offsets = [0, 0], sizes = [1, 32], strides = [1, 1]} : vector<1x128xf32> to vector<1x32xf32>
    %346 = arith.negf %345 : vector<1x32xf32>
    %347 = math.exp %346 : vector<1x32xf32>
    %cst_46 = arith.constant 1.000000e+00 : f32
    %348 = vector.broadcast %cst_46 : f32 to vector<1x32xf32>
    %349 = arith.addf %348, %347 : vector<1x32xf32>
    %350 = arith.divf %348, %349 : vector<1x32xf32>
    %351 = vector.extract_strided_slice %343 {offsets = [0, 32], sizes = [1, 32], strides = [1, 1]} : vector<1x128xf32> to vector<1x32xf32>
    %352 = arith.negf %351 : vector<1x32xf32>
    %353 = math.exp %352 : vector<1x32xf32>
    %cst_47 = arith.constant 1.000000e+00 : f32
    %354 = vector.broadcast %cst_47 : f32 to vector<1x32xf32>
    %355 = arith.addf %354, %353 : vector<1x32xf32>
    %356 = arith.divf %354, %355 : vector<1x32xf32>
    %357 = vector.extract_strided_slice %343 {offsets = [0, 64], sizes = [1, 32], strides = [1, 1]} : vector<1x128xf32> to vector<1x32xf32>
    %358 = math.tanh %357 : vector<1x32xf32>
    %359 = vector.extract_strided_slice %343 {offsets = [0, 96], sizes = [1, 32], strides = [1, 1]} : vector<1x128xf32> to vector<1x32xf32>
    %360 = arith.negf %359 : vector<1x32xf32>
    %361 = math.exp %360 : vector<1x32xf32>
    %cst_48 = arith.constant 1.000000e+00 : f32
    %362 = vector.broadcast %cst_48 : f32 to vector<1x32xf32>
    %363 = arith.addf %362, %361 : vector<1x32xf32>
    %364 = arith.divf %362, %363 : vector<1x32xf32>
    %365 = arith.mulf %356, %344 : vector<1x32xf32>
    %366 = arith.mulf %350, %358 : vector<1x32xf32>
    %367 = arith.addf %365, %366 : vector<1x32xf32>
    %368 = math.tanh %367 : vector<1x32xf32>
    %369 = arith.mulf %364, %368 : vector<1x32xf32>
    %370 = tpu.concatenate %342, %369 in 1 : vector<1x32xf32>, vector<1x32xf32> -> vector<1x64xf32>
    %371 = tpu.concatenate %340, %367 in 1 : vector<1x32xf32>, vector<1x32xf32> -> vector<1x64xf32>
    %372 = vector.extract_strided_slice %3 {offsets = [6, 0], sizes = [1, 128], strides = [1, 1]} : vector<8x256xf32> to vector<1x128xf32>
    %373 = vector.extract_strided_slice %3 {offsets = [1, 128], sizes = [1, 128], strides = [1, 1]} : vector<8x256xf32> to vector<1x128xf32>
    %374 = tpu.concatenate %372, %373 in 1 : vector<1x128xf32>, vector<1x128xf32> -> vector<1x256xf32>
    %cst_49 = arith.constant dense<0.000000e+00> : vector<1x256xf32>
    %375 = tpu.matmul %370, %2, %cst_49 {dimension_numbers = #tpu.dot_dimension_numbers<[1], [0], [0], [1], [0, 0, 1, 1], [], []>} : vector<1x64xf32>, vector<64x256xf32>, vector<1x256xf32> -> vector<1x256xf32>
    %376 = arith.addf %374, %375 : vector<1x256xf32>
    %377 = vector.extract_strided_slice %376 {offsets = [0, 0], sizes = [1, 128], strides = [1, 1]} : vector<1x256xf32> to vector<1x128xf32>
    %378 = vector.extract_strided_slice %371 {offsets = [0, 0], sizes = [1, 32], strides = [1, 1]} : vector<1x64xf32> to vector<1x32xf32>
    %379 = vector.extract_strided_slice %377 {offsets = [0, 0], sizes = [1, 32], strides = [1, 1]} : vector<1x128xf32> to vector<1x32xf32>
    %380 = arith.negf %379 : vector<1x32xf32>
    %381 = math.exp %380 : vector<1x32xf32>
    %cst_50 = arith.constant 1.000000e+00 : f32
    %382 = vector.broadcast %cst_50 : f32 to vector<1x32xf32>
    %383 = arith.addf %382, %381 : vector<1x32xf32>
    %384 = arith.divf %382, %383 : vector<1x32xf32>
    %385 = vector.extract_strided_slice %377 {offsets = [0, 32], sizes = [1, 32], strides = [1, 1]} : vector<1x128xf32> to vector<1x32xf32>
    %386 = arith.negf %385 : vector<1x32xf32>
    %387 = math.exp %386 : vector<1x32xf32>
    %cst_51 = arith.constant 1.000000e+00 : f32
    %388 = vector.broadcast %cst_51 : f32 to vector<1x32xf32>
    %389 = arith.addf %388, %387 : vector<1x32xf32>
    %390 = arith.divf %388, %389 : vector<1x32xf32>
    %391 = vector.extract_strided_slice %377 {offsets = [0, 64], sizes = [1, 32], strides = [1, 1]} : vector<1x128xf32> to vector<1x32xf32>
    %392 = math.tanh %391 : vector<1x32xf32>
    %393 = vector.extract_strided_slice %377 {offsets = [0, 96], sizes = [1, 32], strides = [1, 1]} : vector<1x128xf32> to vector<1x32xf32>
    %394 = arith.negf %393 : vector<1x32xf32>
    %395 = math.exp %394 : vector<1x32xf32>
    %cst_52 = arith.constant 1.000000e+00 : f32
    %396 = vector.broadcast %cst_52 : f32 to vector<1x32xf32>
    %397 = arith.addf %396, %395 : vector<1x32xf32>
    %398 = arith.divf %396, %397 : vector<1x32xf32>
    %399 = arith.mulf %390, %378 : vector<1x32xf32>
    %400 = arith.mulf %384, %392 : vector<1x32xf32>
    %401 = arith.addf %399, %400 : vector<1x32xf32>
    %402 = math.tanh %401 : vector<1x32xf32>
    %403 = arith.mulf %398, %402 : vector<1x32xf32>
    %404 = vector.extract_strided_slice %376 {offsets = [0, 128], sizes = [1, 128], strides = [1, 1]} : vector<1x256xf32> to vector<1x128xf32>
    %405 = vector.extract_strided_slice %371 {offsets = [0, 32], sizes = [1, 32], strides = [1, 1]} : vector<1x64xf32> to vector<1x32xf32>
    %406 = vector.extract_strided_slice %404 {offsets = [0, 0], sizes = [1, 32], strides = [1, 1]} : vector<1x128xf32> to vector<1x32xf32>
    %407 = arith.negf %406 : vector<1x32xf32>
    %408 = math.exp %407 : vector<1x32xf32>
    %cst_53 = arith.constant 1.000000e+00 : f32
    %409 = vector.broadcast %cst_53 : f32 to vector<1x32xf32>
    %410 = arith.addf %409, %408 : vector<1x32xf32>
    %411 = arith.divf %409, %410 : vector<1x32xf32>
    %412 = vector.extract_strided_slice %404 {offsets = [0, 32], sizes = [1, 32], strides = [1, 1]} : vector<1x128xf32> to vector<1x32xf32>
    %413 = arith.negf %412 : vector<1x32xf32>
    %414 = math.exp %413 : vector<1x32xf32>
    %cst_54 = arith.constant 1.000000e+00 : f32
    %415 = vector.broadcast %cst_54 : f32 to vector<1x32xf32>
    %416 = arith.addf %415, %414 : vector<1x32xf32>
    %417 = arith.divf %415, %416 : vector<1x32xf32>
    %418 = vector.extract_strided_slice %404 {offsets = [0, 64], sizes = [1, 32], strides = [1, 1]} : vector<1x128xf32> to vector<1x32xf32>
    %419 = math.tanh %418 : vector<1x32xf32>
    %420 = vector.extract_strided_slice %404 {offsets = [0, 96], sizes = [1, 32], strides = [1, 1]} : vector<1x128xf32> to vector<1x32xf32>
    %421 = arith.negf %420 : vector<1x32xf32>
    %422 = math.exp %421 : vector<1x32xf32>
    %cst_55 = arith.constant 1.000000e+00 : f32
    %423 = vector.broadcast %cst_55 : f32 to vector<1x32xf32>
    %424 = arith.addf %423, %422 : vector<1x32xf32>
    %425 = arith.divf %423, %424 : vector<1x32xf32>
    %426 = arith.mulf %417, %405 : vector<1x32xf32>
    %427 = arith.mulf %411, %419 : vector<1x32xf32>
    %428 = arith.addf %426, %427 : vector<1x32xf32>
    %429 = math.tanh %428 : vector<1x32xf32>
    %430 = arith.mulf %425, %429 : vector<1x32xf32>
    %431 = tpu.concatenate %403, %430 in 1 : vector<1x32xf32>, vector<1x32xf32> -> vector<1x64xf32>
    %432 = tpu.concatenate %401, %428 in 1 : vector<1x32xf32>, vector<1x32xf32> -> vector<1x64xf32>
    %433 = vector.extract_strided_slice %3 {offsets = [7, 0], sizes = [1, 128], strides = [1, 1]} : vector<8x256xf32> to vector<1x128xf32>
    %434 = vector.extract_strided_slice %3 {offsets = [0, 128], sizes = [1, 128], strides = [1, 1]} : vector<8x256xf32> to vector<1x128xf32>
    %435 = tpu.concatenate %433, %434 in 1 : vector<1x128xf32>, vector<1x128xf32> -> vector<1x256xf32>
    %cst_56 = arith.constant dense<0.000000e+00> : vector<1x256xf32>
    %436 = tpu.matmul %431, %2, %cst_56 {dimension_numbers = #tpu.dot_dimension_numbers<[1], [0], [0], [1], [0, 0, 1, 1], [], []>} : vector<1x64xf32>, vector<64x256xf32>, vector<1x256xf32> -> vector<1x256xf32>
    %437 = arith.addf %435, %436 : vector<1x256xf32>
    %438 = vector.extract_strided_slice %437 {offsets = [0, 0], sizes = [1, 128], strides = [1, 1]} : vector<1x256xf32> to vector<1x128xf32>
    %439 = vector.extract_strided_slice %432 {offsets = [0, 0], sizes = [1, 32], strides = [1, 1]} : vector<1x64xf32> to vector<1x32xf32>
    %440 = vector.extract_strided_slice %438 {offsets = [0, 0], sizes = [1, 32], strides = [1, 1]} : vector<1x128xf32> to vector<1x32xf32>
    %441 = arith.negf %440 : vector<1x32xf32>
    %442 = math.exp %441 : vector<1x32xf32>
    %cst_57 = arith.constant 1.000000e+00 : f32
    %443 = vector.broadcast %cst_57 : f32 to vector<1x32xf32>
    %444 = arith.addf %443, %442 : vector<1x32xf32>
    %445 = arith.divf %443, %444 : vector<1x32xf32>
    %446 = vector.extract_strided_slice %438 {offsets = [0, 32], sizes = [1, 32], strides = [1, 1]} : vector<1x128xf32> to vector<1x32xf32>
    %447 = arith.negf %446 : vector<1x32xf32>
    %448 = math.exp %447 : vector<1x32xf32>
    %cst_58 = arith.constant 1.000000e+00 : f32
    %449 = vector.broadcast %cst_58 : f32 to vector<1x32xf32>
    %450 = arith.addf %449, %448 : vector<1x32xf32>
    %451 = arith.divf %449, %450 : vector<1x32xf32>
    %452 = vector.extract_strided_slice %438 {offsets = [0, 64], sizes = [1, 32], strides = [1, 1]} : vector<1x128xf32> to vector<1x32xf32>
    %453 = math.tanh %452 : vector<1x32xf32>
    %454 = vector.extract_strided_slice %438 {offsets = [0, 96], sizes = [1, 32], strides = [1, 1]} : vector<1x128xf32> to vector<1x32xf32>
    %455 = arith.negf %454 : vector<1x32xf32>
    %456 = math.exp %455 : vector<1x32xf32>
    %cst_59 = arith.constant 1.000000e+00 : f32
    %457 = vector.broadcast %cst_59 : f32 to vector<1x32xf32>
    %458 = arith.addf %457, %456 : vector<1x32xf32>
    %459 = arith.divf %457, %458 : vector<1x32xf32>
    %460 = arith.mulf %451, %439 : vector<1x32xf32>
    %461 = arith.mulf %445, %453 : vector<1x32xf32>
    %462 = arith.addf %460, %461 : vector<1x32xf32>
    %463 = math.tanh %462 : vector<1x32xf32>
    %464 = arith.mulf %459, %463 : vector<1x32xf32>
    %465 = vector.extract_strided_slice %437 {offsets = [0, 128], sizes = [1, 128], strides = [1, 1]} : vector<1x256xf32> to vector<1x128xf32>
    %466 = vector.extract_strided_slice %432 {offsets = [0, 32], sizes = [1, 32], strides = [1, 1]} : vector<1x64xf32> to vector<1x32xf32>
    %467 = vector.extract_strided_slice %465 {offsets = [0, 0], sizes = [1, 32], strides = [1, 1]} : vector<1x128xf32> to vector<1x32xf32>
    %468 = arith.negf %467 : vector<1x32xf32>
    %469 = math.exp %468 : vector<1x32xf32>
    %cst_60 = arith.constant 1.000000e+00 : f32
    %470 = vector.broadcast %cst_60 : f32 to vector<1x32xf32>
    %471 = arith.addf %470, %469 : vector<1x32xf32>
    %472 = arith.divf %470, %471 : vector<1x32xf32>
    %473 = vector.extract_strided_slice %465 {offsets = [0, 32], sizes = [1, 32], strides = [1, 1]} : vector<1x128xf32> to vector<1x32xf32>
    %474 = arith.negf %473 : vector<1x32xf32>
    %475 = math.exp %474 : vector<1x32xf32>
    %cst_61 = arith.constant 1.000000e+00 : f32
    %476 = vector.broadcast %cst_61 : f32 to vector<1x32xf32>
    %477 = arith.addf %476, %475 : vector<1x32xf32>
    %478 = arith.divf %476, %477 : vector<1x32xf32>
    %479 = vector.extract_strided_slice %465 {offsets = [0, 64], sizes = [1, 32], strides = [1, 1]} : vector<1x128xf32> to vector<1x32xf32>
    %480 = math.tanh %479 : vector<1x32xf32>
    %481 = vector.extract_strided_slice %465 {offsets = [0, 96], sizes = [1, 32], strides = [1, 1]} : vector<1x128xf32> to vector<1x32xf32>
    %482 = arith.negf %481 : vector<1x32xf32>
    %483 = math.exp %482 : vector<1x32xf32>
    %cst_62 = arith.constant 1.000000e+00 : f32
    %484 = vector.broadcast %cst_62 : f32 to vector<1x32xf32>
    %485 = arith.addf %484, %483 : vector<1x32xf32>
    %486 = arith.divf %484, %485 : vector<1x32xf32>
    %487 = arith.mulf %478, %466 : vector<1x32xf32>
    %488 = arith.mulf %472, %480 : vector<1x32xf32>
    %489 = arith.addf %487, %488 : vector<1x32xf32>
    %490 = math.tanh %489 : vector<1x32xf32>
    %491 = arith.mulf %486, %490 : vector<1x32xf32>
    %492 = tpu.concatenate %37, %98, %159, %220, %281, %342, %403, %464 in 0 : vector<1x32xf32>, vector<1x32xf32>, vector<1x32xf32>, vector<1x32xf32>, vector<1x32xf32>, vector<1x32xf32>, vector<1x32xf32>, vector<1x32xf32> -> vector<8x32xf32>
    %493 = tpu.concatenate %491, %430, %369, %308, %247, %186, %125, %64 in 0 : vector<1x32xf32>, vector<1x32xf32>, vector<1x32xf32>, vector<1x32xf32>, vector<1x32xf32>, vector<1x32xf32>, vector<1x32xf32>, vector<1x32xf32> -> vector<8x32xf32>
    %c0_63 = arith.constant 0 : index
    %c0_64 = arith.constant 0 : index
    %494 = vector.load %arg1[%c0_63, %c0_64] : memref<6x32xf32, #tpu.memory_space<vmem>>, vector<6x32xf32>
    %c0_65 = arith.constant 0 : index
    %c0_66 = arith.constant 0 : index
    %495 = vector.load %arg4[%c0_65, %c0_66] : memref<32x256xf32, #tpu.memory_space<vmem>>, vector<32x256xf32>
    %c0_67 = arith.constant 0 : index
    %c0_68 = arith.constant 0 : index
    %496 = vector.load %arg5[%c0_67, %c0_68] : memref<64x256xf32, #tpu.memory_space<vmem>>, vector<64x256xf32>
    %cst_69 = arith.constant dense<0.000000e+00> : vector<6x256xf32>
    %497 = tpu.matmul %494, %495, %cst_69 {dimension_numbers = #tpu.dot_dimension_numbers<[1], [0], [0], [1], [0, 0, 1, 1], [], []>} : vector<6x32xf32>, vector<32x256xf32>, vector<6x256xf32> -> vector<6x256xf32>
    %cst_70 = arith.constant 0.000000e+00 : f32
    %498 = vector.broadcast %cst_70 : f32 to vector<1x64xf32>
    %cst_71 = arith.constant 0.000000e+00 : f32
    %499 = vector.broadcast %cst_71 : f32 to vector<1x64xf32>
    %500 = vector.extract_strided_slice %497 {offsets = [0, 0], sizes = [1, 128], strides = [1, 1]} : vector<6x256xf32> to vector<1x128xf32>
    %501 = vector.extract_strided_slice %497 {offsets = [5, 128], sizes = [1, 128], strides = [1, 1]} : vector<6x256xf32> to vector<1x128xf32>
    %502 = tpu.concatenate %500, %501 in 1 : vector<1x128xf32>, vector<1x128xf32> -> vector<1x256xf32>
    %cst_72 = arith.constant dense<0.000000e+00> : vector<1x256xf32>
    %503 = tpu.matmul %498, %496, %cst_72 {dimension_numbers = #tpu.dot_dimension_numbers<[1], [0], [0], [1], [0, 0, 1, 1], [], []>} : vector<1x64xf32>, vector<64x256xf32>, vector<1x256xf32> -> vector<1x256xf32>
    %504 = arith.addf %502, %503 : vector<1x256xf32>
    %505 = vector.extract_strided_slice %504 {offsets = [0, 0], sizes = [1, 128], strides = [1, 1]} : vector<1x256xf32> to vector<1x128xf32>
    %506 = vector.extract_strided_slice %499 {offsets = [0, 0], sizes = [1, 32], strides = [1, 1]} : vector<1x64xf32> to vector<1x32xf32>
    %507 = vector.extract_strided_slice %505 {offsets = [0, 0], sizes = [1, 32], strides = [1, 1]} : vector<1x128xf32> to vector<1x32xf32>
    %508 = arith.negf %507 : vector<1x32xf32>
    %509 = math.exp %508 : vector<1x32xf32>
    %cst_73 = arith.constant 1.000000e+00 : f32
    %510 = vector.broadcast %cst_73 : f32 to vector<1x32xf32>
    %511 = arith.addf %510, %509 : vector<1x32xf32>
    %512 = arith.divf %510, %511 : vector<1x32xf32>
    %513 = vector.extract_strided_slice %505 {offsets = [0, 32], sizes = [1, 32], strides = [1, 1]} : vector<1x128xf32> to vector<1x32xf32>
    %514 = arith.negf %513 : vector<1x32xf32>
    %515 = math.exp %514 : vector<1x32xf32>
    %cst_74 = arith.constant 1.000000e+00 : f32
    %516 = vector.broadcast %cst_74 : f32 to vector<1x32xf32>
    %517 = arith.addf %516, %515 : vector<1x32xf32>
    %518 = arith.divf %516, %517 : vector<1x32xf32>
    %519 = vector.extract_strided_slice %505 {offsets = [0, 64], sizes = [1, 32], strides = [1, 1]} : vector<1x128xf32> to vector<1x32xf32>
    %520 = math.tanh %519 : vector<1x32xf32>
    %521 = vector.extract_strided_slice %505 {offsets = [0, 96], sizes = [1, 32], strides = [1, 1]} : vector<1x128xf32> to vector<1x32xf32>
    %522 = arith.negf %521 : vector<1x32xf32>
    %523 = math.exp %522 : vector<1x32xf32>
    %cst_75 = arith.constant 1.000000e+00 : f32
    %524 = vector.broadcast %cst_75 : f32 to vector<1x32xf32>
    %525 = arith.addf %524, %523 : vector<1x32xf32>
    %526 = arith.divf %524, %525 : vector<1x32xf32>
    %527 = arith.mulf %518, %506 : vector<1x32xf32>
    %528 = arith.mulf %512, %520 : vector<1x32xf32>
    %529 = arith.addf %527, %528 : vector<1x32xf32>
    %530 = math.tanh %529 : vector<1x32xf32>
    %531 = arith.mulf %526, %530 : vector<1x32xf32>
    %532 = vector.extract_strided_slice %504 {offsets = [0, 128], sizes = [1, 128], strides = [1, 1]} : vector<1x256xf32> to vector<1x128xf32>
    %533 = vector.extract_strided_slice %499 {offsets = [0, 32], sizes = [1, 32], strides = [1, 1]} : vector<1x64xf32> to vector<1x32xf32>
    %534 = vector.extract_strided_slice %532 {offsets = [0, 0], sizes = [1, 32], strides = [1, 1]} : vector<1x128xf32> to vector<1x32xf32>
    %535 = arith.negf %534 : vector<1x32xf32>
    %536 = math.exp %535 : vector<1x32xf32>
    %cst_76 = arith.constant 1.000000e+00 : f32
    %537 = vector.broadcast %cst_76 : f32 to vector<1x32xf32>
    %538 = arith.addf %537, %536 : vector<1x32xf32>
    %539 = arith.divf %537, %538 : vector<1x32xf32>
    %540 = vector.extract_strided_slice %532 {offsets = [0, 32], sizes = [1, 32], strides = [1, 1]} : vector<1x128xf32> to vector<1x32xf32>
    %541 = arith.negf %540 : vector<1x32xf32>
    %542 = math.exp %541 : vector<1x32xf32>
    %cst_77 = arith.constant 1.000000e+00 : f32
    %543 = vector.broadcast %cst_77 : f32 to vector<1x32xf32>
    %544 = arith.addf %543, %542 : vector<1x32xf32>
    %545 = arith.divf %543, %544 : vector<1x32xf32>
    %546 = vector.extract_strided_slice %532 {offsets = [0, 64], sizes = [1, 32], strides = [1, 1]} : vector<1x128xf32> to vector<1x32xf32>
    %547 = math.tanh %546 : vector<1x32xf32>
    %548 = vector.extract_strided_slice %532 {offsets = [0, 96], sizes = [1, 32], strides = [1, 1]} : vector<1x128xf32> to vector<1x32xf32>
    %549 = arith.negf %548 : vector<1x32xf32>
    %550 = math.exp %549 : vector<1x32xf32>
    %cst_78 = arith.constant 1.000000e+00 : f32
    %551 = vector.broadcast %cst_78 : f32 to vector<1x32xf32>
    %552 = arith.addf %551, %550 : vector<1x32xf32>
    %553 = arith.divf %551, %552 : vector<1x32xf32>
    %554 = arith.mulf %545, %533 : vector<1x32xf32>
    %555 = arith.mulf %539, %547 : vector<1x32xf32>
    %556 = arith.addf %554, %555 : vector<1x32xf32>
    %557 = math.tanh %556 : vector<1x32xf32>
    %558 = arith.mulf %553, %557 : vector<1x32xf32>
    %559 = tpu.concatenate %531, %558 in 1 : vector<1x32xf32>, vector<1x32xf32> -> vector<1x64xf32>
    %560 = tpu.concatenate %529, %556 in 1 : vector<1x32xf32>, vector<1x32xf32> -> vector<1x64xf32>
    %561 = vector.extract_strided_slice %497 {offsets = [1, 0], sizes = [1, 128], strides = [1, 1]} : vector<6x256xf32> to vector<1x128xf32>
    %562 = vector.extract_strided_slice %497 {offsets = [4, 128], sizes = [1, 128], strides = [1, 1]} : vector<6x256xf32> to vector<1x128xf32>
    %563 = tpu.concatenate %561, %562 in 1 : vector<1x128xf32>, vector<1x128xf32> -> vector<1x256xf32>
    %cst_79 = arith.constant dense<0.000000e+00> : vector<1x256xf32>
    %564 = tpu.matmul %559, %496, %cst_79 {dimension_numbers = #tpu.dot_dimension_numbers<[1], [0], [0], [1], [0, 0, 1, 1], [], []>} : vector<1x64xf32>, vector<64x256xf32>, vector<1x256xf32> -> vector<1x256xf32>
    %565 = arith.addf %563, %564 : vector<1x256xf32>
    %566 = vector.extract_strided_slice %565 {offsets = [0, 0], sizes = [1, 128], strides = [1, 1]} : vector<1x256xf32> to vector<1x128xf32>
    %567 = vector.extract_strided_slice %560 {offsets = [0, 0], sizes = [1, 32], strides = [1, 1]} : vector<1x64xf32> to vector<1x32xf32>
    %568 = vector.extract_strided_slice %566 {offsets = [0, 0], sizes = [1, 32], strides = [1, 1]} : vector<1x128xf32> to vector<1x32xf32>
    %569 = arith.negf %568 : vector<1x32xf32>
    %570 = math.exp %569 : vector<1x32xf32>
    %cst_80 = arith.constant 1.000000e+00 : f32
    %571 = vector.broadcast %cst_80 : f32 to vector<1x32xf32>
    %572 = arith.addf %571, %570 : vector<1x32xf32>
    %573 = arith.divf %571, %572 : vector<1x32xf32>
    %574 = vector.extract_strided_slice %566 {offsets = [0, 32], sizes = [1, 32], strides = [1, 1]} : vector<1x128xf32> to vector<1x32xf32>
    %575 = arith.negf %574 : vector<1x32xf32>
    %576 = math.exp %575 : vector<1x32xf32>
    %cst_81 = arith.constant 1.000000e+00 : f32
    %577 = vector.broadcast %cst_81 : f32 to vector<1x32xf32>
    %578 = arith.addf %577, %576 : vector<1x32xf32>
    %579 = arith.divf %577, %578 : vector<1x32xf32>
    %580 = vector.extract_strided_slice %566 {offsets = [0, 64], sizes = [1, 32], strides = [1, 1]} : vector<1x128xf32> to vector<1x32xf32>
    %581 = math.tanh %580 : vector<1x32xf32>
    %582 = vector.extract_strided_slice %566 {offsets = [0, 96], sizes = [1, 32], strides = [1, 1]} : vector<1x128xf32> to vector<1x32xf32>
    %583 = arith.negf %582 : vector<1x32xf32>
    %584 = math.exp %583 : vector<1x32xf32>
    %cst_82 = arith.constant 1.000000e+00 : f32
    %585 = vector.broadcast %cst_82 : f32 to vector<1x32xf32>
    %586 = arith.addf %585, %584 : vector<1x32xf32>
    %587 = arith.divf %585, %586 : vector<1x32xf32>
    %588 = arith.mulf %579, %567 : vector<1x32xf32>
    %589 = arith.mulf %573, %581 : vector<1x32xf32>
    %590 = arith.addf %588, %589 : vector<1x32xf32>
    %591 = math.tanh %590 : vector<1x32xf32>
    %592 = arith.mulf %587, %591 : vector<1x32xf32>
    %593 = vector.extract_strided_slice %565 {offsets = [0, 128], sizes = [1, 128], strides = [1, 1]} : vector<1x256xf32> to vector<1x128xf32>
    %594 = vector.extract_strided_slice %560 {offsets = [0, 32], sizes = [1, 32], strides = [1, 1]} : vector<1x64xf32> to vector<1x32xf32>
    %595 = vector.extract_strided_slice %593 {offsets = [0, 0], sizes = [1, 32], strides = [1, 1]} : vector<1x128xf32> to vector<1x32xf32>
    %596 = arith.negf %595 : vector<1x32xf32>
    %597 = math.exp %596 : vector<1x32xf32>
    %cst_83 = arith.constant 1.000000e+00 : f32
    %598 = vector.broadcast %cst_83 : f32 to vector<1x32xf32>
    %599 = arith.addf %598, %597 : vector<1x32xf32>
    %600 = arith.divf %598, %599 : vector<1x32xf32>
    %601 = vector.extract_strided_slice %593 {offsets = [0, 32], sizes = [1, 32], strides = [1, 1]} : vector<1x128xf32> to vector<1x32xf32>
    %602 = arith.negf %601 : vector<1x32xf32>
    %603 = math.exp %602 : vector<1x32xf32>
    %cst_84 = arith.constant 1.000000e+00 : f32
    %604 = vector.broadcast %cst_84 : f32 to vector<1x32xf32>
    %605 = arith.addf %604, %603 : vector<1x32xf32>
    %606 = arith.divf %604, %605 : vector<1x32xf32>
    %607 = vector.extract_strided_slice %593 {offsets = [0, 64], sizes = [1, 32], strides = [1, 1]} : vector<1x128xf32> to vector<1x32xf32>
    %608 = math.tanh %607 : vector<1x32xf32>
    %609 = vector.extract_strided_slice %593 {offsets = [0, 96], sizes = [1, 32], strides = [1, 1]} : vector<1x128xf32> to vector<1x32xf32>
    %610 = arith.negf %609 : vector<1x32xf32>
    %611 = math.exp %610 : vector<1x32xf32>
    %cst_85 = arith.constant 1.000000e+00 : f32
    %612 = vector.broadcast %cst_85 : f32 to vector<1x32xf32>
    %613 = arith.addf %612, %611 : vector<1x32xf32>
    %614 = arith.divf %612, %613 : vector<1x32xf32>
    %615 = arith.mulf %606, %594 : vector<1x32xf32>
    %616 = arith.mulf %600, %608 : vector<1x32xf32>
    %617 = arith.addf %615, %616 : vector<1x32xf32>
    %618 = math.tanh %617 : vector<1x32xf32>
    %619 = arith.mulf %614, %618 : vector<1x32xf32>
    %620 = tpu.concatenate %592, %619 in 1 : vector<1x32xf32>, vector<1x32xf32> -> vector<1x64xf32>
    %621 = tpu.concatenate %590, %617 in 1 : vector<1x32xf32>, vector<1x32xf32> -> vector<1x64xf32>
    %622 = vector.extract_strided_slice %497 {offsets = [2, 0], sizes = [1, 128], strides = [1, 1]} : vector<6x256xf32> to vector<1x128xf32>
    %623 = vector.extract_strided_slice %497 {offsets = [3, 128], sizes = [1, 128], strides = [1, 1]} : vector<6x256xf32> to vector<1x128xf32>
    %624 = tpu.concatenate %622, %623 in 1 : vector<1x128xf32>, vector<1x128xf32> -> vector<1x256xf32>
    %cst_86 = arith.constant dense<0.000000e+00> : vector<1x256xf32>
    %625 = tpu.matmul %620, %496, %cst_86 {dimension_numbers = #tpu.dot_dimension_numbers<[1], [0], [0], [1], [0, 0, 1, 1], [], []>} : vector<1x64xf32>, vector<64x256xf32>, vector<1x256xf32> -> vector<1x256xf32>
    %626 = arith.addf %624, %625 : vector<1x256xf32>
    %627 = vector.extract_strided_slice %626 {offsets = [0, 0], sizes = [1, 128], strides = [1, 1]} : vector<1x256xf32> to vector<1x128xf32>
    %628 = vector.extract_strided_slice %621 {offsets = [0, 0], sizes = [1, 32], strides = [1, 1]} : vector<1x64xf32> to vector<1x32xf32>
    %629 = vector.extract_strided_slice %627 {offsets = [0, 0], sizes = [1, 32], strides = [1, 1]} : vector<1x128xf32> to vector<1x32xf32>
    %630 = arith.negf %629 : vector<1x32xf32>
    %631 = math.exp %630 : vector<1x32xf32>
    %cst_87 = arith.constant 1.000000e+00 : f32
    %632 = vector.broadcast %cst_87 : f32 to vector<1x32xf32>
    %633 = arith.addf %632, %631 : vector<1x32xf32>
    %634 = arith.divf %632, %633 : vector<1x32xf32>
    %635 = vector.extract_strided_slice %627 {offsets = [0, 32], sizes = [1, 32], strides = [1, 1]} : vector<1x128xf32> to vector<1x32xf32>
    %636 = arith.negf %635 : vector<1x32xf32>
    %637 = math.exp %636 : vector<1x32xf32>
    %cst_88 = arith.constant 1.000000e+00 : f32
    %638 = vector.broadcast %cst_88 : f32 to vector<1x32xf32>
    %639 = arith.addf %638, %637 : vector<1x32xf32>
    %640 = arith.divf %638, %639 : vector<1x32xf32>
    %641 = vector.extract_strided_slice %627 {offsets = [0, 64], sizes = [1, 32], strides = [1, 1]} : vector<1x128xf32> to vector<1x32xf32>
    %642 = math.tanh %641 : vector<1x32xf32>
    %643 = vector.extract_strided_slice %627 {offsets = [0, 96], sizes = [1, 32], strides = [1, 1]} : vector<1x128xf32> to vector<1x32xf32>
    %644 = arith.negf %643 : vector<1x32xf32>
    %645 = math.exp %644 : vector<1x32xf32>
    %cst_89 = arith.constant 1.000000e+00 : f32
    %646 = vector.broadcast %cst_89 : f32 to vector<1x32xf32>
    %647 = arith.addf %646, %645 : vector<1x32xf32>
    %648 = arith.divf %646, %647 : vector<1x32xf32>
    %649 = arith.mulf %640, %628 : vector<1x32xf32>
    %650 = arith.mulf %634, %642 : vector<1x32xf32>
    %651 = arith.addf %649, %650 : vector<1x32xf32>
    %652 = math.tanh %651 : vector<1x32xf32>
    %653 = arith.mulf %648, %652 : vector<1x32xf32>
    %654 = vector.extract_strided_slice %626 {offsets = [0, 128], sizes = [1, 128], strides = [1, 1]} : vector<1x256xf32> to vector<1x128xf32>
    %655 = vector.extract_strided_slice %621 {offsets = [0, 32], sizes = [1, 32], strides = [1, 1]} : vector<1x64xf32> to vector<1x32xf32>
    %656 = vector.extract_strided_slice %654 {offsets = [0, 0], sizes = [1, 32], strides = [1, 1]} : vector<1x128xf32> to vector<1x32xf32>
    %657 = arith.negf %656 : vector<1x32xf32>
    %658 = math.exp %657 : vector<1x32xf32>
    %cst_90 = arith.constant 1.000000e+00 : f32
    %659 = vector.broadcast %cst_90 : f32 to vector<1x32xf32>
    %660 = arith.addf %659, %658 : vector<1x32xf32>
    %661 = arith.divf %659, %660 : vector<1x32xf32>
    %662 = vector.extract_strided_slice %654 {offsets = [0, 32], sizes = [1, 32], strides = [1, 1]} : vector<1x128xf32> to vector<1x32xf32>
    %663 = arith.negf %662 : vector<1x32xf32>
    %664 = math.exp %663 : vector<1x32xf32>
    %cst_91 = arith.constant 1.000000e+00 : f32
    %665 = vector.broadcast %cst_91 : f32 to vector<1x32xf32>
    %666 = arith.addf %665, %664 : vector<1x32xf32>
    %667 = arith.divf %665, %666 : vector<1x32xf32>
    %668 = vector.extract_strided_slice %654 {offsets = [0, 64], sizes = [1, 32], strides = [1, 1]} : vector<1x128xf32> to vector<1x32xf32>
    %669 = math.tanh %668 : vector<1x32xf32>
    %670 = vector.extract_strided_slice %654 {offsets = [0, 96], sizes = [1, 32], strides = [1, 1]} : vector<1x128xf32> to vector<1x32xf32>
    %671 = arith.negf %670 : vector<1x32xf32>
    %672 = math.exp %671 : vector<1x32xf32>
    %cst_92 = arith.constant 1.000000e+00 : f32
    %673 = vector.broadcast %cst_92 : f32 to vector<1x32xf32>
    %674 = arith.addf %673, %672 : vector<1x32xf32>
    %675 = arith.divf %673, %674 : vector<1x32xf32>
    %676 = arith.mulf %667, %655 : vector<1x32xf32>
    %677 = arith.mulf %661, %669 : vector<1x32xf32>
    %678 = arith.addf %676, %677 : vector<1x32xf32>
    %679 = math.tanh %678 : vector<1x32xf32>
    %680 = arith.mulf %675, %679 : vector<1x32xf32>
    %681 = tpu.concatenate %653, %680 in 1 : vector<1x32xf32>, vector<1x32xf32> -> vector<1x64xf32>
    %682 = tpu.concatenate %651, %678 in 1 : vector<1x32xf32>, vector<1x32xf32> -> vector<1x64xf32>
    %683 = vector.extract_strided_slice %497 {offsets = [3, 0], sizes = [1, 128], strides = [1, 1]} : vector<6x256xf32> to vector<1x128xf32>
    %684 = vector.extract_strided_slice %497 {offsets = [2, 128], sizes = [1, 128], strides = [1, 1]} : vector<6x256xf32> to vector<1x128xf32>
    %685 = tpu.concatenate %683, %684 in 1 : vector<1x128xf32>, vector<1x128xf32> -> vector<1x256xf32>
    %cst_93 = arith.constant dense<0.000000e+00> : vector<1x256xf32>
    %686 = tpu.matmul %681, %496, %cst_93 {dimension_numbers = #tpu.dot_dimension_numbers<[1], [0], [0], [1], [0, 0, 1, 1], [], []>} : vector<1x64xf32>, vector<64x256xf32>, vector<1x256xf32> -> vector<1x256xf32>
    %687 = arith.addf %685, %686 : vector<1x256xf32>
    %688 = vector.extract_strided_slice %687 {offsets = [0, 0], sizes = [1, 128], strides = [1, 1]} : vector<1x256xf32> to vector<1x128xf32>
    %689 = vector.extract_strided_slice %682 {offsets = [0, 0], sizes = [1, 32], strides = [1, 1]} : vector<1x64xf32> to vector<1x32xf32>
    %690 = vector.extract_strided_slice %688 {offsets = [0, 0], sizes = [1, 32], strides = [1, 1]} : vector<1x128xf32> to vector<1x32xf32>
    %691 = arith.negf %690 : vector<1x32xf32>
    %692 = math.exp %691 : vector<1x32xf32>
    %cst_94 = arith.constant 1.000000e+00 : f32
    %693 = vector.broadcast %cst_94 : f32 to vector<1x32xf32>
    %694 = arith.addf %693, %692 : vector<1x32xf32>
    %695 = arith.divf %693, %694 : vector<1x32xf32>
    %696 = vector.extract_strided_slice %688 {offsets = [0, 32], sizes = [1, 32], strides = [1, 1]} : vector<1x128xf32> to vector<1x32xf32>
    %697 = arith.negf %696 : vector<1x32xf32>
    %698 = math.exp %697 : vector<1x32xf32>
    %cst_95 = arith.constant 1.000000e+00 : f32
    %699 = vector.broadcast %cst_95 : f32 to vector<1x32xf32>
    %700 = arith.addf %699, %698 : vector<1x32xf32>
    %701 = arith.divf %699, %700 : vector<1x32xf32>
    %702 = vector.extract_strided_slice %688 {offsets = [0, 64], sizes = [1, 32], strides = [1, 1]} : vector<1x128xf32> to vector<1x32xf32>
    %703 = math.tanh %702 : vector<1x32xf32>
    %704 = vector.extract_strided_slice %688 {offsets = [0, 96], sizes = [1, 32], strides = [1, 1]} : vector<1x128xf32> to vector<1x32xf32>
    %705 = arith.negf %704 : vector<1x32xf32>
    %706 = math.exp %705 : vector<1x32xf32>
    %cst_96 = arith.constant 1.000000e+00 : f32
    %707 = vector.broadcast %cst_96 : f32 to vector<1x32xf32>
    %708 = arith.addf %707, %706 : vector<1x32xf32>
    %709 = arith.divf %707, %708 : vector<1x32xf32>
    %710 = arith.mulf %701, %689 : vector<1x32xf32>
    %711 = arith.mulf %695, %703 : vector<1x32xf32>
    %712 = arith.addf %710, %711 : vector<1x32xf32>
    %713 = math.tanh %712 : vector<1x32xf32>
    %714 = arith.mulf %709, %713 : vector<1x32xf32>
    %715 = vector.extract_strided_slice %687 {offsets = [0, 128], sizes = [1, 128], strides = [1, 1]} : vector<1x256xf32> to vector<1x128xf32>
    %716 = vector.extract_strided_slice %682 {offsets = [0, 32], sizes = [1, 32], strides = [1, 1]} : vector<1x64xf32> to vector<1x32xf32>
    %717 = vector.extract_strided_slice %715 {offsets = [0, 0], sizes = [1, 32], strides = [1, 1]} : vector<1x128xf32> to vector<1x32xf32>
    %718 = arith.negf %717 : vector<1x32xf32>
    %719 = math.exp %718 : vector<1x32xf32>
    %cst_97 = arith.constant 1.000000e+00 : f32
    %720 = vector.broadcast %cst_97 : f32 to vector<1x32xf32>
    %721 = arith.addf %720, %719 : vector<1x32xf32>
    %722 = arith.divf %720, %721 : vector<1x32xf32>
    %723 = vector.extract_strided_slice %715 {offsets = [0, 32], sizes = [1, 32], strides = [1, 1]} : vector<1x128xf32> to vector<1x32xf32>
    %724 = arith.negf %723 : vector<1x32xf32>
    %725 = math.exp %724 : vector<1x32xf32>
    %cst_98 = arith.constant 1.000000e+00 : f32
    %726 = vector.broadcast %cst_98 : f32 to vector<1x32xf32>
    %727 = arith.addf %726, %725 : vector<1x32xf32>
    %728 = arith.divf %726, %727 : vector<1x32xf32>
    %729 = vector.extract_strided_slice %715 {offsets = [0, 64], sizes = [1, 32], strides = [1, 1]} : vector<1x128xf32> to vector<1x32xf32>
    %730 = math.tanh %729 : vector<1x32xf32>
    %731 = vector.extract_strided_slice %715 {offsets = [0, 96], sizes = [1, 32], strides = [1, 1]} : vector<1x128xf32> to vector<1x32xf32>
    %732 = arith.negf %731 : vector<1x32xf32>
    %733 = math.exp %732 : vector<1x32xf32>
    %cst_99 = arith.constant 1.000000e+00 : f32
    %734 = vector.broadcast %cst_99 : f32 to vector<1x32xf32>
    %735 = arith.addf %734, %733 : vector<1x32xf32>
    %736 = arith.divf %734, %735 : vector<1x32xf32>
    %737 = arith.mulf %728, %716 : vector<1x32xf32>
    %738 = arith.mulf %722, %730 : vector<1x32xf32>
    %739 = arith.addf %737, %738 : vector<1x32xf32>
    %740 = math.tanh %739 : vector<1x32xf32>
    %741 = arith.mulf %736, %740 : vector<1x32xf32>
    %742 = tpu.concatenate %714, %741 in 1 : vector<1x32xf32>, vector<1x32xf32> -> vector<1x64xf32>
    %743 = tpu.concatenate %712, %739 in 1 : vector<1x32xf32>, vector<1x32xf32> -> vector<1x64xf32>
    %744 = vector.extract_strided_slice %497 {offsets = [4, 0], sizes = [1, 128], strides = [1, 1]} : vector<6x256xf32> to vector<1x128xf32>
    %745 = vector.extract_strided_slice %497 {offsets = [1, 128], sizes = [1, 128], strides = [1, 1]} : vector<6x256xf32> to vector<1x128xf32>
    %746 = tpu.concatenate %744, %745 in 1 : vector<1x128xf32>, vector<1x128xf32> -> vector<1x256xf32>
    %cst_100 = arith.constant dense<0.000000e+00> : vector<1x256xf32>
    %747 = tpu.matmul %742, %496, %cst_100 {dimension_numbers = #tpu.dot_dimension_numbers<[1], [0], [0], [1], [0, 0, 1, 1], [], []>} : vector<1x64xf32>, vector<64x256xf32>, vector<1x256xf32> -> vector<1x256xf32>
    %748 = arith.addf %746, %747 : vector<1x256xf32>
    %749 = vector.extract_strided_slice %748 {offsets = [0, 0], sizes = [1, 128], strides = [1, 1]} : vector<1x256xf32> to vector<1x128xf32>
    %750 = vector.extract_strided_slice %743 {offsets = [0, 0], sizes = [1, 32], strides = [1, 1]} : vector<1x64xf32> to vector<1x32xf32>
    %751 = vector.extract_strided_slice %749 {offsets = [0, 0], sizes = [1, 32], strides = [1, 1]} : vector<1x128xf32> to vector<1x32xf32>
    %752 = arith.negf %751 : vector<1x32xf32>
    %753 = math.exp %752 : vector<1x32xf32>
    %cst_101 = arith.constant 1.000000e+00 : f32
    %754 = vector.broadcast %cst_101 : f32 to vector<1x32xf32>
    %755 = arith.addf %754, %753 : vector<1x32xf32>
    %756 = arith.divf %754, %755 : vector<1x32xf32>
    %757 = vector.extract_strided_slice %749 {offsets = [0, 32], sizes = [1, 32], strides = [1, 1]} : vector<1x128xf32> to vector<1x32xf32>
    %758 = arith.negf %757 : vector<1x32xf32>
    %759 = math.exp %758 : vector<1x32xf32>
    %cst_102 = arith.constant 1.000000e+00 : f32
    %760 = vector.broadcast %cst_102 : f32 to vector<1x32xf32>
    %761 = arith.addf %760, %759 : vector<1x32xf32>
    %762 = arith.divf %760, %761 : vector<1x32xf32>
    %763 = vector.extract_strided_slice %749 {offsets = [0, 64], sizes = [1, 32], strides = [1, 1]} : vector<1x128xf32> to vector<1x32xf32>
    %764 = math.tanh %763 : vector<1x32xf32>
    %765 = vector.extract_strided_slice %749 {offsets = [0, 96], sizes = [1, 32], strides = [1, 1]} : vector<1x128xf32> to vector<1x32xf32>
    %766 = arith.negf %765 : vector<1x32xf32>
    %767 = math.exp %766 : vector<1x32xf32>
    %cst_103 = arith.constant 1.000000e+00 : f32
    %768 = vector.broadcast %cst_103 : f32 to vector<1x32xf32>
    %769 = arith.addf %768, %767 : vector<1x32xf32>
    %770 = arith.divf %768, %769 : vector<1x32xf32>
    %771 = arith.mulf %762, %750 : vector<1x32xf32>
    %772 = arith.mulf %756, %764 : vector<1x32xf32>
    %773 = arith.addf %771, %772 : vector<1x32xf32>
    %774 = math.tanh %773 : vector<1x32xf32>
    %775 = arith.mulf %770, %774 : vector<1x32xf32>
    %776 = vector.extract_strided_slice %748 {offsets = [0, 128], sizes = [1, 128], strides = [1, 1]} : vector<1x256xf32> to vector<1x128xf32>
    %777 = vector.extract_strided_slice %743 {offsets = [0, 32], sizes = [1, 32], strides = [1, 1]} : vector<1x64xf32> to vector<1x32xf32>
    %778 = vector.extract_strided_slice %776 {offsets = [0, 0], sizes = [1, 32], strides = [1, 1]} : vector<1x128xf32> to vector<1x32xf32>
    %779 = arith.negf %778 : vector<1x32xf32>
    %780 = math.exp %779 : vector<1x32xf32>
    %cst_104 = arith.constant 1.000000e+00 : f32
    %781 = vector.broadcast %cst_104 : f32 to vector<1x32xf32>
    %782 = arith.addf %781, %780 : vector<1x32xf32>
    %783 = arith.divf %781, %782 : vector<1x32xf32>
    %784 = vector.extract_strided_slice %776 {offsets = [0, 32], sizes = [1, 32], strides = [1, 1]} : vector<1x128xf32> to vector<1x32xf32>
    %785 = arith.negf %784 : vector<1x32xf32>
    %786 = math.exp %785 : vector<1x32xf32>
    %cst_105 = arith.constant 1.000000e+00 : f32
    %787 = vector.broadcast %cst_105 : f32 to vector<1x32xf32>
    %788 = arith.addf %787, %786 : vector<1x32xf32>
    %789 = arith.divf %787, %788 : vector<1x32xf32>
    %790 = vector.extract_strided_slice %776 {offsets = [0, 64], sizes = [1, 32], strides = [1, 1]} : vector<1x128xf32> to vector<1x32xf32>
    %791 = math.tanh %790 : vector<1x32xf32>
    %792 = vector.extract_strided_slice %776 {offsets = [0, 96], sizes = [1, 32], strides = [1, 1]} : vector<1x128xf32> to vector<1x32xf32>
    %793 = arith.negf %792 : vector<1x32xf32>
    %794 = math.exp %793 : vector<1x32xf32>
    %cst_106 = arith.constant 1.000000e+00 : f32
    %795 = vector.broadcast %cst_106 : f32 to vector<1x32xf32>
    %796 = arith.addf %795, %794 : vector<1x32xf32>
    %797 = arith.divf %795, %796 : vector<1x32xf32>
    %798 = arith.mulf %789, %777 : vector<1x32xf32>
    %799 = arith.mulf %783, %791 : vector<1x32xf32>
    %800 = arith.addf %798, %799 : vector<1x32xf32>
    %801 = math.tanh %800 : vector<1x32xf32>
    %802 = arith.mulf %797, %801 : vector<1x32xf32>
    %803 = tpu.concatenate %775, %802 in 1 : vector<1x32xf32>, vector<1x32xf32> -> vector<1x64xf32>
    %804 = tpu.concatenate %773, %800 in 1 : vector<1x32xf32>, vector<1x32xf32> -> vector<1x64xf32>
    %805 = vector.extract_strided_slice %497 {offsets = [5, 0], sizes = [1, 128], strides = [1, 1]} : vector<6x256xf32> to vector<1x128xf32>
    %806 = vector.extract_strided_slice %497 {offsets = [0, 128], sizes = [1, 128], strides = [1, 1]} : vector<6x256xf32> to vector<1x128xf32>
    %807 = tpu.concatenate %805, %806 in 1 : vector<1x128xf32>, vector<1x128xf32> -> vector<1x256xf32>
    %cst_107 = arith.constant dense<0.000000e+00> : vector<1x256xf32>
    %808 = tpu.matmul %803, %496, %cst_107 {dimension_numbers = #tpu.dot_dimension_numbers<[1], [0], [0], [1], [0, 0, 1, 1], [], []>} : vector<1x64xf32>, vector<64x256xf32>, vector<1x256xf32> -> vector<1x256xf32>
    %809 = arith.addf %807, %808 : vector<1x256xf32>
    %810 = vector.extract_strided_slice %809 {offsets = [0, 0], sizes = [1, 128], strides = [1, 1]} : vector<1x256xf32> to vector<1x128xf32>
    %811 = vector.extract_strided_slice %804 {offsets = [0, 0], sizes = [1, 32], strides = [1, 1]} : vector<1x64xf32> to vector<1x32xf32>
    %812 = vector.extract_strided_slice %810 {offsets = [0, 0], sizes = [1, 32], strides = [1, 1]} : vector<1x128xf32> to vector<1x32xf32>
    %813 = arith.negf %812 : vector<1x32xf32>
    %814 = math.exp %813 : vector<1x32xf32>
    %cst_108 = arith.constant 1.000000e+00 : f32
    %815 = vector.broadcast %cst_108 : f32 to vector<1x32xf32>
    %816 = arith.addf %815, %814 : vector<1x32xf32>
    %817 = arith.divf %815, %816 : vector<1x32xf32>
    %818 = vector.extract_strided_slice %810 {offsets = [0, 32], sizes = [1, 32], strides = [1, 1]} : vector<1x128xf32> to vector<1x32xf32>
    %819 = arith.negf %818 : vector<1x32xf32>
    %820 = math.exp %819 : vector<1x32xf32>
    %cst_109 = arith.constant 1.000000e+00 : f32
    %821 = vector.broadcast %cst_109 : f32 to vector<1x32xf32>
    %822 = arith.addf %821, %820 : vector<1x32xf32>
    %823 = arith.divf %821, %822 : vector<1x32xf32>
    %824 = vector.extract_strided_slice %810 {offsets = [0, 64], sizes = [1, 32], strides = [1, 1]} : vector<1x128xf32> to vector<1x32xf32>
    %825 = math.tanh %824 : vector<1x32xf32>
    %826 = vector.extract_strided_slice %810 {offsets = [0, 96], sizes = [1, 32], strides = [1, 1]} : vector<1x128xf32> to vector<1x32xf32>
    %827 = arith.negf %826 : vector<1x32xf32>
    %828 = math.exp %827 : vector<1x32xf32>
    %cst_110 = arith.constant 1.000000e+00 : f32
    %829 = vector.broadcast %cst_110 : f32 to vector<1x32xf32>
    %830 = arith.addf %829, %828 : vector<1x32xf32>
    %831 = arith.divf %829, %830 : vector<1x32xf32>
    %832 = arith.mulf %823, %811 : vector<1x32xf32>
    %833 = arith.mulf %817, %825 : vector<1x32xf32>
    %834 = arith.addf %832, %833 : vector<1x32xf32>
    %835 = math.tanh %834 : vector<1x32xf32>
    %836 = arith.mulf %831, %835 : vector<1x32xf32>
    %837 = vector.extract_strided_slice %809 {offsets = [0, 128], sizes = [1, 128], strides = [1, 1]} : vector<1x256xf32> to vector<1x128xf32>
    %838 = vector.extract_strided_slice %804 {offsets = [0, 32], sizes = [1, 32], strides = [1, 1]} : vector<1x64xf32> to vector<1x32xf32>
    %839 = vector.extract_strided_slice %837 {offsets = [0, 0], sizes = [1, 32], strides = [1, 1]} : vector<1x128xf32> to vector<1x32xf32>
    %840 = arith.negf %839 : vector<1x32xf32>
    %841 = math.exp %840 : vector<1x32xf32>
    %cst_111 = arith.constant 1.000000e+00 : f32
    %842 = vector.broadcast %cst_111 : f32 to vector<1x32xf32>
    %843 = arith.addf %842, %841 : vector<1x32xf32>
    %844 = arith.divf %842, %843 : vector<1x32xf32>
    %845 = vector.extract_strided_slice %837 {offsets = [0, 32], sizes = [1, 32], strides = [1, 1]} : vector<1x128xf32> to vector<1x32xf32>
    %846 = arith.negf %845 : vector<1x32xf32>
    %847 = math.exp %846 : vector<1x32xf32>
    %cst_112 = arith.constant 1.000000e+00 : f32
    %848 = vector.broadcast %cst_112 : f32 to vector<1x32xf32>
    %849 = arith.addf %848, %847 : vector<1x32xf32>
    %850 = arith.divf %848, %849 : vector<1x32xf32>
    %851 = vector.extract_strided_slice %837 {offsets = [0, 64], sizes = [1, 32], strides = [1, 1]} : vector<1x128xf32> to vector<1x32xf32>
    %852 = math.tanh %851 : vector<1x32xf32>
    %853 = vector.extract_strided_slice %837 {offsets = [0, 96], sizes = [1, 32], strides = [1, 1]} : vector<1x128xf32> to vector<1x32xf32>
    %854 = arith.negf %853 : vector<1x32xf32>
    %855 = math.exp %854 : vector<1x32xf32>
    %cst_113 = arith.constant 1.000000e+00 : f32
    %856 = vector.broadcast %cst_113 : f32 to vector<1x32xf32>
    %857 = arith.addf %856, %855 : vector<1x32xf32>
    %858 = arith.divf %856, %857 : vector<1x32xf32>
    %859 = arith.mulf %850, %838 : vector<1x32xf32>
    %860 = arith.mulf %844, %852 : vector<1x32xf32>
    %861 = arith.addf %859, %860 : vector<1x32xf32>
    %862 = math.tanh %861 : vector<1x32xf32>
    %863 = arith.mulf %858, %862 : vector<1x32xf32>
    %864 = tpu.concatenate %531, %592, %653, %714, %775, %836 in 0 : vector<1x32xf32>, vector<1x32xf32>, vector<1x32xf32>, vector<1x32xf32>, vector<1x32xf32>, vector<1x32xf32> -> vector<6x32xf32>
    %865 = tpu.concatenate %863, %802, %741, %680, %619, %558 in 0 : vector<1x32xf32>, vector<1x32xf32>, vector<1x32xf32>, vector<1x32xf32>, vector<1x32xf32>, vector<1x32xf32> -> vector<6x32xf32>
    %866 = vector.extract_strided_slice %864 {offsets = [5, 0], sizes = [1, 32], strides = [1, 1]} : vector<6x32xf32> to vector<1x32xf32>
    %c0_114 = arith.constant 0 : index
    %c0_115 = arith.constant 0 : index
    %867 = vector.load %arg6[%c0_114, %c0_115] : memref<4x32xf32, #tpu.memory_space<vmem>>, vector<4x32xf32>
    %c0_116 = arith.constant 0 : index
    %c0_117 = arith.constant 0 : index
    %868 = vector.load %arg8[%c0_116, %c0_117] : memref<4x32xf32, #tpu.memory_space<vmem>>, vector<4x32xf32>
    %c0_118 = arith.constant 0 : index
    %c0_119 = arith.constant 0 : index
    %869 = vector.load %arg10[%c0_118, %c0_119] : memref<4x32xf32, #tpu.memory_space<vmem>>, vector<4x32xf32>
    %870 = arith.mulf %492, %492 : vector<8x32xf32>
    %871 = arith.mulf %864, %864 : vector<6x32xf32>
    %872 = arith.mulf %867, %867 : vector<4x32xf32>
    %873 = arith.mulf %868, %868 : vector<4x32xf32>
    %874 = arith.mulf %869, %869 : vector<4x32xf32>
    %875 = vector.broadcast %866 : vector<1x32xf32> to vector<8x32xf32>
    %876 = arith.mulf %492, %875 : vector<8x32xf32>
    %cst_120 = arith.constant dense<0.000000e+00> : vector<8x4xf32>
    %877 = tpu.matmul %876, %872, %cst_120 {dimension_numbers = #tpu.dot_dimension_numbers<[1], [1], [0], [0], [0, 0, 1, 0], [], []>} : vector<8x32xf32>, vector<4x32xf32>, vector<8x4xf32> -> vector<8x4xf32>
    %cst_121 = arith.constant dense<0.000000e+00> : vector<8x4xf32>
    %878 = tpu.matmul %870, %872, %cst_121 {dimension_numbers = #tpu.dot_dimension_numbers<[1], [1], [0], [0], [0, 0, 1, 0], [], []>} : vector<8x32xf32>, vector<4x32xf32>, vector<8x4xf32> -> vector<8x4xf32>
    %879 = arith.mulf %866, %866 : vector<1x32xf32>
    %cst_122 = arith.constant dense<0.000000e+00> : vector<1x4xf32>
    %880 = tpu.matmul %879, %872, %cst_122 {dimension_numbers = #tpu.dot_dimension_numbers<[1], [1], [0], [0], [0, 0, 1, 0], [], []>} : vector<1x32xf32>, vector<4x32xf32>, vector<1x4xf32> -> vector<1x4xf32>
    %881 = vector.broadcast %880 : vector<1x4xf32> to vector<8x4xf32>
    %882 = arith.mulf %878, %881 : vector<8x4xf32>
    %cst_123 = arith.constant 1.000000e-16 : f32
    %883 = vector.broadcast %cst_123 : f32 to vector<8x4xf32>
    %884 = arith.maximumf %882, %883 : vector<8x4xf32>
    %885 = math.rsqrt %884 : vector<8x4xf32>
    %886 = arith.mulf %877, %885 : vector<8x4xf32>
    %cst_124 = arith.constant dense<0.000000e+00> : vector<8x4xf32>
    %887 = tpu.matmul %870, %873, %cst_124 {dimension_numbers = #tpu.dot_dimension_numbers<[1], [1], [0], [0], [0, 0, 1, 0], [], []>} : vector<8x32xf32>, vector<4x32xf32>, vector<8x4xf32> -> vector<8x4xf32>
    %cst_125 = arith.constant dense<0.000000e+00> : vector<4x6xf32>
    %888 = tpu.matmul %873, %871, %cst_125 {dimension_numbers = #tpu.dot_dimension_numbers<[1], [1], [0], [0], [0, 0, 1, 0], [], []>} : vector<4x32xf32>, vector<6x32xf32>, vector<4x6xf32> -> vector<4x6xf32>
    %889 = vector.extract_strided_slice %873 {offsets = [0, 0], sizes = [1, 32], strides = [1, 1]} : vector<4x32xf32> to vector<1x32xf32>
    %890 = vector.broadcast %889 : vector<1x32xf32> to vector<6x32xf32>
    %891 = arith.mulf %864, %890 : vector<6x32xf32>
    %cst_126 = arith.constant dense<0.000000e+00> : vector<8x6xf32>
    %892 = tpu.matmul %492, %891, %cst_126 {dimension_numbers = #tpu.dot_dimension_numbers<[1], [1], [0], [0], [0, 0, 1, 0], [], []>} : vector<8x32xf32>, vector<6x32xf32>, vector<8x6xf32> -> vector<8x6xf32>
    %893 = vector.extract_strided_slice %887 {offsets = [0, 0], sizes = [8, 1], strides = [1, 1]} : vector<8x4xf32> to vector<8x1xf32>
    %894 = vector.extract_strided_slice %888 {offsets = [0, 0], sizes = [1, 6], strides = [1, 1]} : vector<4x6xf32> to vector<1x6xf32>
    %895 = vector.broadcast %893 : vector<8x1xf32> to vector<8x6xf32>
    %896 = vector.broadcast %894 : vector<1x6xf32> to vector<8x6xf32>
    %897 = arith.mulf %895, %896 : vector<8x6xf32>
    %cst_127 = arith.constant 1.000000e-16 : f32
    %898 = vector.broadcast %cst_127 : f32 to vector<8x6xf32>
    %899 = arith.maximumf %897, %898 : vector<8x6xf32>
    %900 = math.rsqrt %899 : vector<8x6xf32>
    %901 = arith.mulf %892, %900 : vector<8x6xf32>
    %cst_128 = arith.constant dense<0xFF800000> : vector<8xf32>
    %902 = vector.multi_reduction <maximumf>, %901, %cst_128 [1] : vector<8x6xf32> to vector<8xf32>
    %903 = vector.shape_cast %902 : vector<8xf32> to vector<8x1xf32>
    %904 = vector.extract_strided_slice %873 {offsets = [1, 0], sizes = [1, 32], strides = [1, 1]} : vector<4x32xf32> to vector<1x32xf32>
    %905 = vector.broadcast %904 : vector<1x32xf32> to vector<6x32xf32>
    %906 = arith.mulf %864, %905 : vector<6x32xf32>
    %cst_129 = arith.constant dense<0.000000e+00> : vector<8x6xf32>
    %907 = tpu.matmul %492, %906, %cst_129 {dimension_numbers = #tpu.dot_dimension_numbers<[1], [1], [0], [0], [0, 0, 1, 0], [], []>} : vector<8x32xf32>, vector<6x32xf32>, vector<8x6xf32> -> vector<8x6xf32>
    %908 = vector.extract_strided_slice %887 {offsets = [0, 1], sizes = [8, 1], strides = [1, 1]} : vector<8x4xf32> to vector<8x1xf32>
    %909 = vector.extract_strided_slice %888 {offsets = [1, 0], sizes = [1, 6], strides = [1, 1]} : vector<4x6xf32> to vector<1x6xf32>
    %910 = vector.broadcast %908 : vector<8x1xf32> to vector<8x6xf32>
    %911 = vector.broadcast %909 : vector<1x6xf32> to vector<8x6xf32>
    %912 = arith.mulf %910, %911 : vector<8x6xf32>
    %cst_130 = arith.constant 1.000000e-16 : f32
    %913 = vector.broadcast %cst_130 : f32 to vector<8x6xf32>
    %914 = arith.maximumf %912, %913 : vector<8x6xf32>
    %915 = math.rsqrt %914 : vector<8x6xf32>
    %916 = arith.mulf %907, %915 : vector<8x6xf32>
    %cst_131 = arith.constant dense<0xFF800000> : vector<8xf32>
    %917 = vector.multi_reduction <maximumf>, %916, %cst_131 [1] : vector<8x6xf32> to vector<8xf32>
    %918 = vector.shape_cast %917 : vector<8xf32> to vector<8x1xf32>
    %919 = vector.extract_strided_slice %873 {offsets = [2, 0], sizes = [1, 32], strides = [1, 1]} : vector<4x32xf32> to vector<1x32xf32>
    %920 = vector.broadcast %919 : vector<1x32xf32> to vector<6x32xf32>
    %921 = arith.mulf %864, %920 : vector<6x32xf32>
    %cst_132 = arith.constant dense<0.000000e+00> : vector<8x6xf32>
    %922 = tpu.matmul %492, %921, %cst_132 {dimension_numbers = #tpu.dot_dimension_numbers<[1], [1], [0], [0], [0, 0, 1, 0], [], []>} : vector<8x32xf32>, vector<6x32xf32>, vector<8x6xf32> -> vector<8x6xf32>
    %923 = vector.extract_strided_slice %887 {offsets = [0, 2], sizes = [8, 1], strides = [1, 1]} : vector<8x4xf32> to vector<8x1xf32>
    %924 = vector.extract_strided_slice %888 {offsets = [2, 0], sizes = [1, 6], strides = [1, 1]} : vector<4x6xf32> to vector<1x6xf32>
    %925 = vector.broadcast %923 : vector<8x1xf32> to vector<8x6xf32>
    %926 = vector.broadcast %924 : vector<1x6xf32> to vector<8x6xf32>
    %927 = arith.mulf %925, %926 : vector<8x6xf32>
    %cst_133 = arith.constant 1.000000e-16 : f32
    %928 = vector.broadcast %cst_133 : f32 to vector<8x6xf32>
    %929 = arith.maximumf %927, %928 : vector<8x6xf32>
    %930 = math.rsqrt %929 : vector<8x6xf32>
    %931 = arith.mulf %922, %930 : vector<8x6xf32>
    %cst_134 = arith.constant dense<0xFF800000> : vector<8xf32>
    %932 = vector.multi_reduction <maximumf>, %931, %cst_134 [1] : vector<8x6xf32> to vector<8xf32>
    %933 = vector.shape_cast %932 : vector<8xf32> to vector<8x1xf32>
    %934 = vector.extract_strided_slice %873 {offsets = [3, 0], sizes = [1, 32], strides = [1, 1]} : vector<4x32xf32> to vector<1x32xf32>
    %935 = vector.broadcast %934 : vector<1x32xf32> to vector<6x32xf32>
    %936 = arith.mulf %864, %935 : vector<6x32xf32>
    %cst_135 = arith.constant dense<0.000000e+00> : vector<8x6xf32>
    %937 = tpu.matmul %492, %936, %cst_135 {dimension_numbers = #tpu.dot_dimension_numbers<[1], [1], [0], [0], [0, 0, 1, 0], [], []>} : vector<8x32xf32>, vector<6x32xf32>, vector<8x6xf32> -> vector<8x6xf32>
    %938 = vector.extract_strided_slice %887 {offsets = [0, 3], sizes = [8, 1], strides = [1, 1]} : vector<8x4xf32> to vector<8x1xf32>
    %939 = vector.extract_strided_slice %888 {offsets = [3, 0], sizes = [1, 6], strides = [1, 1]} : vector<4x6xf32> to vector<1x6xf32>
    %940 = vector.broadcast %938 : vector<8x1xf32> to vector<8x6xf32>
    %941 = vector.broadcast %939 : vector<1x6xf32> to vector<8x6xf32>
    %942 = arith.mulf %940, %941 : vector<8x6xf32>
    %cst_136 = arith.constant 1.000000e-16 : f32
    %943 = vector.broadcast %cst_136 : f32 to vector<8x6xf32>
    %944 = arith.maximumf %942, %943 : vector<8x6xf32>
    %945 = math.rsqrt %944 : vector<8x6xf32>
    %946 = arith.mulf %937, %945 : vector<8x6xf32>
    %cst_137 = arith.constant dense<0xFF800000> : vector<8xf32>
    %947 = vector.multi_reduction <maximumf>, %946, %cst_137 [1] : vector<8x6xf32> to vector<8xf32>
    %948 = vector.shape_cast %947 : vector<8xf32> to vector<8x1xf32>
    %949 = tpu.concatenate %903, %918, %933, %948 in 1 : vector<8x1xf32>, vector<8x1xf32>, vector<8x1xf32>, vector<8x1xf32> -> vector<8x4xf32>
    %cst_138 = arith.constant 1.000000e+00 : f32
    %950 = vector.broadcast %cst_138 : f32 to vector<1x32xf32>
    %cst_139 = arith.constant dense<0.000000e+00> : vector<8x1xf32>
    %951 = tpu.matmul %870, %950, %cst_139 {dimension_numbers = #tpu.dot_dimension_numbers<[1], [1], [0], [0], [0, 0, 1, 0], [], []>} : vector<8x32xf32>, vector<1x32xf32>, vector<8x1xf32> -> vector<8x1xf32>
    %cst_140 = arith.constant dense<0.000000e+00> : vector<1x6xf32>
    %952 = tpu.matmul %950, %871, %cst_140 {dimension_numbers = #tpu.dot_dimension_numbers<[1], [1], [0], [0], [0, 0, 1, 0], [], []>} : vector<1x32xf32>, vector<6x32xf32>, vector<1x6xf32> -> vector<1x6xf32>
    %cst_141 = arith.constant dense<0.000000e+00> : vector<8x6xf32>
    %953 = tpu.matmul %492, %864, %cst_141 {dimension_numbers = #tpu.dot_dimension_numbers<[1], [1], [0], [0], [0, 0, 1, 0], [], []>} : vector<8x32xf32>, vector<6x32xf32>, vector<8x6xf32> -> vector<8x6xf32>
    %954 = vector.broadcast %951 : vector<8x1xf32> to vector<8x6xf32>
    %955 = vector.broadcast %952 : vector<1x6xf32> to vector<8x6xf32>
    %956 = arith.mulf %954, %955 : vector<8x6xf32>
    %cst_142 = arith.constant 1.000000e-16 : f32
    %957 = vector.broadcast %cst_142 : f32 to vector<8x6xf32>
    %958 = arith.maximumf %956, %957 : vector<8x6xf32>
    %959 = math.rsqrt %958 : vector<8x6xf32>
    %960 = arith.mulf %953, %959 : vector<8x6xf32>
    %cst_143 = arith.constant dense<0.000000e+00> : vector<8xf32>
    %961 = vector.multi_reduction <add>, %960, %cst_143 [1] : vector<8x6xf32> to vector<8xf32>
    %962 = vector.shape_cast %961 : vector<8xf32> to vector<8x1xf32>
    %963 = math.absf %962 : vector<8x1xf32>
    %cst_144 = arith.constant 9.99999993E-9 : f32
    %964 = vector.broadcast %cst_144 : f32 to vector<8x1xf32>
    %965 = arith.cmpf olt, %963, %964 : vector<8x1xf32>
    %cst_145 = arith.constant 0.000000e+00 : f32
    %966 = vector.broadcast %cst_145 : f32 to vector<8x1xf32>
    %967 = arith.cmpf oge, %962, %966 : vector<8x1xf32>
    %cst_146 = arith.constant 9.99999993E-9 : f32
    %cst_147 = arith.constant -9.99999993E-9 : f32
    %968 = vector.broadcast %cst_146 : f32 to vector<8x1xf32>
    %969 = vector.broadcast %cst_147 : f32 to vector<8x1xf32>
    %970 = arith.select %967, %968, %969 : vector<8x1xi1>, vector<8x1xf32>
    %971 = arith.select %965, %970, %962 : vector<8x1xi1>, vector<8x1xf32>
    %cst_148 = arith.constant dense<0.000000e+00> : vector<8x32xf32>
    %972 = tpu.matmul %960, %864, %cst_148 {dimension_numbers = #tpu.dot_dimension_numbers<[1], [0], [0], [1], [0, 0, 1, 1], [], []>} : vector<8x6xf32>, vector<6x32xf32>, vector<8x32xf32> -> vector<8x32xf32>
    %973 = tpu.reciprocal %971 {approx = true} : vector<8x1xf32> -> vector<8x1xf32>
    %974 = vector.broadcast %973 : vector<8x1xf32> to vector<8x32xf32>
    %975 = arith.mulf %972, %974 : vector<8x32xf32>
    %976 = arith.mulf %492, %975 : vector<8x32xf32>
    %cst_149 = arith.constant dense<0.000000e+00> : vector<8x4xf32>
    %977 = tpu.matmul %976, %874, %cst_149 {dimension_numbers = #tpu.dot_dimension_numbers<[1], [1], [0], [0], [0, 0, 1, 0], [], []>} : vector<8x32xf32>, vector<4x32xf32>, vector<8x4xf32> -> vector<8x4xf32>
    %cst_150 = arith.constant dense<0.000000e+00> : vector<8x4xf32>
    %978 = tpu.matmul %870, %874, %cst_150 {dimension_numbers = #tpu.dot_dimension_numbers<[1], [1], [0], [0], [0, 0, 1, 0], [], []>} : vector<8x32xf32>, vector<4x32xf32>, vector<8x4xf32> -> vector<8x4xf32>
    %979 = arith.mulf %975, %975 : vector<8x32xf32>
    %cst_151 = arith.constant dense<0.000000e+00> : vector<8x4xf32>
    %980 = tpu.matmul %979, %874, %cst_151 {dimension_numbers = #tpu.dot_dimension_numbers<[1], [1], [0], [0], [0, 0, 1, 0], [], []>} : vector<8x32xf32>, vector<4x32xf32>, vector<8x4xf32> -> vector<8x4xf32>
    %981 = arith.mulf %978, %980 : vector<8x4xf32>
    %cst_152 = arith.constant 1.000000e-16 : f32
    %982 = vector.broadcast %cst_152 : f32 to vector<8x4xf32>
    %983 = arith.maximumf %981, %982 : vector<8x4xf32>
    %984 = math.rsqrt %983 : vector<8x4xf32>
    %985 = arith.mulf %977, %984 : vector<8x4xf32>
    %986 = vector.extract_strided_slice %865 {offsets = [0, 0], sizes = [1, 32], strides = [1, 1]} : vector<6x32xf32> to vector<1x32xf32>
    %c0_153 = arith.constant 0 : index
    %c0_154 = arith.constant 0 : index
    %987 = vector.load %arg7[%c0_153, %c0_154] : memref<4x32xf32, #tpu.memory_space<vmem>>, vector<4x32xf32>
    %c0_155 = arith.constant 0 : index
    %c0_156 = arith.constant 0 : index
    %988 = vector.load %arg9[%c0_155, %c0_156] : memref<4x32xf32, #tpu.memory_space<vmem>>, vector<4x32xf32>
    %c0_157 = arith.constant 0 : index
    %c0_158 = arith.constant 0 : index
    %989 = vector.load %arg10[%c0_157, %c0_158] : memref<4x32xf32, #tpu.memory_space<vmem>>, vector<4x32xf32>
    %990 = arith.mulf %493, %493 : vector<8x32xf32>
    %991 = arith.mulf %865, %865 : vector<6x32xf32>
    %992 = arith.mulf %987, %987 : vector<4x32xf32>
    %993 = arith.mulf %988, %988 : vector<4x32xf32>
    %994 = arith.mulf %989, %989 : vector<4x32xf32>
    %995 = vector.broadcast %986 : vector<1x32xf32> to vector<8x32xf32>
    %996 = arith.mulf %493, %995 : vector<8x32xf32>
    %cst_159 = arith.constant dense<0.000000e+00> : vector<8x4xf32>
    %997 = tpu.matmul %996, %992, %cst_159 {dimension_numbers = #tpu.dot_dimension_numbers<[1], [1], [0], [0], [0, 0, 1, 0], [], []>} : vector<8x32xf32>, vector<4x32xf32>, vector<8x4xf32> -> vector<8x4xf32>
    %cst_160 = arith.constant dense<0.000000e+00> : vector<8x4xf32>
    %998 = tpu.matmul %990, %992, %cst_160 {dimension_numbers = #tpu.dot_dimension_numbers<[1], [1], [0], [0], [0, 0, 1, 0], [], []>} : vector<8x32xf32>, vector<4x32xf32>, vector<8x4xf32> -> vector<8x4xf32>
    %999 = arith.mulf %986, %986 : vector<1x32xf32>
    %cst_161 = arith.constant dense<0.000000e+00> : vector<1x4xf32>
    %1000 = tpu.matmul %999, %992, %cst_161 {dimension_numbers = #tpu.dot_dimension_numbers<[1], [1], [0], [0], [0, 0, 1, 0], [], []>} : vector<1x32xf32>, vector<4x32xf32>, vector<1x4xf32> -> vector<1x4xf32>
    %1001 = vector.broadcast %1000 : vector<1x4xf32> to vector<8x4xf32>
    %1002 = arith.mulf %998, %1001 : vector<8x4xf32>
    %cst_162 = arith.constant 1.000000e-16 : f32
    %1003 = vector.broadcast %cst_162 : f32 to vector<8x4xf32>
    %1004 = arith.maximumf %1002, %1003 : vector<8x4xf32>
    %1005 = math.rsqrt %1004 : vector<8x4xf32>
    %1006 = arith.mulf %997, %1005 : vector<8x4xf32>
    %cst_163 = arith.constant dense<0.000000e+00> : vector<8x4xf32>
    %1007 = tpu.matmul %990, %993, %cst_163 {dimension_numbers = #tpu.dot_dimension_numbers<[1], [1], [0], [0], [0, 0, 1, 0], [], []>} : vector<8x32xf32>, vector<4x32xf32>, vector<8x4xf32> -> vector<8x4xf32>
    %cst_164 = arith.constant dense<0.000000e+00> : vector<4x6xf32>
    %1008 = tpu.matmul %993, %991, %cst_164 {dimension_numbers = #tpu.dot_dimension_numbers<[1], [1], [0], [0], [0, 0, 1, 0], [], []>} : vector<4x32xf32>, vector<6x32xf32>, vector<4x6xf32> -> vector<4x6xf32>
    %1009 = vector.extract_strided_slice %993 {offsets = [0, 0], sizes = [1, 32], strides = [1, 1]} : vector<4x32xf32> to vector<1x32xf32>
    %1010 = vector.broadcast %1009 : vector<1x32xf32> to vector<6x32xf32>
    %1011 = arith.mulf %865, %1010 : vector<6x32xf32>
    %cst_165 = arith.constant dense<0.000000e+00> : vector<8x6xf32>
    %1012 = tpu.matmul %493, %1011, %cst_165 {dimension_numbers = #tpu.dot_dimension_numbers<[1], [1], [0], [0], [0, 0, 1, 0], [], []>} : vector<8x32xf32>, vector<6x32xf32>, vector<8x6xf32> -> vector<8x6xf32>
    %1013 = vector.extract_strided_slice %1007 {offsets = [0, 0], sizes = [8, 1], strides = [1, 1]} : vector<8x4xf32> to vector<8x1xf32>
    %1014 = vector.extract_strided_slice %1008 {offsets = [0, 0], sizes = [1, 6], strides = [1, 1]} : vector<4x6xf32> to vector<1x6xf32>
    %1015 = vector.broadcast %1013 : vector<8x1xf32> to vector<8x6xf32>
    %1016 = vector.broadcast %1014 : vector<1x6xf32> to vector<8x6xf32>
    %1017 = arith.mulf %1015, %1016 : vector<8x6xf32>
    %cst_166 = arith.constant 1.000000e-16 : f32
    %1018 = vector.broadcast %cst_166 : f32 to vector<8x6xf32>
    %1019 = arith.maximumf %1017, %1018 : vector<8x6xf32>
    %1020 = math.rsqrt %1019 : vector<8x6xf32>
    %1021 = arith.mulf %1012, %1020 : vector<8x6xf32>
    %cst_167 = arith.constant dense<0xFF800000> : vector<8xf32>
    %1022 = vector.multi_reduction <maximumf>, %1021, %cst_167 [1] : vector<8x6xf32> to vector<8xf32>
    %1023 = vector.shape_cast %1022 : vector<8xf32> to vector<8x1xf32>
    %1024 = vector.extract_strided_slice %993 {offsets = [1, 0], sizes = [1, 32], strides = [1, 1]} : vector<4x32xf32> to vector<1x32xf32>
    %1025 = vector.broadcast %1024 : vector<1x32xf32> to vector<6x32xf32>
    %1026 = arith.mulf %865, %1025 : vector<6x32xf32>
    %cst_168 = arith.constant dense<0.000000e+00> : vector<8x6xf32>
    %1027 = tpu.matmul %493, %1026, %cst_168 {dimension_numbers = #tpu.dot_dimension_numbers<[1], [1], [0], [0], [0, 0, 1, 0], [], []>} : vector<8x32xf32>, vector<6x32xf32>, vector<8x6xf32> -> vector<8x6xf32>
    %1028 = vector.extract_strided_slice %1007 {offsets = [0, 1], sizes = [8, 1], strides = [1, 1]} : vector<8x4xf32> to vector<8x1xf32>
    %1029 = vector.extract_strided_slice %1008 {offsets = [1, 0], sizes = [1, 6], strides = [1, 1]} : vector<4x6xf32> to vector<1x6xf32>
    %1030 = vector.broadcast %1028 : vector<8x1xf32> to vector<8x6xf32>
    %1031 = vector.broadcast %1029 : vector<1x6xf32> to vector<8x6xf32>
    %1032 = arith.mulf %1030, %1031 : vector<8x6xf32>
    %cst_169 = arith.constant 1.000000e-16 : f32
    %1033 = vector.broadcast %cst_169 : f32 to vector<8x6xf32>
    %1034 = arith.maximumf %1032, %1033 : vector<8x6xf32>
    %1035 = math.rsqrt %1034 : vector<8x6xf32>
    %1036 = arith.mulf %1027, %1035 : vector<8x6xf32>
    %cst_170 = arith.constant dense<0xFF800000> : vector<8xf32>
    %1037 = vector.multi_reduction <maximumf>, %1036, %cst_170 [1] : vector<8x6xf32> to vector<8xf32>
    %1038 = vector.shape_cast %1037 : vector<8xf32> to vector<8x1xf32>
    %1039 = vector.extract_strided_slice %993 {offsets = [2, 0], sizes = [1, 32], strides = [1, 1]} : vector<4x32xf32> to vector<1x32xf32>
    %1040 = vector.broadcast %1039 : vector<1x32xf32> to vector<6x32xf32>
    %1041 = arith.mulf %865, %1040 : vector<6x32xf32>
    %cst_171 = arith.constant dense<0.000000e+00> : vector<8x6xf32>
    %1042 = tpu.matmul %493, %1041, %cst_171 {dimension_numbers = #tpu.dot_dimension_numbers<[1], [1], [0], [0], [0, 0, 1, 0], [], []>} : vector<8x32xf32>, vector<6x32xf32>, vector<8x6xf32> -> vector<8x6xf32>
    %1043 = vector.extract_strided_slice %1007 {offsets = [0, 2], sizes = [8, 1], strides = [1, 1]} : vector<8x4xf32> to vector<8x1xf32>
    %1044 = vector.extract_strided_slice %1008 {offsets = [2, 0], sizes = [1, 6], strides = [1, 1]} : vector<4x6xf32> to vector<1x6xf32>
    %1045 = vector.broadcast %1043 : vector<8x1xf32> to vector<8x6xf32>
    %1046 = vector.broadcast %1044 : vector<1x6xf32> to vector<8x6xf32>
    %1047 = arith.mulf %1045, %1046 : vector<8x6xf32>
    %cst_172 = arith.constant 1.000000e-16 : f32
    %1048 = vector.broadcast %cst_172 : f32 to vector<8x6xf32>
    %1049 = arith.maximumf %1047, %1048 : vector<8x6xf32>
    %1050 = math.rsqrt %1049 : vector<8x6xf32>
    %1051 = arith.mulf %1042, %1050 : vector<8x6xf32>
    %cst_173 = arith.constant dense<0xFF800000> : vector<8xf32>
    %1052 = vector.multi_reduction <maximumf>, %1051, %cst_173 [1] : vector<8x6xf32> to vector<8xf32>
    %1053 = vector.shape_cast %1052 : vector<8xf32> to vector<8x1xf32>
    %1054 = vector.extract_strided_slice %993 {offsets = [3, 0], sizes = [1, 32], strides = [1, 1]} : vector<4x32xf32> to vector<1x32xf32>
    %1055 = vector.broadcast %1054 : vector<1x32xf32> to vector<6x32xf32>
    %1056 = arith.mulf %865, %1055 : vector<6x32xf32>
    %cst_174 = arith.constant dense<0.000000e+00> : vector<8x6xf32>
    %1057 = tpu.matmul %493, %1056, %cst_174 {dimension_numbers = #tpu.dot_dimension_numbers<[1], [1], [0], [0], [0, 0, 1, 0], [], []>} : vector<8x32xf32>, vector<6x32xf32>, vector<8x6xf32> -> vector<8x6xf32>
    %1058 = vector.extract_strided_slice %1007 {offsets = [0, 3], sizes = [8, 1], strides = [1, 1]} : vector<8x4xf32> to vector<8x1xf32>
    %1059 = vector.extract_strided_slice %1008 {offsets = [3, 0], sizes = [1, 6], strides = [1, 1]} : vector<4x6xf32> to vector<1x6xf32>
    %1060 = vector.broadcast %1058 : vector<8x1xf32> to vector<8x6xf32>
    %1061 = vector.broadcast %1059 : vector<1x6xf32> to vector<8x6xf32>
    %1062 = arith.mulf %1060, %1061 : vector<8x6xf32>
    %cst_175 = arith.constant 1.000000e-16 : f32
    %1063 = vector.broadcast %cst_175 : f32 to vector<8x6xf32>
    %1064 = arith.maximumf %1062, %1063 : vector<8x6xf32>
    %1065 = math.rsqrt %1064 : vector<8x6xf32>
    %1066 = arith.mulf %1057, %1065 : vector<8x6xf32>
    %cst_176 = arith.constant dense<0xFF800000> : vector<8xf32>
    %1067 = vector.multi_reduction <maximumf>, %1066, %cst_176 [1] : vector<8x6xf32> to vector<8xf32>
    %1068 = vector.shape_cast %1067 : vector<8xf32> to vector<8x1xf32>
    %1069 = tpu.concatenate %1023, %1038, %1053, %1068 in 1 : vector<8x1xf32>, vector<8x1xf32>, vector<8x1xf32>, vector<8x1xf32> -> vector<8x4xf32>
    %cst_177 = arith.constant 1.000000e+00 : f32
    %1070 = vector.broadcast %cst_177 : f32 to vector<1x32xf32>
    %cst_178 = arith.constant dense<0.000000e+00> : vector<8x1xf32>
    %1071 = tpu.matmul %990, %1070, %cst_178 {dimension_numbers = #tpu.dot_dimension_numbers<[1], [1], [0], [0], [0, 0, 1, 0], [], []>} : vector<8x32xf32>, vector<1x32xf32>, vector<8x1xf32> -> vector<8x1xf32>
    %cst_179 = arith.constant dense<0.000000e+00> : vector<1x6xf32>
    %1072 = tpu.matmul %1070, %991, %cst_179 {dimension_numbers = #tpu.dot_dimension_numbers<[1], [1], [0], [0], [0, 0, 1, 0], [], []>} : vector<1x32xf32>, vector<6x32xf32>, vector<1x6xf32> -> vector<1x6xf32>
    %cst_180 = arith.constant dense<0.000000e+00> : vector<8x6xf32>
    %1073 = tpu.matmul %493, %865, %cst_180 {dimension_numbers = #tpu.dot_dimension_numbers<[1], [1], [0], [0], [0, 0, 1, 0], [], []>} : vector<8x32xf32>, vector<6x32xf32>, vector<8x6xf32> -> vector<8x6xf32>
    %1074 = vector.broadcast %1071 : vector<8x1xf32> to vector<8x6xf32>
    %1075 = vector.broadcast %1072 : vector<1x6xf32> to vector<8x6xf32>
    %1076 = arith.mulf %1074, %1075 : vector<8x6xf32>
    %cst_181 = arith.constant 1.000000e-16 : f32
    %1077 = vector.broadcast %cst_181 : f32 to vector<8x6xf32>
    %1078 = arith.maximumf %1076, %1077 : vector<8x6xf32>
    %1079 = math.rsqrt %1078 : vector<8x6xf32>
    %1080 = arith.mulf %1073, %1079 : vector<8x6xf32>
    %cst_182 = arith.constant dense<0.000000e+00> : vector<8xf32>
    %1081 = vector.multi_reduction <add>, %1080, %cst_182 [1] : vector<8x6xf32> to vector<8xf32>
    %1082 = vector.shape_cast %1081 : vector<8xf32> to vector<8x1xf32>
    %1083 = math.absf %1082 : vector<8x1xf32>
    %cst_183 = arith.constant 9.99999993E-9 : f32
    %1084 = vector.broadcast %cst_183 : f32 to vector<8x1xf32>
    %1085 = arith.cmpf olt, %1083, %1084 : vector<8x1xf32>
    %cst_184 = arith.constant 0.000000e+00 : f32
    %1086 = vector.broadcast %cst_184 : f32 to vector<8x1xf32>
    %1087 = arith.cmpf oge, %1082, %1086 : vector<8x1xf32>
    %cst_185 = arith.constant 9.99999993E-9 : f32
    %cst_186 = arith.constant -9.99999993E-9 : f32
    %1088 = vector.broadcast %cst_185 : f32 to vector<8x1xf32>
    %1089 = vector.broadcast %cst_186 : f32 to vector<8x1xf32>
    %1090 = arith.select %1087, %1088, %1089 : vector<8x1xi1>, vector<8x1xf32>
    %1091 = arith.select %1085, %1090, %1082 : vector<8x1xi1>, vector<8x1xf32>
    %cst_187 = arith.constant dense<0.000000e+00> : vector<8x32xf32>
    %1092 = tpu.matmul %1080, %865, %cst_187 {dimension_numbers = #tpu.dot_dimension_numbers<[1], [0], [0], [1], [0, 0, 1, 1], [], []>} : vector<8x6xf32>, vector<6x32xf32>, vector<8x32xf32> -> vector<8x32xf32>
    %1093 = tpu.reciprocal %1091 {approx = true} : vector<8x1xf32> -> vector<8x1xf32>
    %1094 = vector.broadcast %1093 : vector<8x1xf32> to vector<8x32xf32>
    %1095 = arith.mulf %1092, %1094 : vector<8x32xf32>
    %1096 = arith.mulf %493, %1095 : vector<8x32xf32>
    %cst_188 = arith.constant dense<0.000000e+00> : vector<8x4xf32>
    %1097 = tpu.matmul %1096, %994, %cst_188 {dimension_numbers = #tpu.dot_dimension_numbers<[1], [1], [0], [0], [0, 0, 1, 0], [], []>} : vector<8x32xf32>, vector<4x32xf32>, vector<8x4xf32> -> vector<8x4xf32>
    %cst_189 = arith.constant dense<0.000000e+00> : vector<8x4xf32>
    %1098 = tpu.matmul %990, %994, %cst_189 {dimension_numbers = #tpu.dot_dimension_numbers<[1], [1], [0], [0], [0, 0, 1, 0], [], []>} : vector<8x32xf32>, vector<4x32xf32>, vector<8x4xf32> -> vector<8x4xf32>
    %1099 = arith.mulf %1095, %1095 : vector<8x32xf32>
    %cst_190 = arith.constant dense<0.000000e+00> : vector<8x4xf32>
    %1100 = tpu.matmul %1099, %994, %cst_190 {dimension_numbers = #tpu.dot_dimension_numbers<[1], [1], [0], [0], [0, 0, 1, 0], [], []>} : vector<8x32xf32>, vector<4x32xf32>, vector<8x4xf32> -> vector<8x4xf32>
    %1101 = arith.mulf %1098, %1100 : vector<8x4xf32>
    %cst_191 = arith.constant 1.000000e-16 : f32
    %1102 = vector.broadcast %cst_191 : f32 to vector<8x4xf32>
    %1103 = arith.maximumf %1101, %1102 : vector<8x4xf32>
    %1104 = math.rsqrt %1103 : vector<8x4xf32>
    %1105 = arith.mulf %1097, %1104 : vector<8x4xf32>
    %1106 = tpu.concatenate %886, %1006, %949, %1069, %985, %1105 in 1 : vector<8x4xf32>, vector<8x4xf32>, vector<8x4xf32>, vector<8x4xf32>, vector<8x4xf32>, vector<8x4xf32> -> vector<8x24xf32>
    %c0_192 = arith.constant 0 : index
    %c0_193 = arith.constant 0 : index
    %1107 = vector.load %arg14[%c0_192, %c0_193] : memref<8x24xf32, #tpu.memory_space<vmem>>, vector<8x24xf32>
    tpu.vector_store %arg14[%c0_192, %c0_193], %1106 {strides = array<i32>} : memref<8x24xf32, #tpu.memory_space<vmem>>, vector<8x24xf32>,
    %1108 = tpu.concatenate %492, %493 in 1 : vector<8x32xf32>, vector<8x32xf32> -> vector<8x64xf32>
    %1109 = vector.extract_strided_slice %864 {offsets = [5, 0], sizes = [1, 32], strides = [1, 1]} : vector<6x32xf32> to vector<1x32xf32>
    %1110 = vector.extract_strided_slice %865 {offsets = [5, 0], sizes = [1, 32], strides = [1, 1]} : vector<6x32xf32> to vector<1x32xf32>
    %1111 = tpu.concatenate %1109, %1110 in 1 : vector<1x32xf32>, vector<1x32xf32> -> vector<1x64xf32>
    %1112 = vector.broadcast %1111 : vector<1x64xf32> to vector<8x64xf32>
    %1113 = arith.mulf %1108, %1112 : vector<8x64xf32>
    %cst_194 = arith.constant dense<0.000000e+00> : vector<8xf32>
    %1114 = vector.multi_reduction <add>, %1113, %cst_194 [1] : vector<8x64xf32> to vector<8xf32>
    %1115 = vector.shape_cast %1114 : vector<8xf32> to vector<8x1xf32>
    %cst_195 = arith.constant dense<0xFF800000> : vector<1xf32>
    %1116 = vector.multi_reduction <maximumf>, %1115, %cst_195 [0] : vector<8x1xf32> to vector<1xf32>
    %cst_196 = arith.constant 0xFF800000 : f32
    %1117 = vector.broadcast %cst_196 : f32 to vector<1xf32>
    %1118 = arith.maximumf %1117, %1116 : vector<1xf32>
    %1119 = vector.shape_cast %1118 : vector<1xf32> to vector<1x1xf32>
    %1120 = vector.broadcast %1119 : vector<1x1xf32> to vector<8x1xf32>
    %1121 = arith.subf %1115, %1120 : vector<8x1xf32>
    %1122 = math.exp %1121 : vector<8x1xf32>
    %cst_197 = arith.constant dense<0.000000e+00> : vector<1xf32>
    %1123 = vector.multi_reduction <add>, %1122, %cst_197 [0] : vector<8x1xf32> to vector<1xf32>
    %1124 = vector.shape_cast %1123 : vector<1xf32> to vector<1x1xf32>
    %1125 = vector.broadcast %1124 : vector<1x1xf32> to vector<8x1xf32>
    %1126 = arith.divf %1122, %1125 : vector<8x1xf32>
    %1127 = vector.broadcast %1126 : vector<8x1xf32> to vector<8x64xf32>
    %1128 = arith.mulf %1127, %1108 : vector<8x64xf32>
    %cst_198 = arith.constant dense<0.000000e+00> : vector<64xf32>
    %1129 = vector.multi_reduction <add>, %1128, %cst_198 [0] : vector<8x64xf32> to vector<64xf32>
    %1130 = vector.shape_cast %1129 : vector<64xf32> to vector<1x64xf32>
    %1131 = tpu.concatenate %1130, %1111 in 1 : vector<1x64xf32>, vector<1x64xf32> -> vector<1x128xf32>
    %c0_199 = arith.constant 0 : index
    %c0_200 = arith.constant 0 : index
    %1132 = vector.load %arg11[%c0_199, %c0_200] : memref<128x3xf32, #tpu.memory_space<vmem>>, vector<128x3xf32>
    %cst_201 = arith.constant dense<0.000000e+00> : vector<1x3xf32>
    %1133 = tpu.matmul %1131, %1132, %cst_201 {dimension_numbers = #tpu.dot_dimension_numbers<[1], [0], [0], [1], [0, 0, 1, 1], [], []>} : vector<1x128xf32>, vector<128x3xf32>, vector<1x3xf32> -> vector<1x3xf32>
    %c0_202 = arith.constant 0 : index
    %c0_203 = arith.constant 0 : index
    %1134 = vector.load %arg12[%c0_202, %c0_203] : memref<1x3xf32, #tpu.memory_space<vmem>>, vector<1x3xf32>
    %1135 = arith.addf %1133, %1134 : vector<1x3xf32>
    %cst_204 = arith.constant dense<0xFF800000> : vector<1xf32>
    %1136 = vector.multi_reduction <maximumf>, %1135, %cst_204 [1] : vector<1x3xf32> to vector<1xf32>
    %cst_205 = arith.constant 0xFF800000 : f32
    %1137 = vector.broadcast %cst_205 : f32 to vector<1xf32>
    %1138 = arith.maximumf %1137, %1136 : vector<1xf32>
    %1139 = vector.shape_cast %1138 : vector<1xf32> to vector<1x1xf32>
    %1140 = vector.broadcast %1139 : vector<1x1xf32> to vector<1x3xf32>
    %1141 = arith.subf %1135, %1140 : vector<1x3xf32>
    %1142 = math.exp %1141 : vector<1x3xf32>
    %cst_206 = arith.constant dense<0.000000e+00> : vector<1xf32>
    %1143 = vector.multi_reduction <add>, %1142, %cst_206 [1] : vector<1x3xf32> to vector<1xf32>
    %1144 = vector.shape_cast %1143 : vector<1xf32> to vector<1x1xf32>
    %1145 = vector.broadcast %1144 : vector<1x1xf32> to vector<1x3xf32>
    %1146 = arith.divf %1142, %1145 : vector<1x3xf32>
    %c0_207 = arith.constant 0 : index
    %c0_208 = arith.constant 0 : index
    %1147 = vector.load %arg13[%c0_207, %c0_208] : memref<1x3xf32, #tpu.memory_space<vmem>>, vector<1x3xf32>
    tpu.vector_store %arg13[%c0_207, %c0_208], %1146 {strides = array<i32>} : memref<1x3xf32, #tpu.memory_space<vmem>>, vector<1x3xf32>,
    return
  }
}

</mosaic_0001>

<bundles_post_ra>
// kernel: tpu_custom_call.1
= control target key start
LH: loop header
LB: loop body
LE: loop exit
PB: predicated region body
PF: predicated region fallthrough
CT: control target
= control target key end

     0   :  { %20 = vsyncpa [#allocation3], 0  ;;  %s7397_s0 = inlined_call_operand.vmem [shape: f32[8,32], index: 0, kind: input, shape index: {}]   ;;  %s7398_s1 = inlined_call_operand.hbm [shape: f32[6,32], index: 1, kind: input, shape index: {}]   ;;  %s7399_s2 = inlined_call_operand.hbm [shape: f32[32,256], index: 2, kind: input, shape index: {}]   ;;  %s7400_s3 = inlined_call_operand.vmem [shape: f32[64,256], index: 3, kind: input, shape index: {}]   ;;  %s7401_s4 = inlined_call_operand.hbm [shape: f32[32,256], index: 4, kind: input, shape index: {}]   ;;  %s7402_s5 = inlined_call_operand.hbm [shape: f32[64,256], index: 5, kind: input, shape index: {}]   ;;  %s7403_s6 = inlined_call_operand.vmem [shape: f32[4,32], index: 6, kind: input, shape index: {}]   ;;  %s7404_s7 = inlined_call_operand.vmem [shape: f32[4,32], index: 7, kind: input, shape index: {}]   ;;  %s7405_s8 = inlined_call_operand.hbm [shape: f32[4,32], index: 8, kind: input, shape index: {}]   ;;  %s7406_s9 = inlined_call_operand.vmem [shape: f32[4,32], index: 9, kind: input, shape index: {}]   ;;  %s7407_s10 = inlined_call_operand.hbm [shape: f32[4,32], index: 10, kind: input, shape index: {}]   ;;  %s7408_s11 = inlined_call_operand.vmem [shape: f32[128,3], index: 11, kind: input, shape index: {}]   ;;  %s7409_s12 = inlined_call_operand.vmem [shape: f32[1,3], index: 12, kind: input, shape index: {}]   ;;  %s7410_s13 = inlined_call_operand.hbm [shape: f32[1,3], index: 13, kind: output, shape index: {0}]   ;;  %s7411_s14 = inlined_call_operand.hbm [shape: f32[8,24], index: 14, kind: output, shape index: {1}]  }
   0x1   :  { %21 = vsyncpa [#allocation6], 0 }
   0x2   :  { %22 = vsyncpa [#allocation9], 0 }
   0x3   :  { %23 = vsyncpa [#allocation12], 0 }
   0x4   :  { %24 = vsyncpa [#allocation4], 0 }
   0x5   :  { %25 = vsyncpa [#allocation15], 0  ;;  %s6052_s29 = smov [#allocation5]  }
   0x6   :  { %s43_s30 = sshll.u32 %s6052_s29, 4  ;;  %s44_s30 = int_to_ptr.vmem [resolvable:$true] %s43_s30 }
   0x7   :  { %s5888_s15 = scalar_lea.vmem %s44_s30, 1024  ;;  %p5893_p1 = scmp.lt.s32.totalorder %s44_s30, %s44_s30 }
   0x8   :  { %p5889_p0 = scmp.ne.s32.totalorder %s44_s30, %s5888_s15  ;;  %p5894_p2 = scmp.lt.s32.totalorder %s5888_s15, %s5888_s15 }
   0xa   :  { %p5895_p3 = por %p5894_p2, %p5893_p1 }
   0xc   :  { %p5896_p4 = pnand %p5895_p3, %p5889_p0 }
   0xe   :  { %5899 = shalt.err (!%p5896_p4)
}
   0xf   :  { %s6053_s16 = smov 256   ;;  %s6054_s17 = smov 16  }
  0x10   :  { %49 = dma.hbm_to_vmem [thread:$0]  %s7399_s2, 1024, %s44_s30, [#allocation6], %s6053_s16, %s6053_s16, %s6054_s17  }
  0x11   :  { %s6055_s20 = smov [#allocation8]   ;;  %s6056_s22 = smov [#allocation2]  }
  0x12   :  { %s69_s21 = sshll.u32 %s6055_s20, 4  ;;  %s34_s23 = sshll.u32 %s6056_s22, 4  ;;  %s70_s21 = int_to_ptr.vmem [resolvable:$true] %s69_s21  ;;  %s35_s23 = int_to_ptr.vmem [resolvable:$true] %s34_s23 }
  0x13   :  { %s5908_s24 = scalar_lea.vmem %s70_s21, 2048  ;;  %p5913_p6 = scmp.lt.s32.totalorder %s70_s21, %s70_s21 }
  0x14   :  { %p5909_p5 = scmp.ne.s32.totalorder %s70_s21, %s5908_s24  ;;  %p5914_p7 = scmp.lt.s32.totalorder %s5908_s24, %s5908_s24 }
  0x16   :  { %p5915_p8 = por %p5914_p7, %p5913_p6 }
  0x18   :  { %p5916_p9 = pnand %p5915_p8, %p5909_p5 }
  0x1a   :  { %5919 = shalt.err (!%p5916_p9)
}
  0x1b   :  { %75 = dma.hbm_to_vmem [thread:$0]  %s7402_s5, 2048, %s70_s21, [#allocation9], %s6053_s16, %s6053_s16, %s6054_s17  }
  0x1c   :  { %s5928_s2 = scalar_lea.vmem %s35_s23, 128  ;;  %p5933_p11 = scmp.lt.s32.totalorder %s35_s23, %s35_s23 }
  0x1d   :  { %p5929_p10 = scmp.ne.s32.totalorder %s35_s23, %s5928_s2  ;;  %p5934_p12 = scmp.lt.s32.totalorder %s5928_s2, %s5928_s2 }
  0x1f   :  { %p5935_p13 = por %p5934_p12, %p5933_p11 }
  0x21   :  { %p5936_p0 = pnand %p5935_p13, %p5929_p10 }
  0x23   :  { %5939 = shalt.err (!%p5936_p0)
}
  0x24   :  { %37 = dma.hbm_to_vmem [thread:$0]  %s7398_s1, 128, %s35_s23, [#allocation3]  }
  0x25   :  { %s6057_s29 = smov [#allocation7]   ;;  %s6058_s15 = smov [#allocation10]  }
  0x26   :  { %s57_s30 = sshll.u32 %s6057_s29, 4  ;;  %s86_s18 = sshll.u32 %s6058_s15, 4  ;;  %s58_s30 = int_to_ptr.vmem [resolvable:$true] %s57_s30  ;;  %s87_s18 = int_to_ptr.vmem [resolvable:$true] %s86_s18 }
  0x27   :  { %s5948_s19 = scalar_lea.vmem %s58_s30, 1024  ;;  %p5953_p2 = scmp.lt.s32.totalorder %s58_s30, %s58_s30 }
  0x28   :  { %p5949_p1 = scmp.ne.s32.totalorder %s58_s30, %s5948_s19  ;;  %p5954_p3 = scmp.lt.s32.totalorder %s5948_s19, %s5948_s19 }
  0x2a   :  { %p5955_p4 = por %p5954_p3, %p5953_p2 }
  0x2c   :  { %p5956_p5 = pnand %p5955_p4, %p5949_p1 }
  0x2e   :  { %5959 = shalt.err (!%p5956_p5)
}
  0x2f   :  { %63 = dma.hbm_to_vmem [thread:$0]  %s7401_s4, 1024, %s58_s30, [#allocation6], %s6053_s16, %s6053_s16, %s6054_s17  }
  0x30   :  { %s5968_s1 = scalar_lea.vmem %s87_s18, 64  ;;  %p5973_p7 = scmp.lt.s32.totalorder %s87_s18, %s87_s18 }
  0x31   :  { %p5969_p6 = scmp.ne.s32.totalorder %s87_s18, %s5968_s1  ;;  %p5974_p8 = scmp.lt.s32.totalorder %s5968_s1, %s5968_s1 }
  0x33   :  { %p5975_p9 = por %p5974_p8, %p5973_p7 }
  0x35   :  { %p5976_p10 = pnand %p5975_p9, %p5969_p6 }
  0x37   :  { %5979 = shalt.err (!%p5976_p10)
}
  0x38   :  { %89 = dma.hbm_to_vmem [thread:$0]  %s7405_s8, 64, %s87_s18, [#allocation9]  }
  0x39   :  { %s6059_s23 = smov [#allocation11]  }
  0x3a   :  { %s98_s24 = sshll.u32 %s6059_s23, 4  ;;  %s99_s24 = int_to_ptr.vmem [resolvable:$true] %s98_s24 }
  0x3b   :  { %s5988_s25 = scalar_lea.vmem %s99_s24, 64  ;;  %p5993_p12 = scmp.lt.s32.totalorder %s99_s24, %s99_s24 }
  0x3c   :  { %p5989_p11 = scmp.ne.s32.totalorder %s99_s24, %s5988_s25  ;;  %p5994_p13 = scmp.lt.s32.totalorder %s5988_s25, %s5988_s25 }
  0x3e   :  { %p5995_p0 = por %p5994_p13, %p5993_p12 }
  0x40   :  { %p5996_p1 = pnand %p5995_p0, %p5989_p11 }
  0x42   :  { %5999 = shalt.err (!%p5996_p1)
}
  0x43   :  { %101 = dma.hbm_to_vmem [thread:$0]  %s7407_s10, 64, %s99_s24, [#allocation12]  }
  0x44   :  { %6040 = dma.done.wait [#allocation3], 128  }
  0x45   :  { %6041 = vsyncadd [#allocation3], 4294967168 }
  0x46   :  { %6042 = dma.done.wait [#allocation6], 2048  }
  0x47   :  { %6043 = vsyncadd [#allocation6], 4294965248 }
  0x48   :  { %6044 = dma.done.wait [#allocation9], 2112  }
  0x49   :  { %6045 = vsyncadd [#allocation9], 4294965184 }
  0x4a   :  { %6046 = dma.done.wait [#allocation12], 64  }
  0x4b   :  { %6047 = vsyncadd [#allocation12], 4294967232  ;;  %v6060_v0 = vmov 0.0   ;;  %v6184_v1 = vld [vmem:[%s7400_s3 + $0x78] sm:$0xff]  ;;  %v6189_v2 = vld [vmem:[%s7400_s3 + $0x70] sm:$0xff]  ;;  %vm149_vm0 = vcmask 261120  }
  0x4c   :  { %217 = vmatprep.mubr.f32.mxu0 %v6060_v0  ;;  %295 = vmatprep.mubr.f32.mxu1 %v6060_v0  ;;  %v6194_v3 = vld [vmem:[%s7400_s3 + $0x68] sm:$0xff]  ;;  %v6200_v4 = vld [vmem:[%s7400_s3 + $0x60] sm:$0xff]  ;;  %v6206_v5 = vld [vmem:[%s7400_s3 + $0x58] sm:$0xff]  ;;  %s6062_s20 = smov 32   ;;  %s6063_s1 = smov 96   ;;  %vm227_vm1 = vcmask 523264  }
  0x4d   :  { %247 = vmatprep.subr.mxu1 %v6184_v1  ;;  %v132_v6 = vld [vmem:[#allocation5 + $0x38] sm:$0xff]  ;;  %v131_v7 = vld [vmem:[#allocation5 + $0x30] sm:$0xff]  ;;  %v6212_v8 = vld [vmem:[%s7400_s3 + $0x50] sm:$0xff]  ;;  %vm1414_vm2 = vcmask 1040384   ;;  %vm1416_vm3 = vcmask 1041408   ;;  %vm1418_vm4 = vcmask 1042432  }
  0x4e   :  { %248 = vmatpush1.msra.mxu1 %v6189_v2  ;;  %177 = vmatprep.subr.mxu0 %v132_v6  ;;  %v130_v9 = vld [vmem:[#allocation5 + $0x28] sm:$0xff]  ;;  %v6218_v10 = vld [vmem:[%s7400_s3 + $0x48] sm:$0xff]  ;;  %v128_v12 = vld [vmem:[#allocation5 + $0x18] sm:$0xff]  ;;  %vm1420_vm5 = vcmask 1043456   ;;  %vm1422_vm6 = vcmask 1044480   ;;  %vm1424_vm7 = vcmask 1045504  }
  0x4f   :  { %249 = vmatprep.subr.mxu1 %v6194_v3  ;;  %178 = vmatpush1.msra.mxu0 %v131_v7  ;;  %v129_v11 = vld [vmem:[#allocation5 + $0x20] sm:$0xff]  ;;  %v6224_v13 = vld [vmem:[%s7400_s3 + $0x40] sm:$0xff]  ;;  %v127_v14 = vld [vmem:[#allocation5 + $0x10] sm:$0xff]  ;;  %vm6064_vm8 = vmmov 0   ;;  %vm1426_vm9 = vcmask 1046528   ;;  %vm2957_vm10 = vcmask 48128  }
  0x50   :  { %250 = vmatpush1.msra.mxu1 %v6200_v4  ;;  %179 = vmatprep.subr.mxu0 %v130_v9  ;;  %v6230_v15 = vld [vmem:[%s7400_s3 + $0x38] sm:$0xff]  ;;  %v126_v16 = vld [vmem:[#allocation5 + $0x8] sm:$0xff]  ;;  %v125_v18 = vld [vmem:[#allocation5] sm:$0xff]  ;;  %vm5173_vm15 = vcmask 16384   ;;  %s6073_s27 = smov 12   ;;  %s6074_s28 = smov 20  }
  0x51   :  { %251 = vmatprep.subr.mxu1 %v6206_v5  ;;  %180 = vmatpush1.msra.mxu0 %v129_v11  ;;  %v6236_v17 = vld [vmem:[%s7400_s3 + $0x30] sm:$0xff]  ;;  %v6242_v19 = vld [vmem:[%s7400_s3 + $0x28] sm:$0xff]  ;;  %v124_v20 = vld [vmem:[%s7397_s0] sm:$0xff] }
  0x52   :  { %252 = vmatpush1.msra.mxu1 %v6212_v8  ;;  %181 = vmatprep.subr.mxu0 %v128_v12  ;;  %v6251_v21 = vld [vmem:[%s7400_s3 + $0x20] sm:$0xff]  ;;  %v6257_v22 = vld [vmem:[%s7400_s3 + $0x18] sm:$0xff]  ;;  %v6263_v23 = vld [vmem:[%s7400_s3 + $0x10] sm:$0xff] }
  0x53   :  { %253 = vmatprep.subr.mxu1 %v6218_v10  ;;  %182 = vmatpush1.msra.mxu0 %v127_v14  ;;  %v6270_v24 = vld [vmem:[%s7400_s3 + $0x8] sm:$0xff]  ;;  %v6277_v25 = vld [vmem:[%s7400_s3] sm:$0xff]  ;;  %s6061_s3 = smov 64  }
  0x54   :  { %254 = vmatpush1.msra.mxu1 %v6224_v13  ;;  %183 = vmatprep.subr.mxu0 %v126_v16 }
  0x55   :  { %255 = vmatprep.subr.mxu1 %v6230_v15  ;;  %184 = vmatpush1.msra.mxu0 %v125_v18 }
  0x56   :  { %256 = vmatpush1.msra.mxu1 %v6236_v17  ;;  %5218 = vmatmul.mubr.msk.f32.vlgmr.msra.gmra.mxu0 %vm149_vm0, %v124_v20 }
  0x57   :  { %257 = vmatprep.subr.mxu1 %v6242_v19  ;;  %693 = vmatprep.subr.mxu0 %v6184_v1 }
  0x58   :  { %258 = vmatpush1.msra.mxu1 %v6251_v21  ;;  %694 = vmatpush1.msra.mxu0 %v6189_v2 }
  0x59   :  { %259 = vmatprep.subr.mxu1 %v6257_v22  ;;  %695 = vmatprep.subr.mxu0 %v6194_v3 }
  0x5a   :  { %260 = vmatpush1.msra.mxu1 %v6263_v23  ;;  %696 = vmatpush1.msra.mxu0 %v6200_v4 }
  0x5b   :  { %261 = vmatprep.subr.mxu1 %v6270_v24  ;;  %697 = vmatprep.subr.mxu0 %v6206_v5 }
  0x5c   :  { %262 = vmatpush1.msra.mxu1 %v6277_v25  ;;  %698 = vmatpush1.msra.mxu0 %v6212_v8 }
  0x5d   :  { %296 = vmatmul.mubr.f32.vlgmr.msra.gmra.mxu1 %v6060_v0  ;;  %387 = vmatprep.subr.mxu1 %v6184_v1 }
  0x5e   :  { %388 = vmatpush1.msra.mxu1 %v6189_v2  ;;  %435 = vmatprep.mubr.f32.mxu1 %v6060_v0 }
  0x5f   :  { %389 = vmatprep.subr.mxu1 %v6194_v3  ;;  %699 = vmatprep.subr.mxu0 %v6218_v10 }
  0x60   :  { %390 = vmatpush1.msra.mxu1 %v6200_v4  ;;  %700 = vmatpush1.msra.mxu0 %v6224_v13 }
  0x61   :  { %391 = vmatprep.subr.mxu1 %v6206_v5  ;;  %701 = vmatprep.subr.mxu0 %v6230_v15 }
  0x62   :  { %392 = vmatpush1.msra.mxu1 %v6212_v8  ;;  %702 = vmatpush1.msra.mxu0 %v6236_v17 }
  0x63   :  { %393 = vmatprep.subr.mxu1 %v6218_v10  ;;  %703 = vmatprep.subr.mxu0 %v6242_v19 }
  0x64   :  { %394 = vmatpush1.msra.mxu1 %v6224_v13  ;;  %704 = vmatpush1.msra.mxu0 %v6251_v21 }
  0x65   :  { %395 = vmatprep.subr.mxu1 %v6230_v15  ;;  %705 = vmatprep.subr.mxu0 %v6257_v22 }
  0x66   :  { %396 = vmatpush1.msra.mxu1 %v6236_v17  ;;  %706 = vmatpush1.msra.mxu0 %v6263_v23 }
  0x67   :  { %397 = vmatprep.subr.mxu1 %v6242_v19  ;;  %707 = vmatprep.subr.mxu0 %v6270_v24 }
  0x68   :  { %398 = vmatpush1.msra.mxu1 %v6251_v21  ;;  %708 = vmatpush1.msra.mxu0 %v6277_v25 }
  0x69   :  { %399 = vmatprep.subr.mxu1 %v6257_v22  ;;  %741 = vmatprep.mubr.f32.mxu0 %v6060_v0 }
  0x6a   :  { %400 = vmatpush1.msra.mxu1 %v6263_v23  ;;  %995 = vmatprep.subr.mxu0 %v6184_v1 }
  0x6b   :  { %401 = vmatprep.subr.mxu1 %v6270_v24 }
  0x6c   :  { %402 = vmatpush1.msra.mxu1 %v6277_v25 }
  0x6d   :  { %540 = vmatprep.subr.mxu1 %v6184_v1 }
 0x116   :  { %v6318_v26 = vpop.f32.mrf.mxu0 }
 0x118   :  { %v6320_v27 = vpop.f32.mrf.mxu0 }
 0x119   :  { %v225_v28 = vrot.slane %v6320_v27, 7  ;;  %v366_v9 = vrot.slane %v6320_v27, 5 }
 0x11d   :  { %v297_v29 = vpop.f32.mrf.mxu1 }
 0x11e   :  { %v302_v30 = vadd.f32 %v297_v29, %v6318_v26 }
 0x11f   :  { %v299_v31 = vpop.f32.mrf.mxu1 }
 0x120   :  { %5616 = vtanh.f32 %v302_v30  ;;  %v303_v32 = vadd.f32 %v299_v31, %v225_v28  ;;  %v5219_v35 = vmul.f32 -1.442695, %v302_v30 }
 0x122   :  { %5618 = vtanh.f32 %v303_v32  ;;  %v5220_v36 = vmul.f32 -1.442695, %v303_v32 }
 0x123   :  { %5620 = vpow2.f32 %v5219_v35 }
 0x124   :  { %5622 = vpow2.f32 %v5220_v36 }
 0x12d   :  { %v5617_v33 = vpop.eup %5616 }
 0x12e   :  { %313 = vrot.lane.b32.xlu0 %v5617_v33, %s6061_s3 }
 0x12f   :  { %v5619_v34 = vpop.eup %5618 }
 0x130   :  { %v5621_v37 = vpop.eup %5620 }
 0x131   :  { %v307_v38 = vadd.f32 1.0, %v5621_v37  ;;  %v5623_v39 = vpop.eup %5622 }
 0x132   :  { %337 = vrot.lane.b32.xlu0 %v5619_v34, %s6061_s3  ;;  %v331_v40 = vadd.f32 1.0, %v5623_v39 }
 0x133   :  { %5624 = vrcp.f32 %v307_v38 }
 0x134   :  { %5626 = vrcp.f32 %v331_v40 }
 0x140   :  { %v5625_v41 = vpop.eup %5624 }
 0x141   :  { %v5627_v44 = vpop.eup %5626  ;;  %v311_v47 = vmul.f32 0.0, %v5625_v41 }
 0x142   :  { %v335_v50 = vmul.f32 0.0, %v5627_v44 }
 0x1a0   :  { %v314_v42 = vpop.permute.xlu0 %313 }
 0x1a1   :  { %v316_v43 = vmul.f32 %v5625_v41, %v314_v42 }
 0x1a3   :  { %318 = vrot.lane.b32.xlu1 %v316_v43, %s6062_s20 }
 0x1a4   :  { %v338_v45 = vpop.permute.xlu0 %337 }
 0x1a5   :  { %v340_v46 = vmul.f32 %v5627_v44, %v338_v45 }
 0x1a7   :  { %342 = vrot.lane.b32.xlu1 %v340_v46, %s6062_s20 }
 0x215   :  { %v319_v48 = vpop.permute.xlu1 %318 }
 0x216   :  { %v321_v49 = vadd.f32 %v319_v48, %v311_v47 }
 0x218   :  { %5628 = vtanh.f32 %v321_v49 }
 0x219   :  { %v343_v51 = vpop.permute.xlu1 %342 }
 0x21a   :  { %v345_v52 = vadd.f32 %v343_v51, %v335_v50 }
 0x21c   :  { %5630 = vtanh.f32 %v345_v52 }
 0x225   :  { %v5629_v53 = vpop.eup %5628 }
 0x226   :  { %324 = vrot.lane.b32.xlu0 %v5629_v53, %s6061_s3 }
 0x229   :  { %v5631_v54 = vpop.eup %5630 }
 0x22a   :  { %348 = vrot.lane.b32.xlu1 %v5631_v54, %s6061_s3 }
 0x298   :  { %v325_v55 = vpop.permute.xlu0 %324 }
 0x299   :  { %v6332_v56 = vmul.f32 %v5625_v41, %v325_v55 }
 0x29b   :  { %353 = vrot.lane.b32.xlu0 %v6332_v56, %s6062_s20 }
 0x29c   :  { %v349_v57 = vpop.permute.xlu1 %348 }
 0x29d   :  { %v6336_v58 = vmul.f32 %v5627_v44, %v349_v57 }
 0x29f   :  { %362 = vrot.lane.b32.xlu0 %v321_v49, %s6063_s1  ;;  %357 = vrot.lane.b32.xlu1 %v6336_v58, %s6061_s3 }
 0x30d   :  { %v354_v59 = vpop.permute.xlu0 %353 }
 0x311   :  { %v358_v60 = vpop.permute.xlu1 %357  ;;  %v363_v14 = vpop.permute.xlu0 %362 }
 0x312   :  { %v360_v61 = vsel %vm149_vm0, %v354_v59, %v358_v60  ;;  %v365_v18 = vsel %vm149_vm0, %v363_v14, %v345_v52 }
 0x313   :  { %5221 = vmatmul.mubr.msk.f32.vlgmr.msra.gmra.mxu1 %vm227_vm1, %v360_v61  ;;  %v458_v29 = vrot.slane %v365_v18, 7 }
 0x314   :  { %541 = vmatpush1.msra.mxu1 %v6189_v2  ;;  %588 = vmatprep.mubr.f32.mxu1 %v6060_v0 }
 0x315   :  { %542 = vmatprep.subr.mxu1 %v6194_v3 }
 0x316   :  { %543 = vmatpush1.msra.mxu1 %v6200_v4 }
 0x317   :  { %544 = vmatprep.subr.mxu1 %v6206_v5 }
 0x318   :  { %545 = vmatpush1.msra.mxu1 %v6212_v8 }
 0x319   :  { %546 = vmatprep.subr.mxu1 %v6218_v10 }
 0x31a   :  { %547 = vmatpush1.msra.mxu1 %v6224_v13 }
 0x31b   :  { %548 = vmatprep.subr.mxu1 %v6230_v15 }
 0x31c   :  { %549 = vmatpush1.msra.mxu1 %v6236_v17 }
 0x31d   :  { %550 = vmatprep.subr.mxu1 %v6242_v19 }
 0x31e   :  { %551 = vmatpush1.msra.mxu1 %v6251_v21 }
 0x31f   :  { %552 = vmatprep.subr.mxu1 %v6257_v22 }
 0x320   :  { %553 = vmatpush1.msra.mxu1 %v6263_v23 }
 0x321   :  { %554 = vmatprep.subr.mxu1 %v6270_v24 }
 0x322   :  { %555 = vmatpush1.msra.mxu1 %v6277_v25 }
 0x323   :  { %844 = vmatprep.subr.mxu1 %v6184_v1 }
 0x3d3   :  { %v437_v62 = vpop.f32.mrf.mxu1 }
 0x3d4   :  { %v444_v63 = vrot.slane %v437_v62, 7 }
 0x3d5   :  { %v439_v6 = vpop.f32.mrf.mxu1 }
 0x3d6   :  { %v448_v7 = vadd.f32 %v444_v63, %v6318_v26  ;;  %v445_v11 = vrot.slane %v439_v6, 7 }
 0x3d8   :  { %5632 = vtanh.f32 %v448_v7  ;;  %v449_v12 = vadd.f32 %v445_v11, %v366_v9  ;;  %v5222_v30 = vmul.f32 -1.442695, %v448_v7  ;;  %v518_v7 = vrot.slane %v6320_v27, 3 }
 0x3da   :  { %5634 = vtanh.f32 %v449_v12  ;;  %v5223_v31 = vmul.f32 -1.442695, %v449_v12 }
 0x3db   :  { %5636 = vpow2.f32 %v5222_v30 }
 0x3dc   :  { %5638 = vpow2.f32 %v5223_v31 }
 0x3e5   :  { %v5633_v16 = vpop.eup %5632 }
 0x3e6   :  { %464 = vrot.lane.b32.xlu1 %v5633_v16, %s6061_s3 }
 0x3e7   :  { %v5635_v20 = vpop.eup %5634 }
 0x3e8   :  { %489 = vrot.lane.b32.xlu0 %v5635_v20, %s6061_s3  ;;  %v5637_v32 = vpop.eup %5636 }
 0x3e9   :  { %v5639_v33 = vpop.eup %5638  ;;  %v453_v34 = vadd.f32 1.0, %v5637_v32 }
 0x3ea   :  { %459 = vrot.lane.b32.xlu1 %v458_v29, %s6062_s20  ;;  %v482_v35 = vadd.f32 1.0, %v5639_v33 }
 0x3eb   :  { %5640 = vrcp.f32 %v453_v34 }
 0x3ec   :  { %5642 = vrcp.f32 %v482_v35 }
 0x3f8   :  { %v5641_v36 = vpop.eup %5640 }
 0x3f9   :  { %v5643_v39 = vpop.eup %5642 }
 0x3fa   :  { %v487_v46 = vmul.f32 %v5643_v39, %v458_v29 }
 0x458   :  { %v465_v37 = vpop.permute.xlu1 %464 }
 0x459   :  { %v467_v38 = vmul.f32 %v5641_v36, %v465_v37 }
 0x45a   :  { %v490_v40 = vpop.permute.xlu0 %489 }
 0x45b   :  { %469 = vrot.lane.b32.xlu0 %v467_v38, %s6062_s20  ;;  %v492_v41 = vmul.f32 %v5643_v39, %v490_v40 }
 0x45c   :  { %v460_v42 = vpop.permute.xlu1 %459 }
 0x45d   :  { %494 = vrot.lane.b32.xlu1 %v492_v41, %s6062_s20  ;;  %v462_v43 = vmul.f32 %v5641_v36, %v460_v42 }
 0x4cd   :  { %v470_v44 = vpop.permute.xlu0 %469 }
 0x4ce   :  { %v472_v45 = vadd.f32 %v470_v44, %v462_v43 }
 0x4cf   :  { %v495_v47 = vpop.permute.xlu1 %494 }
 0x4d0   :  { %5644 = vtanh.f32 %v472_v45  ;;  %v497_v48 = vadd.f32 %v495_v47, %v487_v46 }
 0x4d2   :  { %5646 = vtanh.f32 %v497_v48 }
 0x4dd   :  { %v5645_v49 = vpop.eup %5644 }
 0x4de   :  { %475 = vrot.lane.b32.xlu0 %v5645_v49, %s6061_s3 }
 0x4df   :  { %v5647_v50 = vpop.eup %5646 }
 0x4e0   :  { %500 = vrot.lane.b32.xlu1 %v5647_v50, %s6061_s3 }
 0x550   :  { %v476_v51 = vpop.permute.xlu0 %475 }
 0x551   :  { %v6372_v52 = vmul.f32 %v5641_v36, %v476_v51 }
 0x552   :  { %v501_v53 = vpop.permute.xlu1 %500 }
 0x553   :  { %505 = vrot.lane.b32.xlu0 %v6372_v52, %s6062_s20  ;;  %v6376_v54 = vmul.f32 %v5643_v39, %v501_v53 }
 0x555   :  { %509 = vrot.lane.b32.xlu1 %v6376_v54, %s6061_s3 }
 0x557   :  { %514 = vrot.lane.b32.xlu0 %v472_v45, %s6063_s1 }
 0x5c5   :  { %v506_v55 = vpop.permute.xlu0 %505 }
 0x5c7   :  { %v510_v57 = vpop.permute.xlu1 %509 }
 0x5c8   :  { %v512_v59 = vsel %vm149_vm0, %v506_v55, %v510_v57  ;;  %v1415_v55 = vsel %vm1414_vm2, %v6332_v56, %v6372_v52 }
 0x5c9   :  { %v521_v60 = vrot.slane %v512_v59, 1  ;;  %v515_v14 = vpop.permute.xlu0 %514 }
 0x5ca   :  { %v517_v18 = vsel %vm149_vm0, %v515_v14, %v497_v48  ;;  %v671_v14 = vrot.slane %v6320_v27, 1 }
 0x5cb   :  { %5224 = vmatmul.mubr.msk.f32.vlgmr.msra.gmra.mxu1 %vm227_vm1, %v521_v60  ;;  %v611_v29 = vrot.slane %v517_v18, 7 }
 0x5cc   :  { %845 = vmatpush1.msra.mxu1 %v6189_v2  ;;  %892 = vmatprep.mubr.f32.mxu1 %v6060_v0 }
 0x5cd   :  { %846 = vmatprep.subr.mxu1 %v6194_v3 }
 0x5ce   :  { %847 = vmatpush1.msra.mxu1 %v6200_v4 }
 0x5cf   :  { %848 = vmatprep.subr.mxu1 %v6206_v5 }
 0x5d0   :  { %849 = vmatpush1.msra.mxu1 %v6212_v8 }
 0x5d1   :  { %850 = vmatprep.subr.mxu1 %v6218_v10 }
 0x5d2   :  { %851 = vmatpush1.msra.mxu1 %v6224_v13 }
 0x5d3   :  { %852 = vmatprep.subr.mxu1 %v6230_v15 }
 0x5d4   :  { %853 = vmatpush1.msra.mxu1 %v6236_v17 }
 0x5d5   :  { %854 = vmatprep.subr.mxu1 %v6242_v19 }
 0x5d6   :  { %855 = vmatpush1.msra.mxu1 %v6251_v21 }
 0x5d7   :  { %856 = vmatprep.subr.mxu1 %v6257_v22 }
 0x5d8   :  { %857 = vmatpush1.msra.mxu1 %v6263_v23 }
 0x5d9   :  { %858 = vmatprep.subr.mxu1 %v6270_v24 }
 0x5da   :  { %859 = vmatpush1.msra.mxu1 %v6277_v25 }
 0x5db   :  { %1146 = vmatprep.subr.mxu1 %v6184_v1 }
 0x68b   :  { %v590_v61 = vpop.f32.mrf.mxu1 }
 0x68c   :  { %v597_v62 = vrot.slane %v590_v61, 6 }
 0x68d   :  { %v592_v63 = vpop.f32.mrf.mxu1 }
 0x68e   :  { %v601_v6 = vadd.f32 %v597_v62, %v6318_v26  ;;  %v598_v11 = vrot.slane %v592_v63, 6 }
 0x690   :  { %5648 = vtanh.f32 %v601_v6  ;;  %v602_v12 = vadd.f32 %v598_v11, %v518_v7  ;;  %v5225_v30 = vmul.f32 -1.442695, %v601_v6 }
 0x692   :  { %5650 = vtanh.f32 %v602_v12  ;;  %v5226_v31 = vmul.f32 -1.442695, %v602_v12 }
 0x693   :  { %5652 = vpow2.f32 %v5225_v30 }
 0x694   :  { %5654 = vpow2.f32 %v5226_v31 }
 0x69d   :  { %v5649_v16 = vpop.eup %5648 }
 0x69e   :  { %617 = vrot.lane.b32.xlu1 %v5649_v16, %s6061_s3 }
 0x69f   :  { %v5651_v20 = vpop.eup %5650 }
 0x6a0   :  { %642 = vrot.lane.b32.xlu0 %v5651_v20, %s6061_s3  ;;  %v5653_v32 = vpop.eup %5652 }
 0x6a1   :  { %v5655_v33 = vpop.eup %5654  ;;  %v606_v34 = vadd.f32 1.0, %v5653_v32 }
 0x6a2   :  { %612 = vrot.lane.b32.xlu1 %v611_v29, %s6062_s20  ;;  %v635_v35 = vadd.f32 1.0, %v5655_v33 }
 0x6a3   :  { %5656 = vrcp.f32 %v606_v34 }
 0x6a4   :  { %5658 = vrcp.f32 %v635_v35 }
 0x6b0   :  { %v5657_v36 = vpop.eup %5656 }
 0x6b1   :  { %v5659_v39 = vpop.eup %5658 }
 0x6b2   :  { %v640_v46 = vmul.f32 %v5659_v39, %v611_v29 }
 0x710   :  { %v618_v37 = vpop.permute.xlu1 %617 }
 0x711   :  { %v620_v38 = vmul.f32 %v5657_v36, %v618_v37 }
 0x712   :  { %v643_v40 = vpop.permute.xlu0 %642 }
 0x713   :  { %622 = vrot.lane.b32.xlu0 %v620_v38, %s6062_s20  ;;  %v645_v41 = vmul.f32 %v5659_v39, %v643_v40 }
 0x714   :  { %v613_v42 = vpop.permute.xlu1 %612 }
 0x715   :  { %647 = vrot.lane.b32.xlu1 %v645_v41, %s6062_s20  ;;  %v615_v43 = vmul.f32 %v5657_v36, %v613_v42 }
 0x785   :  { %v623_v44 = vpop.permute.xlu0 %622 }
 0x786   :  { %v625_v45 = vadd.f32 %v623_v44, %v615_v43 }
 0x787   :  { %v648_v47 = vpop.permute.xlu1 %647 }
 0x788   :  { %5660 = vtanh.f32 %v625_v45  ;;  %v650_v48 = vadd.f32 %v648_v47, %v640_v46 }
 0x78a   :  { %5662 = vtanh.f32 %v650_v48 }
 0x795   :  { %v5661_v49 = vpop.eup %5660 }
 0x796   :  { %628 = vrot.lane.b32.xlu0 %v5661_v49, %s6061_s3 }
 0x797   :  { %v5663_v50 = vpop.eup %5662 }
 0x798   :  { %653 = vrot.lane.b32.xlu1 %v5663_v50, %s6061_s3 }
 0x808   :  { %v629_v51 = vpop.permute.xlu0 %628 }
 0x809   :  { %v631_v53 = vmul.f32 %v5657_v36, %v629_v51 }
 0x80a   :  { %v654_v59 = vpop.permute.xlu1 %653 }
 0x80b   :  { %v6416_v57 = vsel %vm1416_vm3, %v1415_v55, %v631_v53  ;;  %658 = vrot.lane.b32.xlu0 %v631_v53, %s6062_s20  ;;  %v6419_v60 = vmul.f32 %v5659_v39, %v654_v59 }
 0x80d   :  { %662 = vrot.lane.b32.xlu1 %v6419_v60, %s6061_s3 }
 0x80f   :  { %667 = vrot.lane.b32.xlu0 %v625_v45, %s6063_s1 }
 0x87d   :  { %v659_v61 = vpop.permute.xlu0 %658 }
 0x87f   :  { %v663_v62 = vpop.permute.xlu1 %662 }
 0x880   :  { %v665_v63 = vsel %vm149_vm0, %v659_v61, %v663_v62 }
 0x881   :  { %v674_v6 = vrot.slane %v665_v63, 2  ;;  %v668_v20 = vpop.permute.xlu0 %667 }
 0x882   :  { %v670_v30 = vsel %vm149_vm0, %v668_v20, %v650_v48 }
 0x883   :  { %5227 = vmatmul.mubr.msk.f32.vlgmr.msra.gmra.mxu0 %vm227_vm1, %v674_v6  ;;  %v764_v31 = vrot.slane %v670_v30, 7 }
 0x884   :  { %996 = vmatpush1.msra.mxu0 %v6189_v2  ;;  %1043 = vmatprep.mubr.f32.mxu0 %v6060_v0 }
 0x885   :  { %997 = vmatprep.subr.mxu0 %v6194_v3 }
 0x886   :  { %998 = vmatpush1.msra.mxu0 %v6200_v4 }
 0x887   :  { %999 = vmatprep.subr.mxu0 %v6206_v5 }
 0x888   :  { %1000 = vmatpush1.msra.mxu0 %v6212_v8 }
 0x889   :  { %1001 = vmatprep.subr.mxu0 %v6218_v10 }
 0x88a   :  { %1002 = vmatpush1.msra.mxu0 %v6224_v13 }
 0x88b   :  { %1003 = vmatprep.subr.mxu0 %v6230_v15 }
 0x88c   :  { %1004 = vmatpush1.msra.mxu0 %v6236_v17 }
 0x88d   :  { %1005 = vmatprep.subr.mxu0 %v6242_v19 }
 0x88e   :  { %1006 = vmatpush1.msra.mxu0 %v6251_v21 }
 0x88f   :  { %1007 = vmatprep.subr.mxu0 %v6257_v22 }
 0x890   :  { %1008 = vmatpush1.msra.mxu0 %v6263_v23 }
 0x891   :  { %1009 = vmatprep.subr.mxu0 %v6270_v24 }
 0x892   :  { %1010 = vmatpush1.msra.mxu0 %v6277_v25 }
 0x893   :  { %1297 = vmatprep.subr.mxu0 %v6184_v1 }
 0x943   :  { %v743_v56 = vpop.f32.mrf.mxu0 }
 0x944   :  { %v750_v52 = vrot.slane %v743_v56, 5 }
 0x945   :  { %v745_v11 = vpop.f32.mrf.mxu0 }
 0x946   :  { %v754_v12 = vadd.f32 %v750_v52, %v6318_v26  ;;  %v751_v16 = vrot.slane %v745_v11, 5 }
 0x948   :  { %5664 = vtanh.f32 %v754_v12  ;;  %v755_v18 = vadd.f32 %v751_v16, %v671_v14  ;;  %v5228_v32 = vmul.f32 -1.442695, %v754_v12 }
 0x94a   :  { %5666 = vtanh.f32 %v755_v18  ;;  %v5229_v33 = vmul.f32 -1.442695, %v755_v18 }
 0x94b   :  { %5668 = vpow2.f32 %v5228_v32 }
 0x94c   :  { %5670 = vpow2.f32 %v5229_v33 }
 0x955   :  { %v5665_v29 = vpop.eup %5664 }
 0x956   :  { %770 = vrot.lane.b32.xlu1 %v5665_v29, %s6061_s3 }
 0x957   :  { %v5667_v1 = vpop.eup %5666 }
 0x958   :  { %795 = vrot.lane.b32.xlu0 %v5667_v1, %s6061_s3  ;;  %v5669_v34 = vpop.eup %5668 }
 0x959   :  { %v5671_v35 = vpop.eup %5670  ;;  %v759_v36 = vadd.f32 1.0, %v5669_v34 }
 0x95a   :  { %765 = vrot.lane.b32.xlu1 %v764_v31, %s6062_s20  ;;  %v788_v37 = vadd.f32 1.0, %v5671_v35 }
 0x95b   :  { %5672 = vrcp.f32 %v759_v36 }
 0x95c   :  { %5674 = vrcp.f32 %v788_v37 }
 0x968   :  { %v5673_v38 = vpop.eup %5672 }
 0x969   :  { %v5675_v41 = vpop.eup %5674 }
 0x96a   :  { %v793_v48 = vmul.f32 %v5675_v41, %v764_v31 }
 0x9c8   :  { %v771_v39 = vpop.permute.xlu1 %770 }
 0x9c9   :  { %v773_v40 = vmul.f32 %v5673_v38, %v771_v39 }
 0x9ca   :  { %v796_v42 = vpop.permute.xlu0 %795 }
 0x9cb   :  { %775 = vrot.lane.b32.xlu0 %v773_v40, %s6062_s20  ;;  %v798_v43 = vmul.f32 %v5675_v41, %v796_v42 }
 0x9cc   :  { %v766_v44 = vpop.permute.xlu1 %765 }
 0x9cd   :  { %800 = vrot.lane.b32.xlu1 %v798_v43, %s6062_s20  ;;  %v768_v45 = vmul.f32 %v5673_v38, %v766_v44 }
 0xa3d   :  { %v776_v46 = vpop.permute.xlu0 %775 }
 0xa3e   :  { %v778_v47 = vadd.f32 %v776_v46, %v768_v45 }
 0xa3f   :  { %v801_v49 = vpop.permute.xlu1 %800 }
 0xa40   :  { %5676 = vtanh.f32 %v778_v47  ;;  %v803_v50 = vadd.f32 %v801_v49, %v793_v48 }
 0xa42   :  { %5678 = vtanh.f32 %v803_v50 }
 0xa4d   :  { %v5677_v51 = vpop.eup %5676 }
 0xa4e   :  { %781 = vrot.lane.b32.xlu0 %v5677_v51, %s6061_s3 }
 0xa4f   :  { %v5679_v53 = vpop.eup %5678 }
 0xa50   :  { %806 = vrot.lane.b32.xlu1 %v5679_v53, %s6061_s3 }
 0xac0   :  { %v782_v55 = vpop.permute.xlu0 %781 }
 0xac1   :  { %v784_v59 = vmul.f32 %v5673_v38, %v782_v55 }
 0xac2   :  { %v807_v62 = vpop.permute.xlu1 %806 }
 0xac3   :  { %v6457_v61 = vsel %vm1418_vm4, %v6416_v57, %v784_v59  ;;  %811 = vrot.lane.b32.xlu0 %v784_v59, %s6062_s20  ;;  %v6460_v63 = vmul.f32 %v5675_v41, %v807_v62 }
 0xac5   :  { %815 = vrot.lane.b32.xlu1 %v6460_v63, %s6061_s3 }
 0xac7   :  { %820 = vrot.lane.b32.xlu0 %v778_v47, %s6063_s1 }
 0xb35   :  { %v812_v6 = vpop.permute.xlu0 %811 }
 0xb37   :  { %v816_v56 = vpop.permute.xlu1 %815 }
 0xb38   :  { %v818_v52 = vsel %vm149_vm0, %v812_v6, %v816_v56 }
 0xb39   :  { %v825_v11 = vrot.slane %v818_v52, 3  ;;  %v821_v30 = vpop.permute.xlu0 %820 }
 0xb3a   :  { %v823_v31 = vsel %vm149_vm0, %v821_v30, %v803_v50 }
 0xb3b   :  { %5230 = vmatmul.mubr.msk.f32.vlgmr.msra.gmra.mxu1 %vm227_vm1, %v825_v11  ;;  %v915_v33 = vrot.slane %v823_v31, 7 }
 0xb3c   :  { %1147 = vmatpush1.msra.mxu1 %v6189_v2  ;;  %1194 = vmatprep.mubr.f32.mxu1 %v6060_v0 }
 0xb3d   :  { %1148 = vmatprep.subr.mxu1 %v6194_v3 }
 0xb3e   :  { %1149 = vmatpush1.msra.mxu1 %v6200_v4 }
 0xb3f   :  { %1150 = vmatprep.subr.mxu1 %v6206_v5 }
 0xb40   :  { %1151 = vmatpush1.msra.mxu1 %v6212_v8 }
 0xb41   :  { %1152 = vmatprep.subr.mxu1 %v6218_v10 }
 0xb42   :  { %1153 = vmatpush1.msra.mxu1 %v6224_v13 }
 0xb43   :  { %1154 = vmatprep.subr.mxu1 %v6230_v15 }
 0xb44   :  { %1155 = vmatpush1.msra.mxu1 %v6236_v17 }
 0xb45   :  { %1156 = vmatprep.subr.mxu1 %v6242_v19 }
 0xb46   :  { %1157 = vmatpush1.msra.mxu1 %v6251_v21 }
 0xb47   :  { %1158 = vmatprep.subr.mxu1 %v6257_v22 }
 0xb48   :  { %1159 = vmatpush1.msra.mxu1 %v6263_v23 }
 0xb49   :  { %1160 = vmatprep.subr.mxu1 %v6270_v24 }
 0xb4a   :  { %1161 = vmatpush1.msra.mxu1 %v6277_v25 }
 0xbfb   :  { %v894_v57 = vpop.f32.mrf.mxu1 }
 0xbfc   :  { %v901_v12 = vrot.slane %v894_v57, 4 }
 0xbfd   :  { %v896_v16 = vpop.f32.mrf.mxu1 }
 0xbfe   :  { %v905_v18 = vadd.f32 %v901_v12, %v6318_v26  ;;  %v902_v20 = vrot.slane %v896_v16, 4 }
 0xc00   :  { %5680 = vtanh.f32 %v905_v18  ;;  %v906_v29 = vadd.f32 %v902_v20, %v225_v28  ;;  %v5231_v34 = vmul.f32 -1.442695, %v905_v18 }
 0xc02   :  { %5682 = vtanh.f32 %v906_v29  ;;  %v5232_v35 = vmul.f32 -1.442695, %v906_v29 }
 0xc03   :  { %5684 = vpow2.f32 %v5231_v34 }
 0xc04   :  { %5686 = vpow2.f32 %v5232_v35 }
 0xc0d   :  { %v5681_v1 = vpop.eup %5680 }
 0xc0e   :  { %921 = vrot.lane.b32.xlu1 %v5681_v1, %s6061_s3 }
 0xc0f   :  { %v5683_v32 = vpop.eup %5682 }
 0xc10   :  { %946 = vrot.lane.b32.xlu0 %v5683_v32, %s6061_s3  ;;  %v5685_v36 = vpop.eup %5684 }
 0xc11   :  { %v5687_v37 = vpop.eup %5686  ;;  %v910_v28 = vadd.f32 1.0, %v5685_v36 }
 0xc12   :  { %916 = vrot.lane.b32.xlu1 %v915_v33, %s6062_s20  ;;  %v939_v38 = vadd.f32 1.0, %v5687_v37 }
 0xc13   :  { %5688 = vrcp.f32 %v910_v28 }
 0xc14   :  { %5690 = vrcp.f32 %v939_v38 }
 0xc20   :  { %v5689_v39 = vpop.eup %5688 }
 0xc21   :  { %v5691_v42 = vpop.eup %5690 }
 0xc22   :  { %v944_v49 = vmul.f32 %v5691_v42, %v915_v33 }
 0xc80   :  { %v922_v40 = vpop.permute.xlu1 %921 }
 0xc81   :  { %v924_v41 = vmul.f32 %v5689_v39, %v922_v40 }
 0xc82   :  { %v947_v43 = vpop.permute.xlu0 %946 }
 0xc83   :  { %926 = vrot.lane.b32.xlu0 %v924_v41, %s6062_s20  ;;  %v949_v44 = vmul.f32 %v5691_v42, %v947_v43 }
 0xc84   :  { %v917_v45 = vpop.permute.xlu1 %916 }
 0xc85   :  { %951 = vrot.lane.b32.xlu1 %v949_v44, %s6062_s20  ;;  %v919_v46 = vmul.f32 %v5689_v39, %v917_v45 }
 0xcf5   :  { %v927_v47 = vpop.permute.xlu0 %926 }
 0xcf6   :  { %v929_v48 = vadd.f32 %v927_v47, %v919_v46 }
 0xcf7   :  { %v952_v50 = vpop.permute.xlu1 %951 }
 0xcf8   :  { %5692 = vtanh.f32 %v929_v48  ;;  %v954_v51 = vadd.f32 %v952_v50, %v944_v49 }
 0xcfa   :  { %5694 = vtanh.f32 %v954_v51 }
 0xd05   :  { %v5693_v53 = vpop.eup %5692 }
 0xd06   :  { %932 = vrot.lane.b32.xlu0 %v5693_v53, %s6061_s3 }
 0xd07   :  { %v5695_v55 = vpop.eup %5694 }
 0xd08   :  { %957 = vrot.lane.b32.xlu1 %v5695_v55, %s6061_s3 }
 0xd78   :  { %v933_v59 = vpop.permute.xlu0 %932 }
 0xd79   :  { %v935_v62 = vmul.f32 %v5689_v39, %v933_v59 }
 0xd7a   :  { %v958_v56 = vpop.permute.xlu1 %957 }
 0xd7b   :  { %v6496_v6 = vsel %vm1420_vm5, %v6457_v61, %v935_v62  ;;  %962 = vrot.lane.b32.xlu0 %v935_v62, %s6062_s20  ;;  %v6499_v52 = vmul.f32 %v5691_v42, %v958_v56 }
 0xd7d   :  { %966 = vrot.lane.b32.xlu1 %v6499_v52, %s6061_s3 }
 0xd7f   :  { %971 = vrot.lane.b32.xlu0 %v929_v48, %s6063_s1 }
 0xded   :  { %v963_v11 = vpop.permute.xlu0 %962 }
 0xdef   :  { %v967_v57 = vpop.permute.xlu1 %966 }
 0xdf0   :  { %v969_v12 = vsel %vm149_vm0, %v963_v11, %v967_v57 }
 0xdf1   :  { %v976_v16 = vrot.slane %v969_v12, 4 }
 0xdf3   :  { %5233 = vmatmul.mubr.msk.f32.vlgmr.msra.gmra.mxu0 %vm227_vm1, %v976_v16 }
 0xdf4   :  { %1298 = vmatpush1.msra.mxu0 %v6189_v2  ;;  %1345 = vmatprep.mubr.f32.mxu0 %v6060_v0 }
 0xdf5   :  { %1299 = vmatprep.subr.mxu0 %v6194_v3 }
 0xdf6   :  { %1300 = vmatpush1.msra.mxu0 %v6200_v4 }
 0xdf7   :  { %1301 = vmatprep.subr.mxu0 %v6206_v5 }
 0xdf8   :  { %1302 = vmatpush1.msra.mxu0 %v6212_v8 }
 0xdf9   :  { %1303 = vmatprep.subr.mxu0 %v6218_v10 }
 0xdfa   :  { %1304 = vmatpush1.msra.mxu0 %v6224_v13  ;;  %v972_v13 = vpop.permute.xlu0 %971 }
 0xdfb   :  { %1305 = vmatprep.subr.mxu0 %v6230_v15 }
 0xdfc   :  { %1306 = vmatpush1.msra.mxu0 %v6236_v17  ;;  %v974_v17 = vsel %vm149_vm0, %v972_v13, %v954_v51 }
 0xdfd   :  { %1307 = vmatprep.subr.mxu0 %v6242_v19 }
 0xdfe   :  { %1308 = vmatpush1.msra.mxu0 %v6251_v21  ;;  %v1066_v21 = vrot.slane %v974_v17, 7 }
 0xdff   :  { %1309 = vmatprep.subr.mxu0 %v6257_v22 }
 0xe00   :  { %1310 = vmatpush1.msra.mxu0 %v6263_v23 }
 0xe01   :  { %1311 = vmatprep.subr.mxu0 %v6270_v24 }
 0xe02   :  { %1312 = vmatpush1.msra.mxu0 %v6277_v25 }
 0xeb3   :  { %v1045_v2 = vpop.f32.mrf.mxu0 }
 0xeb4   :  { %v1052_v3 = vrot.slane %v1045_v2, 3 }
 0xeb5   :  { %v1047_v4 = vpop.f32.mrf.mxu0 }
 0xeb6   :  { %v1056_v5 = vadd.f32 %v1052_v3, %v6318_v26  ;;  %v1053_v8 = vrot.slane %v1047_v4, 3 }
 0xeb8   :  { %5696 = vtanh.f32 %v1056_v5  ;;  %v1057_v10 = vadd.f32 %v1053_v8, %v366_v9  ;;  %v5234_v22 = vmul.f32 -1.442695, %v1056_v5 }
 0xeba   :  { %5698 = vtanh.f32 %v1057_v10  ;;  %v5235_v23 = vmul.f32 -1.442695, %v1057_v10 }
 0xebb   :  { %5700 = vpow2.f32 %v5234_v22 }
 0xebc   :  { %5702 = vpow2.f32 %v5235_v23 }
 0xec5   :  { %v5697_v15 = vpop.eup %5696 }
 0xec6   :  { %1072 = vrot.lane.b32.xlu1 %v5697_v15, %s6061_s3 }
 0xec7   :  { %v5699_v19 = vpop.eup %5698 }
 0xec8   :  { %1097 = vrot.lane.b32.xlu0 %v5699_v19, %s6061_s3  ;;  %v5701_v24 = vpop.eup %5700 }
 0xec9   :  { %v5703_v25 = vpop.eup %5702  ;;  %v1061_v9 = vadd.f32 1.0, %v5701_v24 }
 0xeca   :  { %1067 = vrot.lane.b32.xlu1 %v1066_v21, %s6062_s20  ;;  %v1090_v61 = vadd.f32 1.0, %v5703_v25 }
 0xecb   :  { %5704 = vrcp.f32 %v1061_v9 }
 0xecc   :  { %5706 = vrcp.f32 %v1090_v61 }
 0xed8   :  { %v5705_v18 = vpop.eup %5704 }
 0xed9   :  { %v5707_v30 = vpop.eup %5706 }
 0xeda   :  { %v1095_v36 = vmul.f32 %v5707_v30, %v1066_v21 }
 0xf38   :  { %v1073_v20 = vpop.permute.xlu1 %1072 }
 0xf39   :  { %v1075_v29 = vmul.f32 %v5705_v18, %v1073_v20  ;;  %v6563_v20 = vld [vmem:[#allocation8 + $0x78] sm:$0xff] }
 0xf3a   :  { %v1098_v1 = vpop.permute.xlu0 %1097  ;;  %1570 = vmatprep.subr.mxu0 %v6563_v20 }
 0xf3b   :  { %1077 = vrot.lane.b32.xlu0 %v1075_v29, %s6062_s20  ;;  %v1100_v31 = vmul.f32 %v5707_v30, %v1098_v1  ;;  %v1460_v29 = vld [vmem:[#allocation7 + $0x38] sm:$0xff]  ;;  %v1459_v1 = vld [vmem:[#allocation7 + $0x30] sm:$0xff] }
 0xf3c   :  { %v1068_v32 = vpop.permute.xlu1 %1067  ;;  %1504 = vmatprep.subr.mxu1 %v1460_v29 }
 0xf3d   :  { %1102 = vrot.lane.b32.xlu1 %v1100_v31, %s6062_s20  ;;  %v1070_v33 = vmul.f32 %v5705_v18, %v1068_v32  ;;  %v1458_v32 = vld [vmem:[#allocation7 + $0x28] sm:$0xff] }
 0xfad   :  { %v1078_v34 = vpop.permute.xlu0 %1077 }
 0xfae   :  { %v1080_v35 = vadd.f32 %v1078_v34, %v1070_v33  ;;  %v1457_v33 = vld [vmem:[#allocation7 + $0x20] sm:$0xff] }
 0xfaf   :  { %v1103_v37 = vpop.permute.xlu1 %1102 }
 0xfb0   :  { %5708 = vtanh.f32 %v1080_v35  ;;  %v1105_v28 = vadd.f32 %v1103_v37, %v1095_v36  ;;  %v1456_v36 = vld [vmem:[#allocation7 + $0x18] sm:$0xff] }
 0xfb2   :  { %5710 = vtanh.f32 %v1105_v28 }
 0xfbd   :  { %v5709_v38 = vpop.eup %5708 }
 0xfbe   :  { %1083 = vrot.lane.b32.xlu0 %v5709_v38, %s6061_s3  ;;  %v1454_v38 = vld [vmem:[#allocation7 + $0x8] sm:$0xff] }
 0xfbf   :  { %v5711_v39 = vpop.eup %5710 }
 0xfc0   :  { %1108 = vrot.lane.b32.xlu1 %v5711_v39, %s6061_s3  ;;  %v1453_v39 = vld [vmem:[#allocation7] sm:$0xff] }
0x1030   :  { %v1084_v40 = vpop.permute.xlu0 %1083 }
0x1031   :  { %v1086_v41 = vmul.f32 %v5705_v18, %v1084_v40  ;;  %v1452_v40 = vld [vmem:[#allocation2] sm:$0x3f] }
0x1032   :  { %v1109_v43 = vpop.permute.xlu1 %1108 }
0x1033   :  { %v6535_v42 = vsel %vm1422_vm6, %v6496_v6, %v1086_v41  ;;  %1113 = vrot.lane.b32.xlu0 %v1086_v41, %s6062_s20  ;;  %v6538_v44 = vmul.f32 %v5707_v30, %v1109_v43  ;;  %v6575_v41 = vld [vmem:[#allocation8 + $0x70] sm:$0xff]  ;;  %v6583_v43 = vld [vmem:[#allocation8 + $0x60] sm:$0xff] }
0x1035   :  { %1117 = vrot.lane.b32.xlu1 %v6538_v44, %s6061_s3 }
0x1037   :  { %1122 = vrot.lane.b32.xlu0 %v1080_v35, %s6063_s1 }
0x10a5   :  { %v1114_v45 = vpop.permute.xlu0 %1113 }
0x10a7   :  { %v1118_v46 = vpop.permute.xlu1 %1117 }
0x10a8   :  { %v1120_v47 = vsel %vm149_vm0, %v1114_v45, %v1118_v46  ;;  %v6586_v45 = vld [vmem:[#allocation8 + $0x58] sm:$0xff]  ;;  %v6589_v46 = vld [vmem:[#allocation8 + $0x50] sm:$0xff] }
0x10a9   :  { %v1127_v48 = vrot.slane %v1120_v47, 5  ;;  %v1123_v62 = vpop.permute.xlu0 %1122  ;;  %v6592_v47 = vld [vmem:[#allocation8 + $0x48] sm:$0xff] }
0x10aa   :  { %v1125_v56 = vsel %vm149_vm0, %v1123_v62, %v1105_v28  ;;  %v1455_v28 = vld [vmem:[#allocation7 + $0x10] sm:$0xff]  ;;  %v6616_v62 = vld [vmem:[#allocation8 + $0x8] sm:$0xff] }
0x10ab   :  { %5236 = vmatmul.mubr.msk.f32.vlgmr.msra.gmra.mxu1 %vm227_vm1, %v1127_v48  ;;  %v1217_v57 = vrot.slane %v1125_v56, 7  ;;  %v6595_v48 = vld [vmem:[#allocation8 + $0x40] sm:$0xff] }
0x10ac   :  { %1544 = vmatprep.mubr.f32.mxu1 %v6060_v0  ;;  %1505 = vmatpush1.msra.mxu1 %v1459_v1 }
0x10ad   :  { %1506 = vmatprep.subr.mxu1 %v1458_v32 }
0x10ae   :  { %1507 = vmatpush1.msra.mxu1 %v1457_v33 }
0x10af   :  { %1508 = vmatprep.subr.mxu1 %v1456_v36 }
0x10b0   :  { %1509 = vmatpush1.msra.mxu1 %v1455_v28 }
0x10b1   :  { %1510 = vmatprep.subr.mxu1 %v1454_v38 }
0x10b2   :  { %1511 = vmatpush1.msra.mxu1 %v1453_v39 }
0x10b3   :  { %5242 = vmatmul.mubr.msk.f32.vlgmr.msra.gmra.mxu1 %vm149_vm0, %v1452_v40  ;;  %1710 = vmatprep.subr.mxu1 %v6563_v20 }
0x10b4   :  { %1711 = vmatpush1.msra.mxu1 %v6575_v41  ;;  %1758 = vmatprep.mubr.f32.mxu1 %v6060_v0 }
0x116b   :  { %v1196_v49 = vpop.f32.mrf.mxu1 }
0x116c   :  { %v1203_v50 = vrot.slane %v1196_v49, 2  ;;  %v6598_v49 = vld [vmem:[#allocation8 + $0x38] sm:$0xff] }
0x116d   :  { %v1198_v51 = vpop.f32.mrf.mxu1 }
0x116e   :  { %v1207_v53 = vadd.f32 %v1203_v50, %v6318_v26  ;;  %v1204_v55 = vrot.slane %v1198_v51, 2  ;;  %v6601_v50 = vld [vmem:[#allocation8 + $0x30] sm:$0xff]  ;;  %v6604_v51 = vld [vmem:[#allocation8 + $0x28] sm:$0xff] }
0x1170   :  { %5712 = vtanh.f32 %v1207_v53  ;;  %v1208_v59 = vadd.f32 %v1204_v55, %v518_v7  ;;  %v5237_v12 = vmul.f32 -1.442695, %v1207_v53  ;;  %v6607_v53 = vld [vmem:[#allocation8 + $0x20] sm:$0xff]  ;;  %v6610_v55 = vld [vmem:[#allocation8 + $0x18] sm:$0xff] }
0x1172   :  { %5714 = vtanh.f32 %v1208_v59  ;;  %v5238_v16 = vmul.f32 -1.442695, %v1208_v59  ;;  %v6613_v59 = vld [vmem:[#allocation8 + $0x10] sm:$0xff] }
0x1173   :  { %5716 = vpow2.f32 %v5237_v12 }
0x1174   :  { %5718 = vpow2.f32 %v5238_v16 }
0x117d   :  { %v5713_v6 = vpop.eup %5712 }
0x117e   :  { %1223 = vrot.lane.b32.xlu1 %v5713_v6, %s6061_s3  ;;  %v6619_v6 = vld [vmem:[#allocation8] sm:$0xff] }
0x117f   :  { %v5715_v11 = vpop.eup %5714 }
0x1180   :  { %1248 = vrot.lane.b32.xlu0 %v5715_v11, %s6061_s3  ;;  %v5717_v2 = vpop.eup %5716 }
0x1181   :  { %v5719_v3 = vpop.eup %5718  ;;  %v1212_v7 = vadd.f32 1.0, %v5717_v2  ;;  %v6663_v2 = vpop.f32.mrf.mxu1 }
0x1182   :  { %1218 = vrot.lane.b32.xlu1 %v1217_v57, %s6062_s20  ;;  %v1241_v4 = vadd.f32 1.0, %v5719_v3 }
0x1183   :  { %5720 = vrcp.f32 %v1212_v7  ;;  %v6667_v7 = vpop.f32.mrf.mxu1 }
0x1184   :  { %5722 = vrcp.f32 %v1241_v4 }
0x1190   :  { %v5721_v5 = vpop.eup %5720 }
0x1191   :  { %v5723_v13 = vpop.eup %5722 }
0x1192   :  { %v1246_v24 = vmul.f32 %v5723_v13, %v1217_v57 }
0x11f0   :  { %v1224_v8 = vpop.permute.xlu1 %1223 }
0x11f1   :  { %v1226_v10 = vmul.f32 %v5721_v5, %v1224_v8  ;;  %v1552_v8 = vrot.slane %v6667_v7, 5 }
0x11f2   :  { %v1249_v15 = vpop.permute.xlu0 %1248 }
0x11f3   :  { %1228 = vrot.lane.b32.xlu0 %v1226_v10, %s6062_s20  ;;  %v1251_v17 = vmul.f32 %v5723_v13, %v1249_v15 }
0x11f4   :  { %v1219_v19 = vpop.permute.xlu1 %1218 }
0x11f5   :  { %1253 = vrot.lane.b32.xlu1 %v1251_v17, %s6062_s20  ;;  %v1221_v21 = vmul.f32 %v5721_v5, %v1219_v19 }
0x1265   :  { %v1229_v22 = vpop.permute.xlu0 %1228 }
0x1266   :  { %v6555_v23 = vadd.f32 %v1229_v22, %v1221_v21 }
0x1267   :  { %v1254_v25 = vpop.permute.xlu1 %1253 }
0x1268   :  { %5724 = vtanh.f32 %v6555_v23  ;;  %v6558_v9 = vadd.f32 %v1254_v25, %v1246_v24 }
0x126a   :  { %5726 = vtanh.f32 %v6558_v9 }
0x1275   :  { %v5725_v61 = vpop.eup %5724 }
0x1276   :  { %1234 = vrot.lane.b32.xlu0 %v5725_v61, %s6061_s3 }
0x1277   :  { %v5727_v18 = vpop.eup %5726 }
0x1278   :  { %1259 = vrot.lane.b32.xlu1 %v5727_v18, %s6061_s3 }
0x12e8   :  { %v1235_v30 = vpop.permute.xlu0 %1234 }
0x12e9   :  { %v1237_v31 = vmul.f32 %v5721_v5, %v1235_v30 }
0x12ea   :  { %v1260_v35 = vpop.permute.xlu1 %1259 }
0x12eb   :  { %v6568_v34 = vsel %vm1424_vm7, %v6535_v42, %v1237_v31  ;;  %1264 = vrot.lane.b32.xlu0 %v1237_v31, %s6062_s20  ;;  %v6571_v37 = vmul.f32 %v5723_v13, %v1260_v35  ;;  %v6579_v42 = vld [vmem:[#allocation8 + $0x68] sm:$0xff] }
0x12ec   :  { %1712 = vmatprep.subr.mxu1 %v6579_v42 }
0x12ed   :  { %1268 = vrot.lane.b32.xlu1 %v6571_v37, %s6061_s3  ;;  %1713 = vmatpush1.msra.mxu1 %v6583_v43 }
0x12ee   :  { %1714 = vmatprep.subr.mxu1 %v6586_v45 }
0x12ef   :  { %1715 = vmatpush1.msra.mxu1 %v6589_v46 }
0x12f0   :  { %1716 = vmatprep.subr.mxu1 %v6592_v47 }
0x12f1   :  { %1717 = vmatpush1.msra.mxu1 %v6595_v48 }
0x12f2   :  { %1718 = vmatprep.subr.mxu1 %v6598_v49 }
0x12f3   :  { %1719 = vmatpush1.msra.mxu1 %v6601_v50 }
0x12f4   :  { %1720 = vmatprep.subr.mxu1 %v6604_v51 }
0x12f5   :  { %1721 = vmatpush1.msra.mxu1 %v6607_v53 }
0x12f6   :  { %1722 = vmatprep.subr.mxu1 %v6610_v55 }
0x12f7   :  { %1723 = vmatpush1.msra.mxu1 %v6613_v59 }
0x12f8   :  { %1724 = vmatprep.subr.mxu1 %v6616_v62 }
0x12f9   :  { %1725 = vmatpush1.msra.mxu1 %v6619_v6 }
0x12fa   :  { %2016 = vmatprep.subr.mxu1 %v6563_v20 }
0x135d   :  { %v1265_v56 = vpop.permute.xlu0 %1264 }
0x135f   :  { %v1269_v11 = vpop.permute.xlu1 %1268 }
0x1360   :  { %v1271_v57 = vsel %vm149_vm0, %v1265_v56, %v1269_v11 }
0x1361   :  { %v1278_v12 = vrot.slane %v1271_v57, 6 }
0x1363   :  { %5239 = vmatmul.mubr.msk.f32.vlgmr.msra.gmra.mxu0 %vm227_vm1, %v1278_v12 }
0x1364   :  { %1571 = vmatpush1.msra.mxu0 %v6575_v41  ;;  %1618 = vmatprep.mubr.f32.mxu0 %v6060_v0 }
0x1365   :  { %1572 = vmatprep.subr.mxu0 %v6579_v42 }
0x1366   :  { %1573 = vmatpush1.msra.mxu0 %v6583_v43 }
0x1367   :  { %1574 = vmatprep.subr.mxu0 %v6586_v45 }
0x1368   :  { %1575 = vmatpush1.msra.mxu0 %v6589_v46 }
0x1369   :  { %1576 = vmatprep.subr.mxu0 %v6592_v47 }
0x136a   :  { %1577 = vmatpush1.msra.mxu0 %v6595_v48 }
0x136b   :  { %1578 = vmatprep.subr.mxu0 %v6598_v49 }
0x136c   :  { %1579 = vmatpush1.msra.mxu0 %v6601_v50 }
0x136d   :  { %1580 = vmatprep.subr.mxu0 %v6604_v51 }
0x136e   :  { %1581 = vmatpush1.msra.mxu0 %v6607_v53 }
0x136f   :  { %1582 = vmatprep.subr.mxu0 %v6610_v55 }
0x1370   :  { %1583 = vmatpush1.msra.mxu0 %v6613_v59 }
0x1371   :  { %1584 = vmatprep.subr.mxu0 %v6616_v62 }
0x1372   :  { %1585 = vmatpush1.msra.mxu0 %v6619_v6 }
0x1373   :  { %1619 = vmatmul.mubr.f32.vlgmr.msra.gmra.mxu0 %v6060_v0  ;;  %1863 = vmatprep.subr.mxu0 %v6563_v20 }
0x1374   :  { %1864 = vmatpush1.msra.mxu0 %v6575_v41  ;;  %1911 = vmatprep.mubr.f32.mxu0 %v6060_v0 }
0x1375   :  { %1865 = vmatprep.subr.mxu0 %v6579_v42 }
0x1376   :  { %1866 = vmatpush1.msra.mxu0 %v6583_v43 }
0x1377   :  { %1867 = vmatprep.subr.mxu0 %v6586_v45 }
0x1378   :  { %1868 = vmatpush1.msra.mxu0 %v6589_v46 }
0x1379   :  { %1869 = vmatprep.subr.mxu0 %v6592_v47 }
0x137a   :  { %1870 = vmatpush1.msra.mxu0 %v6595_v48 }
0x137b   :  { %1871 = vmatprep.subr.mxu0 %v6598_v49 }
0x137c   :  { %1872 = vmatpush1.msra.mxu0 %v6601_v50 }
0x137d   :  { %1873 = vmatprep.subr.mxu0 %v6604_v51 }
0x137e   :  { %1874 = vmatpush1.msra.mxu0 %v6607_v53 }
0x137f   :  { %1875 = vmatprep.subr.mxu0 %v6610_v55 }
0x1380   :  { %1876 = vmatpush1.msra.mxu0 %v6613_v59 }
0x1381   :  { %1877 = vmatprep.subr.mxu0 %v6616_v62 }
0x1382   :  { %1878 = vmatpush1.msra.mxu0 %v6619_v6 }
0x1383   :  { %2167 = vmatprep.subr.mxu0 %v6563_v20 }
0x1423   :  { %v6661_v16 = vpop.f32.mrf.mxu0 }
0x1425   :  { %v6665_v3 = vpop.f32.mrf.mxu0 }
0x1433   :  { %v1620_v4 = vpop.f32.mrf.mxu0 }
0x1434   :  { %v1625_v5 = vadd.f32 %v1620_v4, %v6663_v2 }
0x1435   :  { %v1622_v10 = vpop.f32.mrf.mxu0 }
0x1436   :  { %5728 = vtanh.f32 %v1625_v5  ;;  %v1626_v13 = vadd.f32 %v1622_v10, %v1552_v8  ;;  %v5243_v19 = vmul.f32 -1.442695, %v1625_v5 }
0x1438   :  { %5730 = vtanh.f32 %v1626_v13  ;;  %v5244_v21 = vmul.f32 -1.442695, %v1626_v13 }
0x1439   :  { %5732 = vpow2.f32 %v5243_v19 }
0x143a   :  { %5734 = vpow2.f32 %v5244_v21 }
0x1443   :  { %v5729_v15 = vpop.eup %5728 }
0x1444   :  { %1636 = vrot.lane.b32.xlu0 %v5729_v15, %s6061_s3 }
0x1445   :  { %v5731_v17 = vpop.eup %5730 }
0x1446   :  { %1660 = vrot.lane.b32.xlu1 %v5731_v17, %s6061_s3  ;;  %v5733_v22 = vpop.eup %5732 }
0x1447   :  { %v5735_v24 = vpop.eup %5734  ;;  %v1630_v25 = vadd.f32 1.0, %v5733_v22  ;;  %v1689_v22 = vrot.slane %v6667_v7, 3 }
0x1448   :  { %v1654_v61 = vadd.f32 1.0, %v5735_v24 }
0x1449   :  { %5736 = vrcp.f32 %v1630_v25 }
0x144a   :  { %5738 = vrcp.f32 %v1654_v61 }
0x1456   :  { %v5737_v18 = vpop.eup %5736 }
0x1457   :  { %v5739_v1 = vpop.eup %5738  ;;  %v1634_v33 = vmul.f32 0.0, %v5737_v18 }
0x1458   :  { %v1658_v28 = vmul.f32 0.0, %v5739_v1 }
0x14b6   :  { %v1637_v29 = vpop.permute.xlu0 %1636 }
0x14b7   :  { %v1639_v30 = vmul.f32 %v5737_v18, %v1637_v29 }
0x14b8   :  { %v1661_v31 = vpop.permute.xlu1 %1660 }
0x14b9   :  { %1641 = vrot.lane.b32.xlu0 %v1639_v30, %s6062_s20  ;;  %v1663_v32 = vmul.f32 %v5739_v1, %v1661_v31 }
0x14bb   :  { %1665 = vrot.lane.b32.xlu1 %v1663_v32, %s6062_s20 }
0x152b   :  { %v1642_v35 = vpop.permute.xlu0 %1641 }
0x152c   :  { %v1644_v36 = vadd.f32 %v1642_v35, %v1634_v33 }
0x152d   :  { %v1666_v38 = vpop.permute.xlu1 %1665 }
0x152e   :  { %5740 = vtanh.f32 %v1644_v36  ;;  %v1668_v39 = vadd.f32 %v1666_v38, %v1658_v28 }
0x1530   :  { %5742 = vtanh.f32 %v1668_v39 }
0x153b   :  { %v5741_v40 = vpop.eup %5740 }
0x153c   :  { %1647 = vrot.lane.b32.xlu0 %v5741_v40, %s6061_s3 }
0x153d   :  { %v5743_v56 = vpop.eup %5742 }
0x153e   :  { %1671 = vrot.lane.b32.xlu1 %v5743_v56, %s6061_s3 }
0x15ae   :  { %v1648_v11 = vpop.permute.xlu0 %1647 }
0x15af   :  { %v6679_v57 = vmul.f32 %v5737_v18, %v1648_v11 }
0x15b0   :  { %v1672_v12 = vpop.permute.xlu1 %1671 }
0x15b1   :  { %1676 = vrot.lane.b32.xlu0 %v6679_v57, %s6062_s20  ;;  %v6683_v4 = vmul.f32 %v5739_v1, %v1672_v12 }
0x15b3   :  { %1680 = vrot.lane.b32.xlu1 %v6683_v4, %s6061_s3 }
0x15b5   :  { %1685 = vrot.lane.b32.xlu0 %v1644_v36, %s6063_s1 }
0x1623   :  { %v1677_v5 = vpop.permute.xlu0 %1676 }
0x1625   :  { %v1681_v10 = vpop.permute.xlu1 %1680 }
0x1626   :  { %v1683_v13 = vsel %vm149_vm0, %v1677_v5, %v1681_v10 }
0x1627   :  { %5245 = vmatmul.mubr.msk.f32.vlgmr.msra.gmra.mxu1 %vm227_vm1, %v1683_v13  ;;  %v1686_v61 = vpop.permute.xlu0 %1685 }
0x1628   :  { %2017 = vmatpush1.msra.mxu1 %v6575_v41  ;;  %2064 = vmatprep.mubr.f32.mxu1 %v6060_v0  ;;  %v1688_v29 = vsel %vm149_vm0, %v1686_v61, %v1668_v39 }
0x1629   :  { %2018 = vmatprep.subr.mxu1 %v6579_v42  ;;  %v1781_v30 = vrot.slane %v1688_v29, 7 }
0x162a   :  { %2019 = vmatpush1.msra.mxu1 %v6583_v43 }
0x162b   :  { %2020 = vmatprep.subr.mxu1 %v6586_v45 }
0x162c   :  { %2021 = vmatpush1.msra.mxu1 %v6589_v46 }
0x162d   :  { %2022 = vmatprep.subr.mxu1 %v6592_v47 }
0x162e   :  { %2023 = vmatpush1.msra.mxu1 %v6595_v48 }
0x162f   :  { %2024 = vmatprep.subr.mxu1 %v6598_v49 }
0x1630   :  { %2025 = vmatpush1.msra.mxu1 %v6601_v50 }
0x1631   :  { %2026 = vmatprep.subr.mxu1 %v6604_v51 }
0x1632   :  { %2027 = vmatpush1.msra.mxu1 %v6607_v53 }
0x1633   :  { %2028 = vmatprep.subr.mxu1 %v6610_v55 }
0x1634   :  { %2029 = vmatpush1.msra.mxu1 %v6613_v59 }
0x1635   :  { %2030 = vmatprep.subr.mxu1 %v6616_v62 }
0x1636   :  { %2031 = vmatpush1.msra.mxu1 %v6619_v6 }
0x1637   :  { %2318 = vmatprep.subr.mxu1 %v6563_v20 }
0x16e7   :  { %v1760_v15 = vpop.f32.mrf.mxu1 }
0x16e8   :  { %v1767_v17 = vrot.slane %v1760_v15, 7 }
0x16e9   :  { %v1762_v19 = vpop.f32.mrf.mxu1 }
0x16ea   :  { %v1771_v21 = vadd.f32 %v1767_v17, %v6663_v2  ;;  %v1768_v24 = vrot.slane %v1762_v19, 7 }
0x16ec   :  { %5744 = vtanh.f32 %v1771_v21  ;;  %v1772_v25 = vadd.f32 %v1768_v24, %v1689_v22  ;;  %v5246_v1 = vmul.f32 -1.442695, %v1771_v21 }
0x16ee   :  { %5746 = vtanh.f32 %v1772_v25  ;;  %v5247_v31 = vmul.f32 -1.442695, %v1772_v25 }
0x16ef   :  { %5748 = vpow2.f32 %v5246_v1 }
0x16f0   :  { %5750 = vpow2.f32 %v5247_v31 }
0x16f9   :  { %v5745_v18 = vpop.eup %5744 }
0x16fa   :  { %1787 = vrot.lane.b32.xlu1 %v5745_v18, %s6061_s3 }
0x16fb   :  { %v5747_v20 = vpop.eup %5746 }
0x16fc   :  { %1812 = vrot.lane.b32.xlu0 %v5747_v20, %s6061_s3  ;;  %v5749_v32 = vpop.eup %5748 }
0x16fd   :  { %v5751_v33 = vpop.eup %5750  ;;  %v1776_v35 = vadd.f32 1.0, %v5749_v32 }
0x16fe   :  { %1782 = vrot.lane.b32.xlu1 %v1781_v30, %s6062_s20  ;;  %v1805_v36 = vadd.f32 1.0, %v5751_v33 }
0x16ff   :  { %5752 = vrcp.f32 %v1776_v35 }
0x1700   :  { %5754 = vrcp.f32 %v1805_v36 }
0x170c   :  { %v5753_v28 = vpop.eup %5752 }
0x170d   :  { %v5755_v40 = vpop.eup %5754 }
0x170e   :  { %v1810_v15 = vmul.f32 %v5755_v40, %v1781_v30 }
0x176c   :  { %v1788_v38 = vpop.permute.xlu1 %1787 }
0x176d   :  { %v1790_v39 = vmul.f32 %v5753_v28, %v1788_v38 }
0x176e   :  { %v1813_v56 = vpop.permute.xlu0 %1812 }
0x176f   :  { %1792 = vrot.lane.b32.xlu0 %v1790_v39, %s6062_s20  ;;  %v1815_v11 = vmul.f32 %v5755_v40, %v1813_v56 }
0x1770   :  { %v1783_v12 = vpop.permute.xlu1 %1782 }
0x1771   :  { %1817 = vrot.lane.b32.xlu1 %v1815_v11, %s6062_s20  ;;  %v1785_v5 = vmul.f32 %v5753_v28, %v1783_v12 }
0x17e1   :  { %v1793_v10 = vpop.permute.xlu0 %1792 }
0x17e2   :  { %v1795_v13 = vadd.f32 %v1793_v10, %v1785_v5 }
0x17e3   :  { %v1818_v17 = vpop.permute.xlu1 %1817 }
0x17e4   :  { %5756 = vtanh.f32 %v1795_v13  ;;  %v1820_v19 = vadd.f32 %v1818_v17, %v1810_v15 }
0x17e6   :  { %5758 = vtanh.f32 %v1820_v19 }
0x17f1   :  { %v5757_v21 = vpop.eup %5756 }
0x17f2   :  { %1798 = vrot.lane.b32.xlu0 %v5757_v21, %s6061_s3 }
0x17f3   :  { %v5759_v24 = vpop.eup %5758 }
0x17f4   :  { %1823 = vrot.lane.b32.xlu1 %v5759_v24, %s6061_s3 }
0x1864   :  { %v1799_v25 = vpop.permute.xlu0 %1798 }
0x1865   :  { %v6719_v61 = vmul.f32 %v5753_v28, %v1799_v25  ;;  %v1841_v28 = vrot.slane %v6667_v7, 1 }
0x1866   :  { %v1824_v18 = vpop.permute.xlu1 %1823 }
0x1867   :  { %1828 = vrot.lane.b32.xlu0 %v6719_v61, %s6062_s20  ;;  %v6723_v29 = vmul.f32 %v5755_v40, %v1824_v18 }
0x1869   :  { %1832 = vrot.lane.b32.xlu1 %v6723_v29, %s6061_s3 }
0x186b   :  { %1837 = vrot.lane.b32.xlu0 %v1795_v13, %s6063_s1 }
0x18d9   :  { %v1829_v20 = vpop.permute.xlu0 %1828 }
0x18db   :  { %v1833_v30 = vpop.permute.xlu1 %1832 }
0x18dc   :  { %v1835_v1 = vsel %vm149_vm0, %v1829_v20, %v1833_v30 }
0x18dd   :  { %v1844_v31 = vrot.slane %v1835_v1, 1  ;;  %v1838_v40 = vpop.permute.xlu0 %1837 }
0x18de   :  { %v1840_v11 = vsel %vm149_vm0, %v1838_v40, %v1820_v19 }
0x18df   :  { %5248 = vmatmul.mubr.msk.f32.vlgmr.msra.gmra.mxu0 %vm227_vm1, %v1844_v31  ;;  %v1934_v5 = vrot.slane %v1840_v11, 7 }
0x18e0   :  { %2168 = vmatpush1.msra.mxu0 %v6575_v41  ;;  %2215 = vmatprep.mubr.f32.mxu0 %v6060_v0 }
0x18e1   :  { %2169 = vmatprep.subr.mxu0 %v6579_v42 }
0x18e2   :  { %2170 = vmatpush1.msra.mxu0 %v6583_v43 }
0x18e3   :  { %2171 = vmatprep.subr.mxu0 %v6586_v45 }
0x18e4   :  { %2172 = vmatpush1.msra.mxu0 %v6589_v46 }
0x18e5   :  { %2173 = vmatprep.subr.mxu0 %v6592_v47 }
0x18e6   :  { %2174 = vmatpush1.msra.mxu0 %v6595_v48 }
0x18e7   :  { %2175 = vmatprep.subr.mxu0 %v6598_v49 }
0x18e8   :  { %2176 = vmatpush1.msra.mxu0 %v6601_v50 }
0x18e9   :  { %2177 = vmatprep.subr.mxu0 %v6604_v51 }
0x18ea   :  { %2178 = vmatpush1.msra.mxu0 %v6607_v53 }
0x18eb   :  { %2179 = vmatprep.subr.mxu0 %v6610_v55 }
0x18ec   :  { %2180 = vmatpush1.msra.mxu0 %v6613_v59 }
0x18ed   :  { %2181 = vmatprep.subr.mxu0 %v6616_v62 }
0x18ee   :  { %2182 = vmatpush1.msra.mxu0 %v6619_v6 }
0x18ef   :  { %5397 = vmatprep.subr.mxu0 %v6060_v0 }
0x199f   :  { %v1913_v32 = vpop.f32.mrf.mxu0 }
0x19a0   :  { %v1920_v33 = vrot.slane %v1913_v32, 6 }
0x19a1   :  { %v1915_v35 = vpop.f32.mrf.mxu0 }
0x19a2   :  { %v1924_v36 = vadd.f32 %v1920_v33, %v6663_v2  ;;  %v1921_v38 = vrot.slane %v1915_v35, 6 }
0x19a4   :  { %5760 = vtanh.f32 %v1924_v36  ;;  %v1925_v39 = vadd.f32 %v1921_v38, %v1841_v28  ;;  %v5249_v10 = vmul.f32 -1.442695, %v1924_v36 }
0x19a6   :  { %5762 = vtanh.f32 %v1925_v39  ;;  %v5250_v13 = vmul.f32 -1.442695, %v1925_v39 }
0x19a7   :  { %5764 = vpow2.f32 %v5249_v10 }
0x19a8   :  { %5766 = vpow2.f32 %v5250_v13 }
0x19b1   :  { %v5761_v56 = vpop.eup %5760 }
0x19b2   :  { %1940 = vrot.lane.b32.xlu1 %v5761_v56, %s6061_s3 }
0x19b3   :  { %v5763_v12 = vpop.eup %5762 }
0x19b4   :  { %1965 = vrot.lane.b32.xlu0 %v5763_v12, %s6061_s3  ;;  %v5765_v15 = vpop.eup %5764  ;;  %v2435_v12 = vsel %vm1414_vm2, %v6679_v57, %v6719_v61 }
0x19b5   :  { %v5767_v17 = vpop.eup %5766  ;;  %v1929_v21 = vadd.f32 1.0, %v5765_v15 }
0x19b6   :  { %1935 = vrot.lane.b32.xlu1 %v1934_v5, %s6062_s20  ;;  %v1958_v24 = vadd.f32 1.0, %v5767_v17 }
0x19b7   :  { %5768 = vrcp.f32 %v1929_v21 }
0x19b8   :  { %5770 = vrcp.f32 %v1958_v24 }
0x19c4   :  { %v5769_v25 = vpop.eup %5768 }
0x19c5   :  { %v5771_v20 = vpop.eup %5770 }
0x19c6   :  { %v1963_v36 = vmul.f32 %v5771_v20, %v1934_v5 }
0x1a24   :  { %v1941_v19 = vpop.permute.xlu1 %1940 }
0x1a25   :  { %v1943_v18 = vmul.f32 %v5769_v25, %v1941_v19 }
0x1a26   :  { %v1966_v30 = vpop.permute.xlu0 %1965 }
0x1a27   :  { %1945 = vrot.lane.b32.xlu0 %v1943_v18, %s6062_s20  ;;  %v1968_v1 = vmul.f32 %v5771_v20, %v1966_v30 }
0x1a28   :  { %v1936_v31 = vpop.permute.xlu1 %1935 }
0x1a29   :  { %1970 = vrot.lane.b32.xlu1 %v1968_v1, %s6062_s20  ;;  %v1938_v32 = vmul.f32 %v5769_v25, %v1936_v31 }
0x1a99   :  { %v1946_v33 = vpop.permute.xlu0 %1945 }
0x1a9a   :  { %v1948_v35 = vadd.f32 %v1946_v33, %v1938_v32 }
0x1a9b   :  { %v1971_v28 = vpop.permute.xlu1 %1970 }
0x1a9c   :  { %5772 = vtanh.f32 %v1948_v35  ;;  %v1973_v38 = vadd.f32 %v1971_v28, %v1963_v36 }
0x1a9e   :  { %5774 = vtanh.f32 %v1973_v38 }
0x1aa9   :  { %v5773_v39 = vpop.eup %5772 }
0x1aaa   :  { %1951 = vrot.lane.b32.xlu0 %v5773_v39, %s6061_s3 }
0x1aab   :  { %v5775_v40 = vpop.eup %5774 }
0x1aac   :  { %1976 = vrot.lane.b32.xlu1 %v5775_v40, %s6061_s3 }
0x1b1c   :  { %v1952_v56 = vpop.permute.xlu0 %1951 }
0x1b1d   :  { %v1954_v11 = vmul.f32 %v5769_v25, %v1952_v56 }
0x1b1e   :  { %v1977_v5 = vpop.permute.xlu1 %1976 }
0x1b1f   :  { %v6761_v10 = vsel %vm1416_vm3, %v2435_v12, %v1954_v11  ;;  %1981 = vrot.lane.b32.xlu0 %v1954_v11, %s6062_s20  ;;  %v6764_v13 = vmul.f32 %v5771_v20, %v1977_v5 }
0x1b21   :  { %1985 = vrot.lane.b32.xlu1 %v6764_v13, %s6061_s3 }
0x1b23   :  { %1990 = vrot.lane.b32.xlu0 %v1948_v35, %s6063_s1 }
0x1b91   :  { %v1982_v15 = vpop.permute.xlu0 %1981 }
0x1b93   :  { %v1986_v17 = vpop.permute.xlu1 %1985 }
0x1b94   :  { %v1988_v21 = vsel %vm149_vm0, %v1982_v15, %v1986_v17 }
0x1b95   :  { %v1997_v24 = vrot.slane %v1988_v21, 2 }
0x1b97   :  { %5251 = vmatmul.mubr.msk.f32.vlgmr.msra.gmra.mxu1 %vm227_vm1, %v1997_v24 }
0x1b98   :  { %2319 = vmatpush1.msra.mxu1 %v6575_v41  ;;  %2366 = vmatprep.mubr.f32.mxu1 %v6060_v0 }
0x1b99   :  { %2320 = vmatprep.subr.mxu1 %v6579_v42 }
0x1b9a   :  { %2321 = vmatpush1.msra.mxu1 %v6583_v43 }
0x1b9b   :  { %2322 = vmatprep.subr.mxu1 %v6586_v45 }
0x1b9c   :  { %2323 = vmatpush1.msra.mxu1 %v6589_v46  ;;  %v1994_v46 = vrot.slane %v6667_v7, 7 }
0x1b9d   :  { %2324 = vmatprep.subr.mxu1 %v6592_v47 }
0x1b9e   :  { %2325 = vmatpush1.msra.mxu1 %v6595_v48 }
0x1b9f   :  { %2326 = vmatprep.subr.mxu1 %v6598_v49  ;;  %v1991_v49 = vpop.permute.xlu0 %1990 }
0x1ba0   :  { %2327 = vmatpush1.msra.mxu1 %v6601_v50 }
0x1ba1   :  { %2328 = vmatprep.subr.mxu1 %v6604_v51  ;;  %v1993_v51 = vsel %vm149_vm0, %v1991_v49, %v1973_v38 }
0x1ba2   :  { %2329 = vmatpush1.msra.mxu1 %v6607_v53 }
0x1ba3   :  { %2330 = vmatprep.subr.mxu1 %v6610_v55  ;;  %v2087_v55 = vrot.slane %v1993_v51, 7 }
0x1ba4   :  { %2331 = vmatpush1.msra.mxu1 %v6613_v59 }
0x1ba5   :  { %2332 = vmatprep.subr.mxu1 %v6616_v62 }
0x1ba6   :  { %2333 = vmatpush1.msra.mxu1 %v6619_v6 }
0x1ba7   :  { %5402 = vmatprep.subr.mxu1 %v6060_v0 }
0x1c57   :  { %v2066_v41 = vpop.f32.mrf.mxu1 }
0x1c58   :  { %v2073_v42 = vrot.slane %v2066_v41, 5 }
0x1c59   :  { %v2068_v43 = vpop.f32.mrf.mxu1 }
0x1c5a   :  { %v2077_v45 = vadd.f32 %v2073_v42, %v6663_v2  ;;  %v2074_v47 = vrot.slane %v2068_v43, 5 }
0x1c5c   :  { %5776 = vtanh.f32 %v2077_v45  ;;  %v2078_v48 = vadd.f32 %v2074_v47, %v1994_v46  ;;  %v5252_v59 = vmul.f32 -1.442695, %v2077_v45 }
0x1c5e   :  { %5778 = vtanh.f32 %v2078_v48  ;;  %v5253_v62 = vmul.f32 -1.442695, %v2078_v48 }
0x1c5f   :  { %5780 = vpow2.f32 %v5252_v59 }
0x1c60   :  { %5782 = vpow2.f32 %v5253_v62 }
0x1c69   :  { %v5777_v50 = vpop.eup %5776 }
0x1c6a   :  { %2093 = vrot.lane.b32.xlu1 %v5777_v50, %s6061_s3 }
0x1c6b   :  { %v5779_v53 = vpop.eup %5778 }
0x1c6c   :  { %2118 = vrot.lane.b32.xlu0 %v5779_v53, %s6061_s3  ;;  %v5781_v6 = vpop.eup %5780 }
0x1c6d   :  { %v5783_v57 = vpop.eup %5782  ;;  %v2082_v61 = vadd.f32 1.0, %v5781_v6 }
0x1c6e   :  { %2088 = vrot.lane.b32.xlu1 %v2087_v55, %s6062_s20  ;;  %v2111_v25 = vadd.f32 1.0, %v5783_v57 }
0x1c6f   :  { %5784 = vrcp.f32 %v2082_v61 }
0x1c70   :  { %5786 = vrcp.f32 %v2111_v25 }
0x1c7c   :  { %v5785_v19 = vpop.eup %5784 }
0x1c7d   :  { %v5787_v30 = vpop.eup %5786 }
0x1c7e   :  { %v2116_v28 = vmul.f32 %v5787_v30, %v2087_v55 }
0x1cdc   :  { %v2094_v18 = vpop.permute.xlu1 %2093 }
0x1cdd   :  { %v2096_v20 = vmul.f32 %v5785_v19, %v2094_v18 }
0x1cde   :  { %v2119_v1 = vpop.permute.xlu0 %2118 }
0x1cdf   :  { %2098 = vrot.lane.b32.xlu0 %v2096_v20, %s6062_s20  ;;  %v2121_v31 = vmul.f32 %v5787_v30, %v2119_v1 }
0x1ce0   :  { %v2089_v32 = vpop.permute.xlu1 %2088 }
0x1ce1   :  { %2123 = vrot.lane.b32.xlu1 %v2121_v31, %s6062_s20  ;;  %v2091_v33 = vmul.f32 %v5785_v19, %v2089_v32 }
0x1d51   :  { %v2099_v35 = vpop.permute.xlu0 %2098 }
0x1d52   :  { %v2101_v36 = vadd.f32 %v2099_v35, %v2091_v33 }
0x1d53   :  { %v2124_v38 = vpop.permute.xlu1 %2123 }
0x1d54   :  { %5788 = vtanh.f32 %v2101_v36  ;;  %v2126_v39 = vadd.f32 %v2124_v38, %v2116_v28 }
0x1d56   :  { %5790 = vtanh.f32 %v2126_v39 }
0x1d61   :  { %v5789_v40 = vpop.eup %5788 }
0x1d62   :  { %2104 = vrot.lane.b32.xlu0 %v5789_v40, %s6061_s3 }
0x1d63   :  { %v5791_v56 = vpop.eup %5790 }
0x1d64   :  { %2129 = vrot.lane.b32.xlu1 %v5791_v56, %s6061_s3  ;;  %v1354_v56 = vrot.slane %v6661_v16, 1 }
0x1dd4   :  { %v2105_v11 = vpop.permute.xlu0 %2104 }
0x1dd5   :  { %v2107_v12 = vmul.f32 %v5785_v19, %v2105_v11  ;;  %v1358_v11 = vadd.f32 %v1354_v56, %v6318_v26 }
0x1dd6   :  { %v2130_v15 = vpop.permute.xlu1 %2129 }
0x1dd7   :  { %v6800_v5 = vsel %vm1418_vm4, %v6761_v10, %v2107_v12  ;;  %2134 = vrot.lane.b32.xlu0 %v2107_v12, %s6062_s20  ;;  %v6803_v17 = vmul.f32 %v5787_v30, %v2130_v15 }
0x1dd9   :  { %2138 = vrot.lane.b32.xlu1 %v6803_v17, %s6061_s3 }
0x1ddb   :  { %2143 = vrot.lane.b32.xlu0 %v2101_v36, %s6063_s1 }
0x1e49   :  { %v2135_v21 = vpop.permute.xlu0 %2134 }
0x1e4b   :  { %v2139_v24 = vpop.permute.xlu1 %2138 }
0x1e4c   :  { %v2141_v41 = vsel %vm149_vm0, %v2135_v21, %v2139_v24 }
0x1e4d   :  { %v2148_v42 = vrot.slane %v2141_v41, 3  ;;  %v2144_v49 = vpop.permute.xlu0 %2143 }
0x1e4e   :  { %v2146_v51 = vsel %vm149_vm0, %v2144_v49, %v2126_v39 }
0x1e4f   :  { %5254 = vmatmul.mubr.msk.f32.vlgmr.msra.gmra.mxu0 %vm227_vm1, %v2148_v42  ;;  %v2238_v55 = vrot.slane %v2146_v51, 7 }
0x1e50   :  { %5399 = vmatprep.mubr.msk.f32.mxu0 %vm6064_vm8, %v6060_v0 }
0x1f0f   :  { %v2217_v43 = vpop.f32.mrf.mxu0 }
0x1f10   :  { %v2224_v10 = vrot.slane %v2217_v43, 4 }
0x1f11   :  { %v2219_v45 = vpop.f32.mrf.mxu0 }
0x1f12   :  { %v2228_v46 = vadd.f32 %v2224_v10, %v6663_v2  ;;  %v2225_v47 = vrot.slane %v2219_v45, 4 }
0x1f14   :  { %5792 = vtanh.f32 %v2228_v46  ;;  %v2229_v48 = vadd.f32 %v2225_v47, %v1552_v8  ;;  %v5255_v59 = vmul.f32 -1.442695, %v2228_v46 }
0x1f16   :  { %5794 = vtanh.f32 %v2229_v48  ;;  %v5256_v62 = vmul.f32 -1.442695, %v2229_v48 }
0x1f17   :  { %5796 = vpow2.f32 %v5255_v59 }
0x1f18   :  { %5798 = vpow2.f32 %v5256_v62 }
0x1f21   :  { %v5793_v50 = vpop.eup %5792 }
0x1f22   :  { %2244 = vrot.lane.b32.xlu1 %v5793_v50, %s6061_s3 }
0x1f23   :  { %v5795_v53 = vpop.eup %5794 }
0x1f24   :  { %2269 = vrot.lane.b32.xlu0 %v5795_v53, %s6061_s3  ;;  %v5797_v6 = vpop.eup %5796 }
0x1f25   :  { %v5799_v57 = vpop.eup %5798  ;;  %v2233_v8 = vadd.f32 1.0, %v5797_v6 }
0x1f26   :  { %2239 = vrot.lane.b32.xlu1 %v2238_v55, %s6062_s20  ;;  %v2262_v61 = vadd.f32 1.0, %v5799_v57 }
0x1f27   :  { %5800 = vrcp.f32 %v2233_v8 }
0x1f28   :  { %5802 = vrcp.f32 %v2262_v61 }
0x1f34   :  { %v5801_v25 = vpop.eup %5800 }
0x1f35   :  { %v5803_v20 = vpop.eup %5802 }
0x1f36   :  { %v2267_v36 = vmul.f32 %v5803_v20, %v2238_v55 }
0x1f94   :  { %v2245_v19 = vpop.permute.xlu1 %2244 }
0x1f95   :  { %v2247_v18 = vmul.f32 %v5801_v25, %v2245_v19 }
0x1f96   :  { %v2270_v30 = vpop.permute.xlu0 %2269 }
0x1f97   :  { %2249 = vrot.lane.b32.xlu0 %v2247_v18, %s6062_s20  ;;  %v2272_v1 = vmul.f32 %v5803_v20, %v2270_v30 }
0x1f98   :  { %v2240_v31 = vpop.permute.xlu1 %2239 }
0x1f99   :  { %2274 = vrot.lane.b32.xlu1 %v2272_v1, %s6062_s20  ;;  %v2242_v32 = vmul.f32 %v5801_v25, %v2240_v31 }
0x2009   :  { %v2250_v33 = vpop.permute.xlu0 %2249 }
0x200a   :  { %v2252_v35 = vadd.f32 %v2250_v33, %v2242_v32  ;;  %v2466_v32 = vlaneseq }
0x200b   :  { %v2275_v28 = vpop.permute.xlu1 %2274 }
0x200c   :  { %5804 = vtanh.f32 %v2252_v35  ;;  %v2277_v38 = vadd.f32 %v2275_v28, %v2267_v36  ;;  %v6857_v33 = vshrl.u32 %v2466_v32, 7 }
0x200e   :  { %5806 = vtanh.f32 %v2277_v38  ;;  %v6862_v28 = vsub.s32 0, %v6857_v33 }
0x200f   :  { %5808 = vtanh.f32 %v1358_v11 }
0x2019   :  { %v5805_v39 = vpop.eup %5804 }
0x201a   :  { %2255 = vrot.lane.b32.xlu0 %v5805_v39, %s6061_s3 }
0x201b   :  { %v5807_v40 = vpop.eup %5806 }
0x201c   :  { %2280 = vrot.lane.b32.xlu1 %v5807_v40, %s6061_s3  ;;  %v5809_v16 = vpop.eup %5808  ;;  %v6868_v40 = vsub.s32 1, %v6857_v33 }
0x208c   :  { %v2256_v12 = vpop.permute.xlu0 %2255 }
0x208d   :  { %v2258_v15 = vmul.f32 %v5801_v25, %v2256_v12 }
0x208e   :  { %v2281_v24 = vpop.permute.xlu1 %2280 }
0x208f   :  { %v6825_v21 = vsel %vm1420_vm5, %v6800_v5, %v2258_v15  ;;  %2285 = vrot.lane.b32.xlu0 %v2258_v15, %s6062_s20  ;;  %v6828_v41 = vmul.f32 %v5803_v20, %v2281_v24 }
0x2091   :  { %2289 = vrot.lane.b32.xlu1 %v6828_v41, %s6061_s3 }
0x2093   :  { %1273 = vrot.lane.b32.xlu0 %v6555_v23, %s6063_s1 }
0x2095   :  { %1374 = vrot.lane.b32.xlu1 %v5809_v16, %s6061_s3  ;;  %v2458_v16 = vld [vmem:[%s7403_s6] sm:$0xf] }
0x2097   :  { %2294 = vrot.lane.b32.xlu0 %v2252_v35, %s6063_s1  ;;  %v2459_v35 = vld [vmem:[#allocation10] sm:$0xf] }
0x2098   :  { %v6859_v36 = vmul.f32 %v2459_v35, %v2459_v35 }
0x209a   :  { %v2858_v39 = vrot.slane %v6859_v36, %v6862_v28  ;;  %v2964_v56 = vrot.slane %v6859_v36, %v6868_v40 }
0x2101   :  { %v2286_v26 = vpop.permute.xlu0 %2285 }
0x2103   :  { %v2290_v42 = vpop.permute.xlu1 %2289 }
0x2104   :  { %v2292_v5 = vsel %vm149_vm0, %v2286_v26, %v2290_v42  ;;  %v6877_v26 = vmul.f32 %v2458_v16, %v2458_v16  ;;  %v6890_v42 = vsub.s32 2, %v6857_v33 }
0x2105   :  { %v1274_v43 = vpop.permute.xlu0 %1273  ;;  %v2299_v10 = vrot.slane %v2292_v5, 4 }
0x2106   :  { %v6839_v45 = vsel %vm149_vm0, %v1274_v43, %v6558_v9  ;;  %v5240_v9 = vmul.f32 -1.442695, %v1358_v11  ;;  %5398 = vmatpush3.xpose.msk.msra.mxu0 %vm149_vm0, %v6877_v26  ;;  %v3063_v43 = vrot.slane %v6859_v36, %v6890_v42 }
0x2107   :  { %v1368_v46 = vrot.slane %v6839_v45, 7  ;;  %5257 = vmatmul.mubr.msk.f32.vlgmr.msra.gmra.mxu1 %vm227_vm1, %v2299_v10  ;;  %v1375_v62 = vpop.permute.xlu1 %1374  ;;  %5407 = vmatprep.subr.mxu0 %v6060_v0  ;;  %v6896_v10 = vsub.s32 3, %v6857_v33 }
0x2108   :  { %5810 = vpow2.f32 %v5240_v9  ;;  %5403 = vmatpush3.xpose.msk.msra.mxu1 %vm149_vm0, %v6877_v26  ;;  %5404 = vmatprep.mubr.msk.f32.mxu1 %vm6064_vm8, %v6060_v0 }
0x2109   :  { %1369 = vrot.lane.b32.xlu0 %v1368_v46, %s6062_s20  ;;  %v2295_v23 = vpop.permute.xlu0 %2294  ;;  %5412 = vmatprep.subr.mxu1 %v6060_v0 }
0x210a   :  { %v6847_v47 = vsel %vm149_vm0, %v2295_v23, %v2277_v38 }
0x210b   :  { %v2389_v48 = vrot.slane %v6847_v47, 7 }
0x210d   :  { %2390 = vrot.lane.b32.xlu0 %v2389_v48, %s6062_s20 }
0x2115   :  { %v5811_v49 = vpop.eup %5810 }
0x2116   :  { %v1363_v53 = vadd.f32 1.0, %v5811_v49 }
0x217b   :  { %v1370_v18 = vpop.permute.xlu0 %1369 }
0x217f   :  { %v2391_v11 = vpop.permute.xlu0 %2390 }
0x21c7   :  { %v2368_v50 = vpop.f32.mrf.mxu1 }
0x21c8   :  { %v2375_v51 = vrot.slane %v2368_v50, 3  ;;  %v3162_v50 = vrot.slane %v6859_v36, %v6896_v10 }
0x21ca   :  { %v2379_v55 = vadd.f32 %v2375_v51, %v6663_v2 }
0x21cc   :  { %5812 = vtanh.f32 %v2379_v55  ;;  %v5258_v8 = vmul.f32 -1.442695, %v2379_v55 }
0x21cd   :  { %5814 = vrcp.f32 %v1363_v53 }
0x21ce   :  { %5816 = vpow2.f32 %v5258_v8 }
0x21d9   :  { %v5813_v59 = vpop.eup %5812 }
0x21da   :  { %2395 = vrot.lane.b32.xlu1 %v5813_v59, %s6061_s3  ;;  %v5815_v6 = vpop.eup %5814 }
0x21db   :  { %v1377_v57 = vmul.f32 %v5815_v6, %v1375_v62  ;;  %v5817_v61 = vpop.eup %5816  ;;  %v1372_v2 = vmul.f32 %v5815_v6, %v1370_v18  ;;  %v1355_v62 = vrot.slane %v6665_v3, 1  ;;  %v2370_v18 = vpop.f32.mrf.mxu1 }
0x21dc   :  { %v2384_v25 = vadd.f32 1.0, %v5817_v61 }
0x21de   :  { %1379 = vrot.lane.b32.xlu1 %v1377_v57, %s6062_s20  ;;  %5818 = vrcp.f32 %v2384_v25  ;;  %v2468_v25 = vsub.s32 5, %v6857_v33 }
0x21eb   :  { %v5819_v19 = vpop.eup %5818 }
0x21ec   :  { %v2393_v12 = vmul.f32 %v5819_v19, %v2391_v11 }
0x224c   :  { %v2396_v20 = vpop.permute.xlu1 %2395 }
0x224d   :  { %v2398_v30 = vmul.f32 %v5819_v19, %v2396_v20  ;;  %v1359_v20 = vadd.f32 %v1355_v62, %v671_v14  ;;  %v2460_v62 = vld [vmem:[#allocation11] sm:$0xf] }
0x224f   :  { %2400 = vrot.lane.b32.xlu1 %v2398_v30, %s6062_s20  ;;  %v2376_v30 = vrot.slane %v2370_v18, 3 }
0x2250   :  { %v1380_v1 = vpop.permute.xlu1 %1379 }
0x2251   :  { %v1382_v31 = vadd.f32 %v1380_v1, %v1372_v2  ;;  %v6934_v27 = vadd.f32 %v2376_v30, %v1689_v22 }
0x2253   :  { %5820 = vtanh.f32 %v1382_v31 }
0x2260   :  { %v5821_v38 = vpop.eup %5820 }
0x2261   :  { %1385 = vrot.lane.b32.xlu0 %v5821_v38, %s6061_s3  ;;  %v5241_v38 = vmul.f32 -1.442695, %v1359_v20 }
0x2265   :  { %2860 = vrot.lane.b32.xlu0 %v2858_v39, %s6063_s1 }
0x2269   :  { %2966 = vrot.lane.b32.xlu0 %v2964_v56, %s6063_s1 }
0x22c1   :  { %v2401_v15 = vpop.permute.xlu1 %2400 }
0x22c2   :  { %v2403_v24 = vadd.f32 %v2401_v15, %v2393_v12 }
0x22c4   :  { %5822 = vtanh.f32 %v2403_v24 }
0x22c5   :  { %5824 = vtanh.f32 %v1359_v20 }
0x22c6   :  { %5826 = vtanh.f32 %v6934_v27 }
0x22c7   :  { %5828 = vpow2.f32 %v5241_v38 }
0x22d1   :  { %v5823_v5 = vpop.eup %5822 }
0x22d2   :  { %2406 = vrot.lane.b32.xlu1 %v5823_v5, %s6061_s3  ;;  %v5825_v7 = vpop.eup %5824 }
0x22d3   :  { %v1386_v23 = vpop.permute.xlu0 %1385  ;;  %v5827_v22 = vpop.eup %5826 }
0x22d4   :  { %v1388_v9 = vmul.f32 %v5815_v6, %v1386_v23  ;;  %v5829_v39 = vpop.eup %5828 }
0x22d5   :  { %v1392_v12 = vadd.f32 1.0, %v5829_v39 }
0x22d6   :  { %v6900_v49 = vsel %vm1426_vm9, %v6568_v34, %v1388_v9  ;;  %3065 = vrot.lane.b32.xlu1 %v3063_v43, %s6063_s1  ;;  %v6065_v43 = vmov 1.0  }
0x22d7   :  { %v2461_v51 = vmul.f32 %v6900_v49, %v6900_v49  ;;  %v2861_v53 = vpop.permute.xlu0 %2860  ;;  %5830 = vrcp.f32 %v1392_v12 }
0x22d9   :  { %2550 = vrot.lane.b32.xlu0 %v2461_v51, %s6062_s20 }
0x22da   :  { %3164 = vrot.lane.b32.xlu1 %v3162_v50, %s6063_s1 }
0x22db   :  { %v2967_v34 = vpop.permute.xlu0 %2966 }
0x22dd   :  { %2865 = vrot.lane.b32.xlu0 %v6900_v49, %s6062_s20 }
0x22e4   :  { %v6992_v9 = vpop.eup %5830 }
0x2344   :  { %v2407_v55 = vpop.permute.xlu1 %2406 }
0x2345   :  { %v2409_v59 = vmul.f32 %v5819_v19, %v2407_v55 }
0x2347   :  { %v2439_v6 = vsel %vm1422_vm6, %v6825_v21, %v2409_v59 }
0x2348   :  { %v3066_v57 = vpop.permute.xlu1 %3065  ;;  %v2863_v8 = vmul.f32 %v2861_v53, %v2439_v6  ;;  %v2462_v61 = vmul.f32 %v2439_v6, %v2439_v6  ;;  %v2469_v2 = vrot.slane %v2439_v6, %v2468_v25  ;;  %v2969_v32 = vmul.f32 %v2967_v34, %v2439_v6 }
0x2349   :  { %v3068_v3 = vmul.f32 %v3066_v57, %v2439_v6 }
0x234a   :  { %2868 = vrot.lane.b32.xlu1 %v2863_v8, %s6062_s20  ;;  %2781 = vrot.lane.b32.xlu0 %v2462_v61, %s6062_s20  ;;  %v2625_v21 = vrot.slane %v2462_v61, 5  ;;  %v2470_v31 = vmul.f32 %v2469_v2, %v6900_v49  ;;  %v1397_v8 = vmul.f32 %v6992_v9, %v1368_v46 }
0x234b   :  { %v6919_v19 = vpop.permute.xlu0 %2550 }
0x234c   :  { %5405 = vmatmul.mubr.msk.f32.vlgmr.msra.gmra.mxu1 %vm149_vm0, %v6919_v19  ;;  %v3165_v1 = vpop.permute.xlu1 %3164  ;;  %v3265_v35 = vsel %vm149_vm0, %v6919_v19, 0.0 }
0x234d   :  { %5413 = vmatpush3.xpose.msk.msra.mxu1 %vm149_vm0, %v6859_v36  ;;  %5414 = vmatprep.mubr.msk.f32.mxu1 %vm6064_vm8, %v6060_v0  ;;  %v3167_v14 = vmul.f32 %v3165_v1, %v2439_v6 }
0x234e   :  { %2626 = vrot.lane.b32.xlu0 %v2625_v21, %s6062_s20  ;;  %3070 = vrot.lane.b32.xlu1 %v3068_v3, %s6062_s20 }
0x234f   :  { %5422 = vmatprep.subr.mxu1 %v6060_v0  ;;  %v6951_v11 = vpop.permute.xlu0 %2865 }
0x2350   :  { %5415 = vmatmul.mubr.msk.f32.vlgmr.msra.gmra.mxu1 %vm149_vm0, %v6919_v19 }
0x2351   :  { %5424 = vmatprep.mubr.msk.f32.mxu1 %vm6064_vm8, %v6060_v0 }
0x2352   :  { %2472 = vrot.lane.b32.xlu1 %v2470_v31, %s6062_s20  ;;  %3169 = vrot.lane.b32.xlu0 %v3167_v14, %s6062_s20 }
0x2356   :  { %2971 = vrot.lane.b32.xlu1 %v2969_v32, %s6062_s20  ;;  %v5259_v32 = vmul.f32 -1.442695, %v6934_v27 }
0x235a   :  { %3342 = vrot.lane.b32.xlu1 %v2439_v6, %s6062_s20  ;;  %v7015_v6 = vmul.f32 %v2460_v62, %v2460_v62 }
0x235e   :  { %1399 = vrot.lane.b32.xlu1 %v5825_v7, %s6061_s3 }
0x2362   :  { %2420 = vrot.lane.b32.xlu1 %v5827_v22, %s6061_s3 }
0x2371   :  { %3266 = vadd.xlane.f32.xlu0 %v3265_v35 }
0x23bc   :  { %v2869_v56 = vpop.permute.xlu1 %2868  ;;  %v2782_v24 = vpop.permute.xlu0 %2781 }
0x23bd   :  { %5423 = vmatpush3.xpose.msk.msra.mxu1 %vm149_vm0, %v2869_v56 }
0x23be   :  { %5432 = vmatprep.subr.mxu1 %v6060_v0 }
0x23c0   :  { %5425 = vmatmul.mubr.msk.f32.vlgmr.msra.gmra.mxu1 %vm149_vm0, %v6951_v11  ;;  %v3071_v15 = vpop.permute.xlu1 %3070  ;;  %v2627_v5 = vpop.permute.xlu0 %2626 }
0x23c1   :  { %5433 = vmatpush3.xpose.msk.msra.mxu1 %vm149_vm0, %v3071_v15  ;;  %5434 = vmatprep.mubr.msk.f32.mxu1 %vm6064_vm8, %v6060_v0 }
0x23c2   :  { %5442 = vmatprep.subr.mxu1 %v6060_v0 }
0x23c4   :  { %5435 = vmatmul.mubr.msk.f32.vlgmr.msra.gmra.mxu1 %vm149_vm0, %v6951_v11  ;;  %v2473_v16 = vpop.permute.xlu1 %2472  ;;  %v3170_v51 = vpop.permute.xlu0 %3169 }
0x23c5   :  { %5400 = vmatmul.mubr.msk.f32.vlgmr.msra.gmra.mxu0 %vm149_vm0, %v2473_v16  ;;  %5443 = vmatpush3.xpose.msk.msra.mxu1 %vm149_vm0, %v2782_v24 }
0x23c6   :  { %5408 = vmatpush3.xpose.msk.msra.mxu0 %vm149_vm0, %v6877_v26  ;;  %5444 = vmatprep.mubr.msk.f32.mxu1 %vm6064_vm8, %v6060_v0 }
0x23c7   :  { %5409 = vmatprep.mubr.msk.f32.mxu0 %vm6064_vm8, %v6060_v0  ;;  %5417 = vmatprep.subr.mxu0 %v6060_v0 }
0x23c8   :  { %5445 = vmatmul.mubr.msk.f32.vlgmr.msra.gmra.mxu1 %vm149_vm0, %v6065_v43  ;;  %v2972_v23 = vpop.permute.xlu1 %2971  ;;  %5452 = vmatprep.subr.mxu1 %v6060_v0 }
0x23c9   :  { %5410 = vmatmul.mubr.msk.f32.vlgmr.msra.gmra.mxu0 %vm149_vm0, %v2627_v5  ;;  %5454 = vmatprep.mubr.msk.f32.mxu1 %vm6064_vm8, %v6060_v0 }
0x23ca   :  { %5418 = vmatpush3.xpose.msk.msra.mxu0 %vm149_vm0, %v2782_v24  ;;  %5419 = vmatprep.mubr.msk.f32.mxu0 %vm6064_vm8, %v6060_v0 }
0x23cb   :  { %5427 = vmatprep.subr.mxu0 %v6060_v0 }
0x23cc   :  { %v6981_v26 = vpop.permute.xlu1 %3342 }
0x23cd   :  { %5420 = vmatmul.mubr.msk.f32.vlgmr.msra.gmra.mxu0 %vm149_vm0, %v6859_v36  ;;  %5453 = vmatpush3.msk.msra.mxu1 %vm1424_vm7, %v6981_v26 }
0x23ce   :  { %5428 = vmatpush3.xpose.msk.msra.mxu0 %vm149_vm0, %v2972_v23  ;;  %5429 = vmatprep.mubr.msk.f32.mxu0 %vm6064_vm8, %v6060_v0 }
0x23cf   :  { %5437 = vmatprep.subr.mxu0 %v6060_v0  ;;  %5462 = vmatprep.subr.mxu1 %v6060_v0 }
0x23d0   :  { %v1400_v50 = vpop.permute.xlu1 %1399 }
0x23d1   :  { %v1402_v53 = vmul.f32 %v6992_v9, %v1400_v50  ;;  %5430 = vmatmul.mubr.msk.f32.vlgmr.msra.gmra.mxu0 %vm149_vm0, %v6951_v11 }
0x23d2   :  { %5438 = vmatpush3.xpose.msk.msra.mxu0 %vm149_vm0, %v3170_v51  ;;  %5439 = vmatprep.mubr.msk.f32.mxu0 %vm6064_vm8, %v6060_v0 }
0x23d3   :  { %1404 = vrot.lane.b32.xlu0 %v1402_v53, %s6062_s20  ;;  %5447 = vmatprep.subr.mxu0 %v6060_v0 }
0x23d5   :  { %5440 = vmatmul.mubr.msk.f32.vlgmr.msra.gmra.mxu0 %vm149_vm0, %v6951_v11 }
0x23d6   :  { %5448 = vmatpush3.xpose.msk.msra.mxu0 %vm149_vm0, %v6981_v26  ;;  %5449 = vmatprep.mubr.msk.f32.mxu0 %vm6064_vm8, %v6060_v0 }
0x23d7   :  { %5457 = vmatprep.subr.mxu0 %v6060_v0 }
0x23d9   :  { %5450 = vmatmul.mubr.msk.f32.vlgmr.msra.gmra.mxu0 %vm149_vm0, %v6951_v11 }
0x23da   :  { %5459 = vmatprep.mubr.msk.f32.mxu0 %vm6064_vm8, %v6060_v0  ;;  %5458 = vmatpush3.xpose.msk.msra.mxu0 %vm149_vm0, %v7015_v6 }
0x23db   :  { %5467 = vmatprep.subr.mxu0 %v6060_v0 }
0x23fa   :  { %v3267_v57 = vpop.xlane.xlu0 %3266 }
0x240c   :  { %v2620_v36 = vpop.f32.mrf.mxu1 }
0x240e   :  { %v5406_v55 = vpop.f32.mrf.mxu1 }
0x2410   :  { %v7013_v59 = vpop.f32.mrf.mxu1 }
0x2412   :  { %v5416_v34 = vpop.f32.mrf.mxu1 }
0x2445   :  { %v1405_v61 = vpop.permute.xlu0 %1404 }
0x2446   :  { %v1407_v18 = vadd.f32 %v1405_v61, %v1397_v8  ;;  %v2421_v61 = vpop.permute.xlu1 %2420 }
0x2448   :  { %5832 = vtanh.f32 %v1407_v18 }
0x2449   :  { %5834 = vpow2.f32 %v5259_v32  ;;  %v1435_v32 = vrot.slane %v6499_v52, 1 }
0x2455   :  { %v5833_v20 = vpop.eup %5832 }
0x2456   :  { %1410 = vrot.lane.b32.xlu0 %v5833_v20, %s6061_s3  ;;  %v5835_v51 = vpop.eup %5834 }
0x2457   :  { %v2413_v34 = vadd.f32 1.0, %v5835_v51 }
0x2480   :  { %v7024_v30 = vpop.f32.mrf.mxu1 }
0x2482   :  { %v5426_v3 = vpop.f32.mrf.mxu1 }
0x2484   :  { %v7026_v21 = vpop.f32.mrf.mxu1 }
0x2485   :  { %v2545_v2 = vpop.f32.mrf.mxu0 }
0x2486   :  { %v5436_v1 = vpop.f32.mrf.mxu1 }
0x2487   :  { %v5401_v14 = vpop.f32.mrf.mxu0  ;;  %v1431_v1 = vrot.slane %v6571_v37, 5  ;;  %v1443_v37 = vrot.slane %v6336_v58, 1 }
0x2488   :  { %v3337_v31 = vpop.f32.mrf.mxu1 }
0x2489   :  { %v3419_v45 = vrot.slane %v3337_v31, %v6862_v28  ;;  %v2696_v46 = vpop.f32.mrf.mxu0  ;;  %v1433_v31 = vrot.slane %v6538_v44, 3 }
0x248a   :  { %v2703_v7 = vrot.slane %v2696_v46, %v6862_v28  ;;  %v5446_v22 = vpop.f32.mrf.mxu1 }
0x248b   :  { %v3420_v35 = vmul.f32 %v3419_v45, %v3267_v57  ;;  %v5411_v38 = vpop.f32.mrf.mxu0  ;;  %v1437_v45 = vrot.slane %v6460_v63, 7  ;;  %v3741_v63 = vld [vmem:[%s7406_s9] sm:$0xf] }
0x248c   :  { %v2704_v39 = vmul.f32 %v2703_v7, %v2620_v36  ;;  %v1439_v7 = vrot.slane %v6419_v60, 5  ;;  %v7071_v60 = vmul.f32 %v3741_v63, %v3741_v63 }
0x248d   :  { %v3421_v56 = vmax.f32 %v3420_v35, 1e-16  ;;  %v7031_v12 = vpop.f32.mrf.mxu0  ;;  %v1441_v35 = vrot.slane %v6376_v54, 3 }
0x248e   :  { %v2705_v15 = vmax.f32 %v2704_v39, 1e-16  ;;  %v4133_v54 = vrot.slane %v7071_v60, %v6862_v28  ;;  %v4238_v58 = vrot.slane %v7071_v60, %v6868_v40  ;;  %v4436_v47 = vrot.slane %v7071_v60, %v6896_v10 }
0x248f   :  { %5836 = vrsqrt.f32 %v3421_v56  ;;  %v5421_v24 = vpop.f32.mrf.mxu0 }
0x2490   :  { %5838 = vrsqrt.f32 %v2705_v15  ;;  %v6066_v15 = vmov -1e-08  }
0x2491   :  { %v7033_v16 = vpop.f32.mrf.mxu0  ;;  %5840 = vrcp.f32 %v2413_v34 }
0x2493   :  { %v5431_v27 = vpop.f32.mrf.mxu0 }
0x2495   :  { %v7035_v5 = vpop.f32.mrf.mxu0 }
0x2497   :  { %v5441_v23 = vpop.f32.mrf.mxu0 }
0x2499   :  { %v3412_v50 = vpop.f32.mrf.mxu0 }
0x249b   :  { %v5451_v53 = vpop.f32.mrf.mxu0 }
0x249c   :  { %v5837_v55 = vpop.eup %5836 }
0x249d   :  { %v5839_v36 = vpop.eup %5838  ;;  %v3423_v62 = vmul.f32 %v5837_v55, %v3412_v50 }
0x249e   :  { %v7037_v57 = vmul.f32 %v5839_v36, %v2545_v2  ;;  %v5841_v18 = vpop.eup %5840 }
0x249f   :  { %5455 = vmatmul.mubr.msk.f32.vlgmr.msra.gmra.mxu1 %vm2957_vm10, %v3423_v62  ;;  %v3424_v8 = vsel %vm2957_vm10, %v3423_v62, 0.0  ;;  %v2423_v20 = vmul.f32 %v5841_v18, %v2421_v61  ;;  %v2418_v50 = vmul.f32 %v5841_v18, %v2389_v48 }
0x24a0   :  { %5463 = vmatpush3.xpose.msk.msra.mxu1 %vm149_vm0, %v7015_v6  ;;  %3425 = vadd.xlane.f32.xlu1 %v3424_v8 }
0x24a1   :  { %5464 = vmatprep.mubr.msk.f32.mxu1 %vm6064_vm8, %v6060_v0  ;;  %5472 = vmatprep.subr.mxu1 %v6060_v0 }
0x24a3   :  { %5465 = vmatmul.mubr.msk.f32.vlgmr.msra.gmra.mxu1 %vm149_vm0, %v6919_v19 }
0x24a4   :  { %5474 = vmatprep.mubr.msk.f32.mxu1 %vm6064_vm8, %v6060_v0 }
0x24b1   :  { %2425 = vrot.lane.b32.xlu1 %v2423_v20, %s6062_s20  ;;  %v4337_v20 = vrot.slane %v7071_v60, %v6890_v42 }
0x24b5   :  { %4135 = vrot.lane.b32.xlu1 %v4133_v54, %s6063_s1 }
0x24b9   :  { %4240 = vrot.lane.b32.xlu1 %v4238_v58, %s6063_s1 }
0x24c8   :  { %v1411_v3 = vpop.permute.xlu0 %1410 }
0x24c9   :  { %v1413_v2 = vmul.f32 %v6992_v9, %v1411_v3  ;;  %v3740_v3 = vld [vmem:[%s7404_s7] sm:$0xf] }
0x24cb   :  { %v1429_v14 = vrot.slane %v1413_v2, 7  ;;  %v7100_v2 = vmul.f32 %v3740_v3, %v3740_v3 }
0x24cd   :  { %v1445_v19 = vsel %vm1414_vm2, %v1429_v14, %v1431_v1  ;;  %5473 = vmatpush3.xpose.msk.msra.mxu1 %vm149_vm0, %v7100_v2 }
0x24ce   :  { %v1446_v46 = vsel %vm1416_vm3, %v1445_v19, %v1433_v31  ;;  %5482 = vmatprep.subr.mxu1 %v6060_v0  ;;  %v2443_v19 = vrot.slane %v6828_v41, 3 }
0x24cf   :  { %v1447_v22 = vsel %vm1418_vm4, %v1446_v46, %v1435_v32  ;;  %v2445_v46 = vrot.slane %v6803_v17, 1 }
0x24d0   :  { %v1448_v9 = vsel %vm1420_vm5, %v1447_v22, %v1437_v45 }
0x24d1   :  { %v1449_v44 = vsel %vm1422_vm6, %v1448_v9, %v1439_v7  ;;  %v2447_v7 = vrot.slane %v6764_v13, 7 }
0x24d2   :  { %v1450_v52 = vsel %vm1424_vm7, %v1449_v44, %v1441_v35  ;;  %v2449_v35 = vrot.slane %v6723_v29, 5 }
0x24d3   :  { %v7066_v38 = vsel %vm1426_vm9, %v1450_v52, %v1443_v37 }
0x24d4   :  { %v3742_v48 = vmul.f32 %v7066_v38, %v7066_v38 }
0x2529   :  { %v3426_v39 = vpop.xlane.xlu1 %3425 }
0x252a   :  { %v3427_v56 = vand.u32 2147483647, %v3426_v39  ;;  %vm3429_vm11 = vcmp.ge.f32.partialorder %v3426_v39, 0.0 }
0x252b   :  { %v3430_v24 = vsel %vm3429_vm11, 1e-08, %v6066_v15 }
0x252c   :  { %vm3428_vm12 = vcmp.lt.f32.partialorder %v3427_v56, 1e-08 }
0x252d   :  { %v3431_v27 = vsel %vm3428_vm12, %v3430_v24, %v3426_v39  ;;  %v2426_v23 = vpop.permute.xlu1 %2425 }
0x252e   :  { %5842 = vrcp.f32 %v3431_v27  ;;  %v2428_v51 = vadd.f32 %v2426_v23, %v2418_v50 }
0x2530   :  { %5844 = vtanh.f32 %v2428_v51 }
0x2531   :  { %v4136_v37 = vpop.permute.xlu1 %4135 }
0x2535   :  { %v4241_v17 = vpop.permute.xlu1 %4240 }
0x253b   :  { %v5843_v53 = vpop.eup %5842 }
0x253d   :  { %v5845_v8 = vpop.eup %5844 }
0x255f   :  { %v3503_v55 = vpop.f32.mrf.mxu1 }
0x2560   :  { %v3508_v36 = vmul.f32 %v5843_v53, %v3503_v55 }
0x2561   :  { %v5456_v34 = vpop.f32.mrf.mxu1 }
0x2562   :  { %3510 = vrot.lane.b32.xlu0 %v3508_v36, %s6063_s1  ;;  %v3662_v50 = vmul.f32 %v3508_v36, %v3508_v36 }
0x2563   :  { %v7083_v62 = vpop.f32.mrf.mxu1 }
0x2565   :  { %v5466_v61 = vpop.f32.mrf.mxu1 }
0x2566   :  { %2431 = vrot.lane.b32.xlu0 %v5845_v8, %s6061_s3 }
0x256a   :  { %4339 = vrot.lane.b32.xlu0 %v4337_v20, %s6063_s1 }
0x256e   :  { %4438 = vrot.lane.b32.xlu0 %v4436_v47, %s6063_s1 }
0x2572   :  { %3830 = vrot.lane.b32.xlu0 %v3742_v48, %s6062_s20 }
0x2576   :  { %4140 = vrot.lane.b32.xlu0 %v7066_v38, %s6062_s20 }
0x25d4   :  { %v3511_v1 = vpop.permute.xlu0 %3510 }
0x25d5   :  { %v3513_v14 = vmul.f32 %v3511_v1, %v6900_v49  ;;  %v2451_v49 = vrot.slane %v6683_v4, 3 }
0x25d7   :  { %3515 = vrot.lane.b32.xlu1 %v3513_v14, %s6062_s20 }
0x25d8   :  { %v2432_v31 = vpop.permute.xlu0 %2431 }
0x25d9   :  { %v2434_v32 = vmul.f32 %v5841_v18, %v2432_v31 }
0x25db   :  { %v2441_v45 = vrot.slane %v2434_v32, 5 }
0x25dc   :  { %v4340_v13 = vpop.permute.xlu0 %4339 }
0x25dd   :  { %v2453_v22 = vsel %vm1414_vm2, %v2441_v45, %v2443_v19  ;;  %vm3262_vm2 = vcmask 23552  }
0x25de   :  { %v2454_v9 = vsel %vm1416_vm3, %v2453_v22, %v2445_v46  ;;  %vm5025_vm3 = vcmask 31744  }
0x25df   :  { %v2455_v44 = vsel %vm1418_vm4, %v2454_v9, %v2447_v7  ;;  %vm5027_vm4 = vcmask 64512  }
0x25e0   :  { %v2456_v18 = vsel %vm1420_vm5, %v2455_v44, %v2449_v35  ;;  %v4439_v39 = vpop.permute.xlu0 %4438  ;;  %vm5029_vm5 = vcmask 97280  }
0x25e1   :  { %v2457_v41 = vsel %vm1422_vm6, %v2456_v18, %v2451_v49  ;;  %vm5031_vm6 = vcmask 130048  }
0x25e2   :  { %v4138_v52 = vmul.f32 %v4136_v37, %v2457_v41  ;;  %v3743_v63 = vmul.f32 %v2457_v41, %v2457_v41  ;;  %v4342_v29 = vmul.f32 %v4340_v13, %v2457_v41  ;;  %v3749_v54 = vrot.slane %v2457_v41, %v6862_v28 }
0x25e3   :  { %v4243_v58 = vmul.f32 %v4241_v17, %v2457_v41  ;;  %v4441_v56 = vmul.f32 %v4439_v39, %v2457_v41 }
0x25e4   :  { %4143 = vrot.lane.b32.xlu1 %v4138_v52, %s6062_s20  ;;  %3905 = vrot.lane.b32.xlu0 %v3743_v63, %s6062_s20  ;;  %v3750_v4 = vmul.f32 %v3749_v54, %v7066_v38  ;;  %v7129_v24 = vpop.permute.xlu0 %3830 }
0x25e5   :  { %v4536_v27 = vsel %vm149_vm0, %v7129_v24, 0.0 }
0x25e8   :  { %4344 = vrot.lane.b32.xlu1 %v4342_v29, %s6062_s20  ;;  %4245 = vrot.lane.b32.xlu0 %v4243_v58, %s6062_s20  ;;  %v4141_v51 = vpop.permute.xlu0 %4140 }
0x25ec   :  { %3752 = vrot.lane.b32.xlu1 %v3750_v4, %s6062_s20  ;;  %4610 = vrot.lane.b32.xlu0 %v2457_v41, %s6062_s20 }
0x25f0   :  { %4443 = vrot.lane.b32.xlu1 %v4441_v56, %s6062_s20  ;;  %5043 = vrot.lane.b32.xlu0 %v2457_v41, %s6061_s3 }
0x25f4   :  { %5038 = vrot.lane.b32.xlu0 %v7066_v38, %s6061_s3 }
0x2614   :  { %4537 = vadd.xlane.f32.xlu1 %v4536_v27 }
0x2649   :  { %v3516_v23 = vpop.permute.xlu1 %3515 }
0x264a   :  { %5460 = vmatmul.mubr.msk.f32.vlgmr.msra.gmra.mxu0 %vm149_vm0, %v3516_v23 }
0x264b   :  { %5468 = vmatpush3.xpose.msk.msra.mxu0 %vm149_vm0, %v7015_v6  ;;  %5469 = vmatprep.mubr.msk.f32.mxu0 %vm6064_vm8, %v6060_v0 }
0x264c   :  { %5477 = vmatprep.subr.mxu0 %v6060_v0 }
0x264e   :  { %5470 = vmatmul.mubr.msk.f32.vlgmr.msra.gmra.mxu0 %vm149_vm0, %v3662_v50 }
0x264f   :  { %5478 = vmatpush3.xpose.msk.msra.mxu0 %vm149_vm0, %v7100_v2  ;;  %5479 = vmatprep.mubr.msk.f32.mxu0 %vm6064_vm8, %v6060_v0 }
0x2650   :  { %5487 = vmatprep.subr.mxu0 %v6060_v0 }
0x2652   :  { %5480 = vmatmul.mubr.msk.f32.vlgmr.msra.gmra.mxu0 %vm149_vm0, %v7129_v24 }
0x2653   :  { %5488 = vmatpush3.xpose.msk.msra.mxu0 %vm149_vm0, %v7071_v60  ;;  %5489 = vmatprep.mubr.msk.f32.mxu0 %vm6064_vm8, %v6060_v0 }
0x2654   :  { %5497 = vmatprep.subr.mxu0 %v6060_v0 }
0x2656   :  { %v4144_v53 = vpop.permute.xlu1 %4143  ;;  %5490 = vmatmul.mubr.msk.f32.vlgmr.msra.gmra.mxu0 %vm149_vm0, %v7129_v24  ;;  %v3906_v55 = vpop.permute.xlu0 %3905 }
0x2657   :  { %5498 = vmatpush3.xpose.msk.msra.mxu0 %vm149_vm0, %v4144_v53  ;;  %5499 = vmatprep.mubr.msk.f32.mxu0 %vm6064_vm8, %v6060_v0 }
0x2658   :  { %5507 = vmatprep.subr.mxu0 %v6060_v0 }
0x265a   :  { %v4345_v36 = vpop.permute.xlu1 %4344  ;;  %5500 = vmatmul.mubr.msk.f32.vlgmr.msra.gmra.mxu0 %vm149_vm0, %v4141_v51  ;;  %v4246_v34 = vpop.permute.xlu0 %4245 }
0x265b   :  { %5508 = vmatpush3.xpose.msk.msra.mxu0 %vm149_vm0, %v4345_v36  ;;  %5509 = vmatprep.mubr.msk.f32.mxu0 %vm6064_vm8, %v6060_v0 }
0x265c   :  { %5517 = vmatprep.subr.mxu0 %v6060_v0 }
0x265e   :  { %v3753_v8 = vpop.permute.xlu1 %3752  ;;  %5510 = vmatmul.mubr.msk.f32.vlgmr.msra.gmra.mxu0 %vm149_vm0, %v4141_v51  ;;  %v4611_v61 = vpop.permute.xlu0 %4610 }
0x265f   :  { %5475 = vmatmul.mubr.msk.f32.vlgmr.msra.gmra.mxu1 %vm149_vm0, %v3753_v8  ;;  %5518 = vmatpush3.xpose.msk.msra.mxu0 %vm149_vm0, %v3906_v55 }
0x2660   :  { %5483 = vmatpush3.xpose.msk.msra.mxu1 %vm149_vm0, %v7100_v2  ;;  %5519 = vmatprep.mubr.msk.f32.mxu0 %vm6064_vm8, %v6060_v0 }
0x2661   :  { %5484 = vmatprep.mubr.msk.f32.mxu1 %vm6064_vm8, %v6060_v0  ;;  %5492 = vmatprep.subr.mxu1 %v6060_v0 }
0x2662   :  { %5520 = vmatmul.mubr.msk.f32.vlgmr.msra.gmra.mxu0 %vm149_vm0, %v6065_v43  ;;  %5527 = vmatprep.subr.mxu0 %v6060_v0  ;;  %v5044_v20 = vpop.permute.xlu0 %5043  ;;  %v4444_v33 = vpop.permute.xlu1 %4443 }
0x2663   :  { %5485 = vmatmul.mubr.msk.f32.vlgmr.msra.gmra.mxu1 %vm149_vm0, %v3906_v55  ;;  %5528 = vmatpush3.msk.msra.mxu0 %vm1424_vm7, %v4611_v61  ;;  %v7180_v47 = vsel %vm149_vm0, %v6981_v26, %v5044_v20  ;;  %vm5033_vm7 = vcmask 162816  }
0x2664   :  { %5493 = vmatpush3.xpose.msk.msra.mxu1 %vm149_vm0, %v3906_v55  ;;  %5494 = vmatprep.mubr.msk.f32.mxu1 %vm6064_vm8, %v6060_v0  ;;  %v5050_v43 = vrot.slane %v7180_v47, %v2468_v25 }
0x2665   :  { %5502 = vmatprep.subr.mxu1 %v6060_v0  ;;  %5529 = vmatprep.mubr.msk.f32.mxu0 %vm6064_vm8, %v6060_v0 }
0x2666   :  { %5537 = vmatprep.subr.mxu0 %v6060_v0  ;;  %v5039_v48 = vpop.permute.xlu0 %5038 }
0x2667   :  { %5495 = vmatmul.mubr.msk.f32.vlgmr.msra.gmra.mxu1 %vm149_vm0, %v7071_v60  ;;  %v7196_v26 = vsel %vm149_vm0, %v6951_v11, %v5039_v48  ;;  %v5101_v48 = vld [vmem:[%s7408_s11 + $0x78] sm:$0xff] }
0x2668   :  { %5503 = vmatpush3.xpose.msk.msra.mxu1 %vm149_vm0, %v4246_v34  ;;  %5504 = vmatprep.mubr.msk.f32.mxu1 %vm6064_vm8, %v6060_v0  ;;  %v5051_v3 = vmul.f32 %v5050_v43, %v7196_v26 }
0x2669   :  { %5512 = vmatprep.subr.mxu1 %v6060_v0 }
0x266a   :  { %v5052_v25 = vsel %vm227_vm1, %v5051_v3, 0.0  ;;  %v5100_v3 = vld [vmem:[%s7408_s11 + $0x70] sm:$0xff] }
0x266b   :  { %5505 = vmatmul.mubr.msk.f32.vlgmr.msra.gmra.mxu1 %vm149_vm0, %v4141_v51  ;;  %5053 = vadd.xlane.f32.xlu0 %v5052_v25  ;;  %v5097_v25 = vld [vmem:[%s7408_s11 + $0x58] sm:$0xff] }
0x266c   :  { %5513 = vmatpush3.xpose.msk.msra.mxu1 %vm149_vm0, %v4444_v33  ;;  %5514 = vmatprep.mubr.msk.f32.mxu1 %vm6064_vm8, %v6060_v0  ;;  %v5099_v33 = vld [vmem:[%s7408_s11 + $0x68] sm:$0xff] }
0x266d   :  { %5522 = vmatprep.subr.mxu1 %v6060_v0 }
0x266f   :  { %5515 = vmatmul.mubr.msk.f32.vlgmr.msra.gmra.mxu1 %vm149_vm0, %v4141_v51 }
0x2670   :  { %5523 = vmatpush3.xpose.msk.msra.mxu1 %vm149_vm0, %v4611_v61  ;;  %5524 = vmatprep.mubr.msk.f32.mxu1 %vm6064_vm8, %v6060_v0 }
0x2671   :  { %5532 = vmatprep.subr.mxu1 %v6060_v0 }
0x2673   :  { %5525 = vmatmul.mubr.msk.f32.vlgmr.msra.gmra.mxu1 %vm149_vm0, %v4141_v51 }
0x2674   :  { %5533 = vmatpush3.xpose.msk.msra.mxu1 %vm149_vm0, %v7015_v6  ;;  %5534 = vmatprep.mubr.msk.f32.mxu1 %vm6064_vm8, %v6060_v0 }
0x2675   :  { %5542 = vmatprep.subr.mxu1 %v6060_v0 }
0x269d   :  { %v4538_v63 = vpop.xlane.xlu1 %4537 }
0x270a   :  { %v3588_v11 = vpop.f32.mrf.mxu0 }
0x270c   :  { %v5461_v60 = vpop.f32.mrf.mxu0 }
0x270d   :  { %v5095_v60 = vld [vmem:[%s7408_s11 + $0x48] sm:$0xff] }
0x270e   :  { %v3732_v2 = vpop.f32.mrf.mxu0 }
0x270f   :  { %v3736_v1 = vmul.f32 %v3732_v2, %v7083_v62  ;;  %v5081_v2 = vrot.slane %v7180_v47, 5  ;;  %v5092_v47 = vld [vmem:[%s7408_s11 + $0x30] sm:$0xff] }
0x2710   :  { %v5471_v14 = vpop.f32.mrf.mxu0 }
0x2711   :  { %v3737_v31 = vmax.f32 %v3736_v1, 1e-16  ;;  %v5094_v1 = vld [vmem:[%s7408_s11 + $0x40] sm:$0xff]  ;;  %v5093_v14 = vld [vmem:[%s7408_s11 + $0x38] sm:$0xff] }
0x2712   :  { %v3900_v32 = vpop.f32.mrf.mxu0 }
0x2713   :  { %5846 = vrsqrt.f32 %v3737_v31  ;;  %v5054_v31 = vpop.xlane.xlu0 %5053 }
0x2714   :  { %v5481_v19 = vpop.f32.mrf.mxu0 }
0x2715   :  { %v5091_v19 = vld [vmem:[%s7408_s11 + $0x28] sm:$0xff] }
0x2716   :  { %v7221_v45 = vpop.f32.mrf.mxu0 }
0x2718   :  { %v5491_v46 = vpop.f32.mrf.mxu0 }
0x2719   :  { %v5090_v46 = vld [vmem:[%s7408_s11 + $0x20] sm:$0xff] }
0x271a   :  { %v7223_v7 = vpop.f32.mrf.mxu0 }
0x271c   :  { %v5501_v22 = vpop.f32.mrf.mxu0 }
0x271e   :  { %v7225_v35 = vpop.f32.mrf.mxu0 }
0x271f   :  { %v3825_v9 = vpop.f32.mrf.mxu1 }
0x2720   :  { %v5847_v37 = vpop.eup %5846  ;;  %v5511_v49 = vpop.f32.mrf.mxu0 }
0x2721   :  { %v5476_v44 = vpop.f32.mrf.mxu1  ;;  %v7227_v18 = vmul.f32 %v5847_v37, %v3588_v11  ;;  %v5096_v11 = vld [vmem:[%s7408_s11 + $0x50] sm:$0xff] }
0x2722   :  { %v4605_v62 = vpop.f32.mrf.mxu0  ;;  %v5088_v37 = vld [vmem:[%s7408_s11 + $0x10] sm:$0xff]  ;;  %v5087_v44 = vld [vmem:[%s7408_s11 + $0x8] sm:$0xff] }
0x2723   :  { %v4687_v41 = vrot.slane %v4605_v62, %v6862_v28  ;;  %v3975_v52 = vpop.f32.mrf.mxu1  ;;  %v5086_v62 = vld [vmem:[%s7408_s11] sm:$0xff] }
0x2724   :  { %v3982_v17 = vrot.slane %v3975_v52, %v6862_v28  ;;  %v5521_v13 = vpop.f32.mrf.mxu0 }
0x2725   :  { %v4688_v29 = vmul.f32 %v4687_v41, %v4538_v63  ;;  %v5486_v54 = vpop.f32.mrf.mxu1 }
0x2726   :  { %v3983_v58 = vmul.f32 %v3982_v17, %v3900_v32  ;;  %v5055_v32 = vrot.slane %v5054_v31, 4 }
0x2727   :  { %v4689_v4 = vmax.f32 %v4688_v29, 1e-16  ;;  %v7231_v39 = vpop.f32.mrf.mxu1 }
0x2728   :  { %v3984_v56 = vmax.f32 %v3983_v58, 1e-16  ;;  %v5056_v22 = vmax.f32 %v5054_v31, %v5055_v32 }
0x2729   :  { %5848 = vrsqrt.f32 %v4689_v4  ;;  %v5496_v27 = vpop.f32.mrf.mxu1 }
0x272a   :  { %5850 = vrsqrt.f32 %v3984_v56  ;;  %v5057_v49 = vrot.slane %v5056_v22, 2 }
0x272b   :  { %v7233_v23 = vpop.f32.mrf.mxu1 }
0x272c   :  { %v5058_v41 = vmax.f32 %v5056_v22, %v5057_v49  ;;  %v6068_v22 = vmov 3   ;;  %v6070_v49 = vmov 2  }
0x272d   :  { %v5506_v50 = vpop.f32.mrf.mxu1  ;;  %5615 = vset.pattern.permute.xlu0 %v6068_v22 }
0x272e   :  { %v5059_v52 = vrot.slane %v5058_v41, 1 }
0x272f   :  { %v7235_v51 = vpop.f32.mrf.mxu1 }
0x2730   :  { %v5060_v63 = vmax.f32 %v5058_v41, %v5059_v52 }
0x2731   :  { %v5516_v53 = vpop.f32.mrf.mxu1 }
0x2732   :  { %v5061_v17 = vsub.f32 %v5054_v31, %v5060_v63 }
0x2733   :  { %v4680_v55 = vpop.f32.mrf.mxu1 }
0x2734   :  { %v5062_v13 = vmul.f32 1.442695, %v5061_v17 }
0x2735   :  { %v5526_v36 = vpop.f32.mrf.mxu1 }
0x2736   :  { %v5849_v34 = vpop.eup %5848  ;;  %5852 = vpow2.f32 %v5062_v13 }
0x2737   :  { %v5851_v8 = vpop.eup %5850  ;;  %v4691_v61 = vmul.f32 %v5849_v34, %v4680_v55 }
0x2738   :  { %v7237_v20 = vmul.f32 %v5851_v8, %v3825_v9  ;;  %v5089_v9 = vld [vmem:[%s7408_s11 + $0x18] sm:$0xff] }
0x2739   :  { %5530 = vmatmul.mubr.msk.f32.vlgmr.msra.gmra.mxu0 %vm2957_vm10, %v4691_v61  ;;  %v4692_v43 = vsel %vm2957_vm10, %v4691_v61, 0.0 }
0x273a   :  { %5538 = vmatpush3.xpose.msk.msra.mxu0 %vm149_vm0, %v7015_v6  ;;  %4693 = vadd.xlane.f32.xlu1 %v4692_v43 }
0x273b   :  { %5539 = vmatprep.mubr.msk.f32.mxu0 %vm6064_vm8, %v6060_v0  ;;  %5547 = vmatprep.subr.mxu0 %v6060_v0 }
0x273d   :  { %5540 = vmatmul.mubr.msk.f32.vlgmr.msra.gmra.mxu0 %vm149_vm0, %v7129_v24  ;;  %v5098_v24 = vld [vmem:[%s7408_s11 + $0x60] sm:$0xff] }
0x273e   :  { %5548 = vmatpush3.msra.mxu0 %v5101_v48  ;;  %5579 = vmatprep.mubr.msk.f32.mxu0 %vm6064_vm8, %v6060_v0 }
0x273f   :  { %5549 = vmatprep.subr.mxu0 %v6060_v0 }
0x2740   :  { %5550 = vmatpush3.msra.mxu0 %v5100_v3 }
0x2741   :  { %5551 = vmatprep.subr.mxu0 %v6060_v0 }
0x2742   :  { %5552 = vmatpush3.msra.mxu0 %v5099_v33 }
0x2743   :  { %5553 = vmatprep.subr.mxu0 %v6060_v0  ;;  %v5853_v29 = vpop.eup %5852 }
0x2744   :  { %5554 = vmatpush3.msra.mxu0 %v5098_v24  ;;  %v5064_v54 = vrot.slane %v5853_v29, 4 }
0x2745   :  { %5555 = vmatprep.subr.mxu0 %v6060_v0 }
0x2746   :  { %5556 = vmatpush3.msra.mxu0 %v5097_v25  ;;  %v5065_v58 = vadd.f32 %v5853_v29, %v5064_v54  ;;  %v3052_v54 = vrot.slane %v7031_v12, %v6868_v40 }
0x2747   :  { %5557 = vmatprep.subr.mxu0 %v6060_v0 }
0x2748   :  { %5558 = vmatpush3.msra.mxu0 %v5096_v11  ;;  %v5066_v4 = vrot.slane %v5065_v58, 2 }
0x2749   :  { %5559 = vmatprep.subr.mxu0 %v6060_v0 }
0x274a   :  { %5560 = vmatpush3.msra.mxu0 %v5095_v60  ;;  %v5067_v56 = vadd.f32 %v5066_v4, %v5065_v58 }
0x274b   :  { %5082 = vrot.lane.b32.xlu1 %v5081_v2, %s6061_s3  ;;  %5561 = vmatprep.subr.mxu0 %v6060_v0 }
0x274c   :  { %5562 = vmatpush3.msra.mxu0 %v5094_v1  ;;  %v5068_v27 = vrot.slane %v5067_v56, 1 }
0x274d   :  { %5563 = vmatprep.subr.mxu0 %v6060_v0 }
0x274e   :  { %5564 = vmatpush3.msra.mxu0 %v5093_v14  ;;  %v5069_v50 = vadd.f32 %v5068_v27, %v5067_v56 }
0x274f   :  { %5565 = vmatprep.subr.mxu0 %v6060_v0 }
0x2750   :  { %5566 = vmatpush3.msra.mxu0 %v5092_v47  ;;  %5854 = vrcp.f32 %v5069_v50 }
0x2751   :  { %5567 = vmatprep.subr.mxu0 %v6060_v0 }
0x2752   :  { %5568 = vmatpush3.msra.mxu0 %v5091_v19 }
0x2753   :  { %5569 = vmatprep.subr.mxu0 %v6060_v0 }
0x2754   :  { %5570 = vmatpush3.msra.mxu0 %v5090_v46 }
0x2755   :  { %5571 = vmatprep.subr.mxu0 %v6060_v0 }
0x2756   :  { %5572 = vmatpush3.msra.mxu0 %v5089_v9 }
0x2757   :  { %5573 = vmatprep.subr.mxu0 %v6060_v0 }
0x2758   :  { %5574 = vmatpush3.msra.mxu0 %v5088_v37 }
0x2759   :  { %5575 = vmatprep.subr.mxu0 %v6060_v0 }
0x275a   :  { %5576 = vmatpush3.msra.mxu0 %v5087_v44 }
0x275b   :  { %5577 = vmatprep.subr.mxu0 %v6060_v0 }
0x275c   :  { %5578 = vmatpush3.msra.mxu0 %v5086_v62  ;;  %v5102_v62 = vld [vmem:[%s7409_s12] sm:$0x1]  ;;  %s6071_s12 = smov 4  }
0x275d   :  { %v5855_v53 = vpop.eup %5854 }
0x275e   :  { %v5071_v55 = vmul.f32 %v5855_v53, %v5853_v29 }
0x2760   :  { %v5072_v36 = vmul.f32 %v5071_v55, %v7196_v26  ;;  %v6067_v26 = vmov 0  }
0x2761   :  { %5607 = vset.pattern.permute.xlu1 %v6067_v26 }
0x2762   :  { %v5073_v34 = vsel %vm227_vm1, %v5072_v36, 0.0  ;;  %v4227_v36 = vrot.slane %v7231_v39, %v6862_v28 }
0x2763   :  { %v5074_v8 = vrot.slane %v5073_v34, 4 }
0x2765   :  { %v5075_v61 = vadd.f32 %v5074_v8, %v5073_v34 }
0x2767   :  { %v5076_v43 = vrot.slane %v5075_v61, 2 }
0x2769   :  { %v5077_v48 = vadd.f32 %v5076_v43, %v5075_v61 }
0x276b   :  { %v5078_v3 = vrot.slane %v5077_v48, 1 }
0x276d   :  { %v5079_v24 = vadd.f32 %v5078_v3, %v5077_v48  ;;  %v4326_v3 = vrot.slane %v7231_v39, %v6868_v40 }
0x27c3   :  { %v4694_v33 = vpop.xlane.xlu1 %4693 }
0x27c4   :  { %v4695_v60 = vand.u32 2147483647, %v4694_v33  ;;  %vm4697_vm13 = vcmp.ge.f32.partialorder %v4694_v33, 0.0 }
0x27c5   :  { %v4698_v2 = vsel %vm4697_vm13, 1e-08, %v6066_v15  ;;  %v6069_v15 = vmov 1  }
0x27c6   :  { %vm4696_vm14 = vcmp.lt.f32.partialorder %v4695_v60, 1e-08 }
0x27c7   :  { %v5083_v25 = vpop.permute.xlu1 %5082  ;;  %v4699_v1 = vsel %vm4696_vm14, %v4698_v2, %v4694_v33  ;;  %v3250_v33 = vrot.slane %v7031_v12, %v6896_v10 }
0x27c8   :  { %v5085_v11 = vsel %vm227_vm1, %v5079_v24, %v5083_v25  ;;  %5856 = vrcp.f32 %v4699_v1  ;;  %vm3260_vm1 = vcmask 15360  }
0x27c9   :  { %5580 = vmatmul.mubr.f32.vlgmr.msra.gmra.mxu0 %v5085_v11 }
0x27d5   :  { %v5857_v14 = vpop.eup %5856 }
0x27f9   :  { %v4771_v31 = vpop.f32.mrf.mxu0 }
0x27fa   :  { %v4776_v47 = vmul.f32 %v5857_v14, %v4771_v31 }
0x27fb   :  { %v5531_v32 = vpop.f32.mrf.mxu0 }
0x27fc   :  { %4778 = vrot.lane.b32.xlu0 %v4776_v47, %s6063_s1  ;;  %v4524_v32 = vrot.slane %v7231_v39, %v6896_v10  ;;  %s6072_s1 = smov 8  }
0x27fd   :  { %v7320_v19 = vpop.f32.mrf.mxu0 }
0x27ff   :  { %v5541_v46 = vpop.f32.mrf.mxu0 }
0x286e   :  { %v4779_v9 = vpop.permute.xlu0 %4778 }
0x286f   :  { %v4781_v37 = vmul.f32 %v4779_v9, %v7066_v38 }
0x2871   :  { %4783 = vrot.lane.b32.xlu1 %v4781_v37, %s6062_s20 }
0x2875   :  { %2946 = vperm.xlu1 %5607, %v7013_v59  }
0x2879   :  { %5608 = vset.pattern.permute.xlu1 %v6069_v15 }
0x287a   :  { %3046 = vperm.xlu1 %5608, %v7013_v59  }
0x287e   :  { %5609 = vset.pattern.permute.xlu1 %v6070_v49 }
0x287f   :  { %3145 = vperm.xlu1 %5609, %v7013_v59  }
0x2883   :  { %5610 = vset.pattern.permute.xlu1 %v6067_v26  ;;  %v4425_v26 = vrot.slane %v7231_v39, %v6890_v42 }
0x2884   :  { %4221 = vperm.xlu1 %5610, %v7221_v45  }
0x2888   :  { %5611 = vset.pattern.permute.xlu1 %v6069_v15 }
0x2889   :  { %v5169_v44 = vpop.f32.mrf.mxu0  ;;  %4320 = vperm.xlu1 %5611, %v7221_v45  }
0x288a   :  { %v7335_v41 = vadd.f32 %v5169_v44, %v5102_v62 }
0x288b   :  { %v5581_v38 = vpop.f32.mrf.mxu0 }
0x288c   :  { %v5174_v52 = vsel %vm5173_vm15, %v7335_v41, -inf }
0x288d   :  { %5612 = vset.pattern.permute.xlu1 %v6068_v22 }
0x288e   :  { %3244 = vperm.xlu1 %5612, %v7013_v59   ;;  %v4927_v59 = vmul.f32 %v4776_v47, %v4776_v47 }
0x2892   :  { %5613 = vset.pattern.permute.xlu1 %v6070_v49 }
0x2893   :  { %4419 = vperm.xlu1 %5613, %v7221_v45  }
0x2897   :  { %5614 = vset.pattern.permute.xlu1 %v6068_v22 }
0x2898   :  { %4518 = vperm.xlu1 %5614, %v7221_v45   ;;  %v2952_v45 = vrot.slane %v7031_v12, %v6862_v28 }
0x28bc   :  { %5175 = vmax.xlane.f32.xlu1 %v5174_v52 }
0x28e3   :  { %v4784_v63 = vpop.permute.xlu1 %4783 }
0x28e4   :  { %5535 = vmatmul.mubr.msk.f32.vlgmr.msra.gmra.mxu1 %vm149_vm0, %v4784_v63 }
0x28e5   :  { %5543 = vmatpush3.xpose.msk.msra.mxu1 %vm149_vm0, %v7015_v6  ;;  %5544 = vmatprep.mubr.msk.f32.mxu1 %vm6064_vm8, %v6060_v0  ;;  %v3151_v6 = vrot.slane %v7031_v12, %v6890_v42  ;;  %vm5035_vm8 = vcmask 195584  }
0x28e8   :  { %5545 = vmatmul.mubr.msk.f32.vlgmr.msra.gmra.mxu1 %vm149_vm0, %v4927_v59  ;;  %vm3258_vm0 = vcmask 7168  }
0x28f0   :  { %v2947_v17 = vpop.permute.xlu1 %2946 }
0x28f1   :  { %v2953_v13 = vmul.f32 %v2952_v45, %v2947_v17 }
0x28f3   :  { %v2954_v29 = vmax.f32 %v2953_v13, 1e-16 }
0x28f5   :  { %5858 = vrsqrt.f32 %v2954_v29  ;;  %v3047_v58 = vpop.permute.xlu1 %3046 }
0x28f6   :  { %v3053_v4 = vmul.f32 %v3052_v54, %v3047_v58 }
0x28f8   :  { %v3054_v56 = vmax.f32 %v3053_v4, 1e-16 }
0x28fa   :  { %5860 = vrsqrt.f32 %v3054_v56  ;;  %v3146_v0 = vpop.permute.xlu1 %3145 }
0x28fb   :  { %v3152_v27 = vmul.f32 %v3151_v6, %v3146_v0 }
0x28fd   :  { %v3153_v50 = vmax.f32 %v3152_v27, 1e-16 }
0x28ff   :  { %5862 = vrsqrt.f32 %v3153_v50  ;;  %v4222_v53 = vpop.permute.xlu1 %4221 }
0x2900   :  { %v4228_v61 = vmul.f32 %v4227_v36, %v4222_v53 }
0x2902   :  { %v5859_v55 = vpop.eup %5858  ;;  %v4229_v25 = vmax.f32 %v4228_v61, 1e-16 }
0x2903   :  { %v2956_v34 = vmul.f32 %v5859_v55, %v7024_v30 }
0x2904   :  { %v4321_v8 = vpop.permute.xlu1 %4320  ;;  %5864 = vrsqrt.f32 %v4229_v25 }
0x2905   :  { %v2958_v43 = vsel %vm2957_vm10, %v2956_v34, -inf  ;;  %v4327_v60 = vmul.f32 %v4326_v3, %v4321_v8 }
0x2906   :  { %2959 = vmax.xlane.f32.xlu0 %v2958_v43 }
0x2907   :  { %v5861_v48 = vpop.eup %5860  ;;  %v4328_v14 = vmax.f32 %v4327_v60, 1e-16 }
0x2908   :  { %v3056_v24 = vmul.f32 %v5861_v48, %v7033_v16 }
0x2909   :  { %v3245_v11 = vpop.permute.xlu1 %3244 }
0x290a   :  { %v3251_v28 = vmul.f32 %v3250_v33, %v3245_v11  ;;  %v3057_v30 = vsel %vm2957_vm10, %v3056_v24, -inf }
0x290b   :  { %3058 = vmax.xlane.f32.xlu0 %v3057_v30 }
0x290c   :  { %v5863_v2 = vpop.eup %5862  ;;  %v3252_v1 = vmax.f32 %v3251_v28, 1e-16 }
0x290d   :  { %v3155_v40 = vmul.f32 %v5863_v2, %v7026_v21 }
0x290e   :  { %5866 = vrsqrt.f32 %v3252_v1  ;;  %v4420_v12 = vpop.permute.xlu1 %4419 }
0x290f   :  { %v4426_v31 = vmul.f32 %v4425_v26, %v4420_v12  ;;  %v3156_v16 = vsel %vm2957_vm10, %v3155_v40, -inf  ;;  %5868 = vrsqrt.f32 %v4328_v14 }
0x2910   :  { %3157 = vmax.xlane.f32.xlu0 %v3156_v16 }
0x2911   :  { %v4427_v47 = vmax.f32 %v4426_v31, 1e-16  ;;  %v5865_v37 = vpop.eup %5864 }
0x2912   :  { %v4231_v49 = vmul.f32 %v5865_v37, %v7223_v7 }
0x2913   :  { %v4519_v46 = vpop.permute.xlu1 %4518  ;;  %5870 = vrsqrt.f32 %v4427_v47 }
0x2914   :  { %v4525_v22 = vmul.f32 %v4524_v32, %v4519_v46  ;;  %v4232_v38 = vsel %vm2957_vm10, %v4231_v49, -inf }
0x2916   :  { %v4526_v9 = vmax.f32 %v4525_v22, 1e-16 }
0x2918   :  { %5872 = vrsqrt.f32 %v4526_v9 }
0x291b   :  { %v5867_v42 = vpop.eup %5866 }
0x291c   :  { %v3254_v21 = vmul.f32 %v5867_v42, %v7035_v5  ;;  %v5869_v44 = vpop.eup %5868 }
0x291d   :  { %v4330_v62 = vmul.f32 %v5869_v44, %v7233_v23 }
0x291e   :  { %v3255_v15 = vsel %vm2957_vm10, %v3254_v21, -inf }
0x291f   :  { %3256 = vmax.xlane.f32.xlu0 %v3255_v15  ;;  %v4331_v39 = vsel %vm2957_vm10, %v4330_v62, -inf }
0x2920   :  { %v5871_v10 = vpop.eup %5870 }
0x2921   :  { %v4429_v52 = vmul.f32 %v5871_v10, %v7225_v35 }
0x2923   :  { %4233 = vmax.xlane.f32.xlu0 %v4232_v38  ;;  %v4430_v5 = vsel %vm2957_vm10, %v4429_v52, -inf }
0x2925   :  { %v5873_v63 = vpop.eup %5872 }
0x2926   :  { %v4528_v59 = vmul.f32 %v5873_v63, %v7235_v51 }
0x2927   :  { %4332 = vmax.xlane.f32.xlu0 %v4331_v39 }
0x2928   :  { %v4529_v7 = vsel %vm2957_vm10, %v4528_v59, -inf }
0x292b   :  { %4431 = vmax.xlane.f32.xlu0 %v4430_v5 }
0x292f   :  { %4530 = vmax.xlane.f32.xlu0 %v4529_v7 }
0x2945   :  { %5006 = vrot.lane.b32.xlu0 %v7237_v20, %s6071_s12  ;;  %v5176_v53 = vpop.xlane.xlu1 %5175 }
0x298f   :  { %v2960_v23 = vpop.xlane.xlu0 %2959 }
0x2994   :  { %v3059_v45 = vpop.xlane.xlu0 %3058 }
0x2995   :  { %v3259_v29 = vsel %vm3258_vm0, %v2960_v23, %v3059_v45 }
0x2999   :  { %v3158_v17 = vpop.xlane.xlu0 %3157 }
0x299a   :  { %v3261_v54 = vsel %vm3260_vm1, %v3259_v29, %v3158_v17 }
0x29a4   :  { %v4853_v13 = vpop.f32.mrf.mxu1 }
0x29a6   :  { %v5536_v35 = vpop.f32.mrf.mxu1 }
0x29a8   :  { %v4997_v51 = vpop.f32.mrf.mxu1  ;;  %v3257_v58 = vpop.xlane.xlu0 %3256 }
0x29a9   :  { %v5001_v4 = vmul.f32 %v4997_v51, %v7320_v19  ;;  %v3263_v56 = vsel %vm3262_vm2, %v3261_v54, %v3257_v58  ;;  %v5177_v19 = vsub.f32 %v7335_v41, %v5176_v53 }
0x29aa   :  { %v5546_v6 = vpop.f32.mrf.mxu1  ;;  %5010 = vrot.lane.b32.xlu1 %v3263_v56, %s6072_s1 }
0x29ab   :  { %v5002_v20 = vmax.f32 %v5001_v4, 1e-16  ;;  %v5178_v48 = vmul.f32 1.442695, %v5177_v19 }
0x29ac   :  { %v4234_v0 = vpop.xlane.xlu0 %4233 }
0x29ad   :  { %5874 = vrsqrt.f32 %v5002_v20 }
0x29ae   :  { %5018 = vrot.lane.b32.xlu1 %v7227_v18, %s6054_s17  ;;  %5876 = vpow2.f32 %v5178_v48  ;;  %s6075_s17 = smov [#allocation14]  }
0x29af   :  { %s5202_s29 = sshll.u32 %s6075_s17, 4  ;;  %s5203_s29 = int_to_ptr.vmem [resolvable:$true] %s5202_s29 }
0x29b0   :  { %v4333_v27 = vpop.xlane.xlu0 %4332  ;;  %s6000_s0 = scalar_lea.vmem %s5203_s29, 128  ;;  %p6005_p3 = scmp.lt.s32.totalorder %s5203_s29, %s5203_s29 }
0x29b1   :  { %v4532_v55 = vsel %vm3258_vm0, %v4234_v0, %v4333_v27  ;;  %p6001_p2 = scmp.ne.s32.totalorder %s5203_s29, %s6000_s0  ;;  %p6006_p4 = scmp.lt.s32.totalorder %s6000_s0, %s6000_s0 }
0x29b3   :  { %p6007_p5 = por %p6006_p4, %p6005_p3 }
0x29b4   :  { %v4432_v50 = vpop.xlane.xlu0 %4431 }
0x29b5   :  { %v4533_v36 = vsel %vm3260_vm1, %v4532_v55, %v4432_v50  ;;  %p6008_p6 = pnand %p6007_p5, %p6001_p2 }
0x29b8   :  { %v4531_v34 = vpop.xlane.xlu0 %4530 }
0x29b9   :  { %v4534_v8 = vsel %vm3262_vm2, %v4533_v36, %v4531_v34 }
0x29ba   :  { %v5875_v61 = vpop.eup %5874  ;;  %5014 = vrot.lane.b32.xlu0 %v4534_v8, %s6073_s27 }
0x29bb   :  { %v5004_v43 = vmul.f32 %v5875_v61, %v4853_v13  ;;  %v5877_v18 = vpop.eup %5876 }
0x29bc   :  { %v5180_v3 = vsel %vm5173_vm15, %v5877_v18, 0.0  ;;  %v5007_v33 = vpop.permute.xlu0 %5006 }
0x29bd   :  { %v5026_v41 = vsel %vm5025_vm3, %v7037_v57, %v5007_v33 }
0x29be   :  { %5022 = vrot.lane.b32.xlu0 %v5004_v43, %s6074_s28 }
0x29d2   :  { %5181 = vadd.xlane.f32.xlu1 %v5180_v3 }
0x2a1c   :  { %v5011_v24 = vpop.permute.xlu1 %5010 }
0x2a1d   :  { %v5028_v25 = vsel %vm5027_vm4, %v5026_v41, %v5011_v24 }
0x2a20   :  { %v5019_v28 = vpop.permute.xlu1 %5018 }
0x2a2c   :  { %v5015_v11 = vpop.permute.xlu0 %5014 }
0x2a2d   :  { %v5030_v60 = vsel %vm5029_vm5, %v5028_v25, %v5015_v11 }
0x2a2e   :  { %v5032_v2 = vsel %vm5031_vm6, %v5030_v60, %v5019_v28 }
0x2a30   :  { %v5023_v30 = vpop.permute.xlu0 %5022 }
0x2a31   :  { %v5034_v1 = vsel %vm5033_vm7, %v5032_v2, %v5023_v30 }
0x2a32   :  { %5036 = vst.msk [vmem:[#allocation14] sm:$0xff] %vm5035_vm8, %v5034_v1 }
0x2a33   :  { %6011 = shalt.err (!%p6008_p6)
}
0x2a34   :  { %5205 = dma.vmem_to_hbm [thread:$0]  %s5203_s29, 128, %s7411_s14, [#allocation15]  }
0x2a35   :  { %s6076_s18 = smov [#allocation13]  }
0x2a36   :  { %s5192_s19 = sshll.u32 %s6076_s18, 4  ;;  %s5193_s19 = int_to_ptr.vmem [resolvable:$true] %s5192_s19 }
0x2a37   :  { %s6020_s5 = scalar_lea.vmem %s5193_s19, 16  ;;  %s6024_s21 = scalar_lea.vmem %s5193_s19, 32 }
0x2a38   :  { %p6021_p7 = scmp.ne.s32.totalorder %s5193_s19, %s6020_s5  ;;  %p6025_p8 = scmp.lt.s32.totalorder %s5193_s19, %s5193_s19 }
0x2a39   :  { %p6026_p9 = scmp.lt.s32.totalorder %s6024_s21, %s6020_s5 }
0x2a3b   :  { %p6027_p10 = por %p6026_p9, %p6025_p8 }
0x2a3d   :  { %p6028_p11 = pnand %p6027_p10, %p6021_p7 }
0x2a5b   :  { %v5182_v57 = vpop.xlane.xlu1 %5181 }
0x2a5c   :  { %5878 = vrcp.f32 %v5182_v57 }
0x2a69   :  { %v5879_v26 = vpop.eup %5878 }
0x2a6a   :  { %v5184_v40 = vmul.f32 %v5879_v26, %v5877_v18 }
0x2a6c   :  { %5185 = vst.msk [vmem:[#allocation13] sm:$0x1] %vm5173_vm15, %v5184_v40 }
0x2a6d   :  { %6031 = shalt.err (!%p6028_p11)
}
0x2a6e   :  { %5195 = dma.vmem_to_hbm [thread:$0]  %s5193_s19, 16, %s7410_s13, [#allocation4]  }
0x2a6f   :  { %6048 = dma.done.wait [#allocation4], 16  }
0x2a70   :  { %6049 = vsyncadd [#allocation4], 4294967280 }
0x2a71   :  { %6050 = dma.done.wait [#allocation15], 128  }
0x2a72   :  { %6051 = vsyncadd [#allocation15], 4294967168 }
0x2a73   :  { %5212 = vsyncpa [#allocation3], 1 }
0x2a74   :  { %5213 = vsyncpa [#allocation6], 1 }
0x2a75   :  { %5214 = vsyncpa [#allocation9], 1 }
0x2a76   :  { %5215 = vsyncpa [#allocation12], 1 }
0x2a77   :  { %5216 = vsyncpa [#allocation4], 1 }
0x2a78   :  { %5217 = vsyncpa [#allocation15], 1 }

</bundles_post_ra>
